<compile_context>
chip_gen: v5e
topology: v5e:2x2
jax: 0.10.0
libtpu: 0.0.40
codegen_flags: <defaults>
</compile_context>

<pallas_src>
import math

import jax
import jax.numpy as jnp
from jax import lax
from jax.experimental import pallas as pl
from jax.experimental.pallas import tpu as pltpu


C_IN = 128      # C*F after the permute + reshape (Conv1d in_channels)
C_MID = 128     # hidden conv channels
C_OUT = 256     # final conv channels (mean | logvar)
K = 5           # conv kernel size (layers 1-3)
STRIDE = 2
GN_EPS = 1e-5   # PyTorch GroupNorm default eps


def _conv_out_len(t_in):
    return (t_in - K) // STRIDE + 1


def _timbre_kernel(
    x_ref,                                    # (T, B, 128) time-major block
    w1_ref, b1_ref, g1_ref, be1_ref,          # conv1 + GN1
    w2_ref, b2_ref, g2_ref, be2_ref,          # conv2 + GN2
    w3_ref, b3_ref, g3_ref, be3_ref,          # conv3 + GN3
    w4_ref, b4_ref,                           # 1x1 conv to 256
    eps_ref,                                  # (B, 128) reparam noise
    out_ref,                                  # (B, 384) = mean | logvar | latent
    h1_ref, h2_ref,                           # VMEM scratch, time-major f32
):
    def conv_gn_relu(src_ref, t_out, w_ref, b_ref, g_ref, be_ref):
        # src_ref: (T_in, B, C_in) time-major.  im2col via five stride-2 tap
        # reads along the (untiled) leading time axis, then ONE bf16 MXU
        # matmul with K-dim = 5*C_in and M-dim = B*t_out.
        taps = [src_ref[pl.ds(k, t_out, stride=STRIDE), :, :] for k in range(K)]
        slab = jnp.concatenate(taps, axis=-1)               # (t_out, B, K*C_in)
        bsz = slab.shape[1]
        kc = slab.shape[2]
        c_out = w_ref.shape[1]
        slab = slab.reshape(t_out * bsz, kc).astype(jnp.bfloat16)
        acc = jnp.dot(slab, w_ref[...],
                      preferred_element_type=jnp.float32)    # (t_out*B, C_out) f32
        acc = acc.reshape(t_out, bsz, c_out) + b_ref[...]    # conv bias (f32)

        # GroupNorm(num_groups=1): per-sample stats over all (time, channel)
        # elements.  Two-pass (centered) form, all in f32.
        inv_n = 1.0 / float(t_out * c_out)
        mu = jnp.sum(jnp.sum(acc, axis=0), axis=-1, keepdims=True) * inv_n    # (B, 1)
        cen = acc - mu
        var = jnp.sum(jnp.sum(cen * cen, axis=0), axis=-1, keepdims=True) * inv_n
        hn = cen * lax.rsqrt(var + GN_EPS)
        hn = hn * g_ref[...] + be_ref[...]                    # per-channel affine
        return jnp.maximum(hn, 0.0)                           # ReLU, (t_out, B, C_out)

    t1 = h1_ref.shape[0]
    t2 = h2_ref.shape[0]
    t3 = _conv_out_len(t2)

    h1_ref[...] = conv_gn_relu(x_ref, t1, w1_ref, b1_ref, g1_ref, be1_ref)
    h2_ref[...] = conv_gn_relu(h1_ref, t2, w2_ref, b2_ref, g2_ref, be2_ref)
    h3 = conv_gn_relu(h2_ref, t3, w3_ref, b3_ref, g3_ref, be3_ref)

    # AdaptiveAvgPool1d(1) commuted with the (linear) 1x1 conv: pool first,
    # then a single (B,128)@(128,256) matmul.
    pooled = jnp.mean(h3, axis=0)                             # (B, 128) f32
    y = jnp.dot(pooled.astype(jnp.bfloat16), w4_ref[...],
                preferred_element_type=jnp.float32) + b4_ref[...]   # (B, 256)

    mu = y[:, :C_MID]
    lv = y[:, C_MID:]
    # reparameterize: mean + eps * exp(logvar)  (module uses exp(logvar) as std)
    lat = mu + eps_ref[...] * jnp.exp(lv)
    out_ref[...] = jnp.concatenate([mu, lv, lat], axis=-1)    # (B, 384)


def timbre_encoder_forward(x, params, eps, *, b_blk=8):
    """JAX/Pallas equivalent of TimbreEncoder.forward.

    x:      [BS, C, T, F] with C*F == 128
    params: dict of conv / GroupNorm parameters (PyTorch layouts)
    eps:    [BS, 128] standard-normal noise for the reparameterization trick
    Returns (mean, logvar, timbre_latent), each [BS, 8, 1, 16].
    """
    BS, C, T, F = x.shape
    assert C * F == C_IN, "C * F must equal 128 (Conv1d in_channels)"
    assert b_blk % 8 == 0, "batch block must be a multiple of 8 (sublane tile)"

    T1 = _conv_out_len(T)
    T2 = _conv_out_len(T1)
    T3 = _conv_out_len(T2)
    assert T3 >= 1, "T too small for three stride-2 k=5 valid convolutions"

    bs_pad = ((BS + b_blk - 1) // b_blk) * b_blk

    # Glue (plain JAX): PyTorch permute(0,1,3,2).reshape(BS, C*F, T), laid out
    # TIME-MAJOR with channels lane-dense: [T, BS, 128].
    xt = jnp.transpose(x, (2, 0, 1, 3)).reshape(T, BS, C * F).astype(jnp.float32)
    eps32 = eps.astype(jnp.float32)
    if bs_pad != BS:
        xt = jnp.pad(xt, ((0, 0), (0, bs_pad - BS), (0, 0)))
        eps32 = jnp.pad(eps32, ((0, bs_pad - BS), (0, 0)))

    # Weight re-layout for im2col matmuls: torch [C_out, C_in, K] ->
    # [K*C_in, C_out], bf16 (MXU operands; accumulation stays f32).
    def conv_w(w):
        cout, cin, k = w.shape
        return jnp.transpose(w, (2, 1, 0)).reshape(k * cin, cout).astype(jnp.bfloat16)

    w1 = conv_w(params["w1"])
    w2 = conv_w(params["w2"])
    w3 = conv_w(params["w3"])
    w4 = jnp.transpose(params["w4"][:, :, 0], (1, 0)).astype(jnp.bfloat16)  # [128,256]
    row = lambda v: v.reshape(1, -1).astype(jnp.float32)

    const = lambda shape: pl.BlockSpec(shape, lambda i: (0, 0))

    out = pl.pallas_call(
        _timbre_kernel,
        out_shape=jax.ShapeDtypeStruct((bs_pad, 3 * C_MID), jnp.float32),
        grid_spec=pltpu.PrefetchScalarGridSpec(
            num_scalar_prefetch=0,
            grid=(bs_pad // b_blk,),
            in_specs=[
                pl.BlockSpec((T, b_blk, C_IN), lambda i: (0, i, 0)),   # x (time-major)
                const((K * C_IN, C_MID)), const((1, C_MID)),           # w1, b1
                const((1, C_MID)), const((1, C_MID)),                  # g1, be1
                const((K * C_MID, C_MID)), const((1, C_MID)),          # w2, b2
                const((1, C_MID)), const((1, C_MID)),                  # g2, be2
                const((K * C_MID, C_MID)), const((1, C_MID)),          # w3, b3
                const((1, C_MID)), const((1, C_MID)),                  # g3, be3
                const((C_MID, C_OUT)), const((1, C_OUT)),              # w4, b4
                pl.BlockSpec((b_blk, C_MID), lambda i: (i, 0)),        # eps
            ],
            out_specs=pl.BlockSpec((b_blk, 3 * C_MID), lambda i: (i, 0)),
            scratch_shapes=[
                pltpu.VMEM((T1, b_blk, C_MID), jnp.float32),           # h1
                pltpu.VMEM((T2, b_blk, C_MID), jnp.float32),           # h2
            ],
        ),
        compiler_params=pltpu.CompilerParams(
            dimension_semantics=("parallel",),
        ),
    )(
        xt,
        w1, row(params["b1"]), row(params["g1"]), row(params["be1"]),
        w2, row(params["b2"]), row(params["g2"]), row(params["be2"]),
        w3, row(params["b3"]), row(params["g3"]), row(params["be3"]),
        w4, row(params["b4"]),
        eps32,
    )

    out = out[:BS]
    shape4 = (BS, 8, 1, 16)   # matches PyTorch t.view(t.size(0), 8, 1, 16)
    mean = out[:, :C_MID].reshape(shape4)
    logvar = out[:, C_MID:2 * C_MID].reshape(shape4)
    latent = out[:, 2 * C_MID:].reshape(shape4)
    return mean, logvar, latent


# ---------------- parameter init (PyTorch layouts) ----------------
def init_params(key):
    ks = jax.random.split(key, 14)

    def conv_w(k, cout, cin, ksize, scale=1.0):
        return (scale / math.sqrt(cin * ksize)) * jax.random.normal(
            k, (cout, cin, ksize), jnp.float32)

    p = {}
    p["w1"] = conv_w(ks[0], C_MID, C_IN, K)
    p["b1"] = 0.05 * jax.random.normal(ks[1], (C_MID,), jnp.float32)
    p["g1"] = 1.0 + 0.1 * jax.random.normal(ks[2], (C_MID,), jnp.float32)
    p["be1"] = 0.1 * jax.random.normal(ks[3], (C_MID,), jnp.float32)
    p["w2"] = conv_w(ks[4], C_MID, C_MID, K)
    p["b2"] = 0.05 * jax.random.normal(ks[5], (C_MID,), jnp.float32)
    p["g2"] = 1.0 + 0.1 * jax.random.normal(ks[6], (C_MID,), jnp.float32)
    p["be2"] = 0.1 * jax.random.normal(ks[7], (C_MID,), jnp.float32)
    p["w3"] = conv_w(ks[8], C_MID, C_MID, K)
    p["b3"] = 0.05 * jax.random.normal(ks[9], (C_MID,), jnp.float32)
    p["g3"] = 1.0 + 0.1 * jax.random.normal(ks[10], (C_MID,), jnp.float32)
    p["be3"] = 0.1 * jax.random.normal(ks[11], (C_MID,), jnp.float32)
    p["w4"] = conv_w(ks[12], C_OUT, C_MID, 1, scale=0.1)  # keeps logvar modest
    p["b4"] = 0.05 * jax.random.normal(ks[13], (C_OUT,), jnp.float32)
    return p


# ---------------- pure-JAX reference (PyTorch semantics, f32) ----------------
def _ref_forward(x, params, eps):
    BS, C, T, F = x.shape
    h = jnp.transpose(x, (0, 1, 3, 2)).reshape(BS, C * F, T)

    def conv1d(h, w, b, stride):
        y = lax.conv_general_dilated(
            h, w, window_strides=(stride,), padding="VALID",
            dimension_numbers=("NCH", "OIH", "NCH"))
        return y + b[None, :, None]

    def gn(h, g, be):
        mu = jnp.mean(h, axis=(1, 2), keepdims=True)
        var = jnp.mean((h - mu) ** 2, axis=(1, 2), keepdims=True)
        hn = (h - mu) / jnp.sqrt(var + GN_EPS)
        return hn * g[None, :, None] + be[None, :, None]

    for i in (1, 2, 3):
        h = conv1d(h, params[f"w{i}"], params[f"b{i}"], STRIDE)
        h = gn(h, params[f"g{i}"], params[f"be{i}"])
        h = jnp.maximum(h, 0.0)
    h = conv1d(h, params["w4"], params["b4"], 1)
    pooled = jnp.mean(h, axis=2)                     # AdaptiveAvgPool1d(1)
    mu, lv = pooled[:, :C_MID], pooled[:, C_MID:]
    lat = mu + eps * jnp.exp(lv)
    shape4 = (BS, 8, 1, 16)
    return mu.reshape(shape4), lv.reshape(shape4), lat.reshape(shape4)


if __name__ == "__main__":
    # Small shapes consistent with the module: C * F = 128 (Conv1d in_channels),
    # T large enough for three stride-2, k=5 valid convs (64 -> 30 -> 13 -> 5).
    # BS=16 with B_BLK=8 exercises two "parallel" grid steps (v7x megacore).
    BS, C, T, F = 16, 8, 64, 16

    key = jax.random.PRNGKey(0)
    kx, kp, ke = jax.random.split(key, 3)
    x = jax.random.normal(kx, (BS, C, T, F), dtype=jnp.float32)
    params = init_params(kp)
    # Reparameterization noise eps ~ N(0, 1) (torch.randn_like equivalent),
    # generated outside the kernel for determinism.
    eps = jax.random.normal(ke, (BS, C_MID), dtype=jnp.float32)

    fwd = jax.jit(timbre_encoder_forward)
    mean, logvar, latent = jax.block_until_ready(fwd(x, params, eps))

    assert mean.shape == (BS, 8, 1, 16)
    assert logvar.shape == (BS, 8, 1, 16)
    assert latent.shape == (BS, 8, 1, 16)

    # Correctness check against a pure-f32 JAX reference of the PyTorch forward.
    # Tolerance is 1e-2 (slightly looser than the old 5e-3) because the conv
    # matmuls now feed the MXU bf16 operands (f32 accumulation).
    m_ref, l_ref, t_ref = _ref_forward(x, params, eps)
    tol = dict(atol=1e-2, rtol=1e-2)
    assert jnp.allclose(mean, m_ref, **tol), \
        f"mean mismatch: {jnp.max(jnp.abs(mean - m_ref))}"
    assert jnp.allclose(logvar, l_ref, **tol), \
        f"logvar mismatch: {jnp.max(jnp.abs(logvar - l_ref))}"
    assert jnp.allclose(latent, t_ref, **tol), \
        f"latent mismatch: {jnp.max(jnp.abs(latent - t_ref))}"

    print("KERNEL_OK")
</pallas_src>

<mosaic_0001>
module attributes {stable_mosaic.version = 11 : i64} {
  func.func @_timbre_kernel(%arg0: i32, %arg1: memref<64x8x128xf32, #tpu.memory_space<vmem>>, %arg2: memref<640x128xbf16, #tpu.memory_space<vmem>>, %arg3: memref<1x128xf32, #tpu.memory_space<vmem>>, %arg4: memref<1x128xf32, #tpu.memory_space<vmem>>, %arg5: memref<1x128xf32, #tpu.memory_space<vmem>>, %arg6: memref<640x128xbf16, #tpu.memory_space<vmem>>, %arg7: memref<1x128xf32, #tpu.memory_space<vmem>>, %arg8: memref<1x128xf32, #tpu.memory_space<vmem>>, %arg9: memref<1x128xf32, #tpu.memory_space<vmem>>, %arg10: memref<640x128xbf16, #tpu.memory_space<vmem>>, %arg11: memref<1x128xf32, #tpu.memory_space<vmem>>, %arg12: memref<1x128xf32, #tpu.memory_space<vmem>>, %arg13: memref<1x128xf32, #tpu.memory_space<vmem>>, %arg14: memref<128x256xbf16, #tpu.memory_space<vmem>>, %arg15: memref<1x256xf32, #tpu.memory_space<vmem>>, %arg16: memref<8x128xf32, #tpu.memory_space<vmem>>, %arg17: memref<8x384xf32, #tpu.memory_space<vmem>>, %arg18: memref<30x8x128xf32, #tpu.memory_space<vmem>>, %arg19: memref<13x8x128xf32, #tpu.memory_space<vmem>>) attributes {dimension_semantics = [#tpu.dimension_semantics<parallel>], iteration_bounds = array<i64: 2>, scalar_prefetch = 0 : i64, scratch_operands = 2 : i64, tpu.core_type = #tpu.core_type<tc>, window_params = [{transform_indices = @transform_0, window_bounds = array<i64: 64, 8, 128>}, {pipeline_mode = #tpu.pipeline_mode<synchronous>, transform_indices = @transform_1, window_bounds = array<i64: 640, 128>}, {pipeline_mode = #tpu.pipeline_mode<synchronous>, transform_indices = @transform_2, window_bounds = array<i64: 1, 128>}, {pipeline_mode = #tpu.pipeline_mode<synchronous>, transform_indices = @transform_3, window_bounds = array<i64: 1, 128>}, {pipeline_mode = #tpu.pipeline_mode<synchronous>, transform_indices = @transform_4, window_bounds = array<i64: 1, 128>}, {pipeline_mode = #tpu.pipeline_mode<synchronous>, transform_indices = @transform_5, window_bounds = array<i64: 640, 128>}, {pipeline_mode = #tpu.pipeline_mode<synchronous>, transform_indices = @transform_6, window_bounds = array<i64: 1, 128>}, {pipeline_mode = #tpu.pipeline_mode<synchronous>, transform_indices = @transform_7, window_bounds = array<i64: 1, 128>}, {pipeline_mode = #tpu.pipeline_mode<synchronous>, transform_indices = @transform_8, window_bounds = array<i64: 1, 128>}, {pipeline_mode = #tpu.pipeline_mode<synchronous>, transform_indices = @transform_9, window_bounds = array<i64: 640, 128>}, {pipeline_mode = #tpu.pipeline_mode<synchronous>, transform_indices = @transform_10, window_bounds = array<i64: 1, 128>}, {pipeline_mode = #tpu.pipeline_mode<synchronous>, transform_indices = @transform_11, window_bounds = array<i64: 1, 128>}, {pipeline_mode = #tpu.pipeline_mode<synchronous>, transform_indices = @transform_12, window_bounds = array<i64: 1, 128>}, {pipeline_mode = #tpu.pipeline_mode<synchronous>, transform_indices = @transform_13, window_bounds = array<i64: 128, 256>}, {pipeline_mode = #tpu.pipeline_mode<synchronous>, transform_indices = @transform_14, window_bounds = array<i64: 1, 256>}, {transform_indices = @transform_15, window_bounds = array<i64: 8, 128>}, {transform_indices = @transform_16, window_bounds = array<i64: 8, 384>}]} {
    %c0 = arith.constant 0 : index
    %c0_0 = arith.constant 0 : index
    %c0_1 = arith.constant 0 : index
    %0 = tpu.strided_load %arg1[%c0, %c0_0, %c0_1] {strides = array<i32: 2, 1, 1>} : memref<64x8x128xf32, #tpu.memory_space<vmem>>, vector<30x8x128xf32>
    %c1 = arith.constant 1 : index
    %c0_2 = arith.constant 0 : index
    %c0_3 = arith.constant 0 : index
    %1 = tpu.strided_load %arg1[%c1, %c0_2, %c0_3] {strides = array<i32: 2, 1, 1>} : memref<64x8x128xf32, #tpu.memory_space<vmem>>, vector<30x8x128xf32>
    %c2 = arith.constant 2 : index
    %c0_4 = arith.constant 0 : index
    %c0_5 = arith.constant 0 : index
    %2 = tpu.strided_load %arg1[%c2, %c0_4, %c0_5] {strides = array<i32: 2, 1, 1>} : memref<64x8x128xf32, #tpu.memory_space<vmem>>, vector<30x8x128xf32>
    %c3 = arith.constant 3 : index
    %c0_6 = arith.constant 0 : index
    %c0_7 = arith.constant 0 : index
    %3 = tpu.strided_load %arg1[%c3, %c0_6, %c0_7] {strides = array<i32: 2, 1, 1>} : memref<64x8x128xf32, #tpu.memory_space<vmem>>, vector<30x8x128xf32>
    %c4 = arith.constant 4 : index
    %c0_8 = arith.constant 0 : index
    %c0_9 = arith.constant 0 : index
    %4 = tpu.strided_load %arg1[%c4, %c0_8, %c0_9] {strides = array<i32: 2, 1, 1>} : memref<64x8x128xf32, #tpu.memory_space<vmem>>, vector<30x8x128xf32>
    %5 = tpu.concatenate %0, %1, %2, %3, %4 in 2 : vector<30x8x128xf32>, vector<30x8x128xf32>, vector<30x8x128xf32>, vector<30x8x128xf32>, vector<30x8x128xf32> -> vector<30x8x640xf32>
    %6 = vector.shape_cast %5 : vector<30x8x640xf32> to vector<240x640xf32>
    %7 = arith.truncf %6 : vector<240x640xf32> to vector<240x640xbf16>
    %c0_10 = arith.constant 0 : index
    %c0_11 = arith.constant 0 : index
    %8 = vector.load %arg2[%c0_10, %c0_11] : memref<640x128xbf16, #tpu.memory_space<vmem>>, vector<640x128xbf16>
    %cst = arith.constant dense<0.000000e+00> : vector<240x128xf32>
    %9 = tpu.matmul %7, %8, %cst {dimension_numbers = #tpu.dot_dimension_numbers<[1], [0], [0], [1], [0, 0, 1, 1], [], []>} : vector<240x640xbf16>, vector<640x128xbf16>, vector<240x128xf32> -> vector<240x128xf32>
    %10 = vector.shape_cast %9 : vector<240x128xf32> to vector<30x8x128xf32>
    %c0_12 = arith.constant 0 : index
    %c0_13 = arith.constant 0 : index
    %11 = vector.load %arg3[%c0_12, %c0_13] : memref<1x128xf32, #tpu.memory_space<vmem>>, vector<1x128xf32>
    %12 = vector.shape_cast %11 : vector<1x128xf32> to vector<1x1x128xf32>
    %13 = vector.broadcast %12 : vector<1x1x128xf32> to vector<30x8x128xf32>
    %14 = arith.addf %10, %13 : vector<30x8x128xf32>
    %cst_14 = arith.constant dense<0.000000e+00> : vector<8x128xf32>
    %15 = vector.multi_reduction <add>, %14, %cst_14 [0] : vector<30x8x128xf32> to vector<8x128xf32>
    %cst_15 = arith.constant dense<0.000000e+00> : vector<8xf32>
    %16 = vector.multi_reduction <add>, %15, %cst_15 [1] : vector<8x128xf32> to vector<8xf32>
    %17 = vector.shape_cast %16 : vector<8xf32> to vector<8x1xf32>
    %cst_16 = arith.constant 2.6041668E-4 : f32
    %18 = vector.broadcast %cst_16 : f32 to vector<8x1xf32>
    %19 = arith.mulf %17, %18 : vector<8x1xf32>
    %20 = vector.shape_cast %19 : vector<8x1xf32> to vector<1x8x1xf32>
    %21 = vector.broadcast %20 : vector<1x8x1xf32> to vector<30x8x128xf32>
    %22 = arith.subf %14, %21 : vector<30x8x128xf32>
    %23 = arith.mulf %22, %22 : vector<30x8x128xf32>
    %cst_17 = arith.constant dense<0.000000e+00> : vector<8x128xf32>
    %24 = vector.multi_reduction <add>, %23, %cst_17 [0] : vector<30x8x128xf32> to vector<8x128xf32>
    %cst_18 = arith.constant dense<0.000000e+00> : vector<8xf32>
    %25 = vector.multi_reduction <add>, %24, %cst_18 [1] : vector<8x128xf32> to vector<8xf32>
    %26 = vector.shape_cast %25 : vector<8xf32> to vector<8x1xf32>
    %cst_19 = arith.constant 2.6041668E-4 : f32
    %27 = vector.broadcast %cst_19 : f32 to vector<8x1xf32>
    %28 = arith.mulf %26, %27 : vector<8x1xf32>
    %cst_20 = arith.constant 9.99999974E-6 : f32
    %29 = vector.broadcast %cst_20 : f32 to vector<8x1xf32>
    %30 = arith.addf %28, %29 : vector<8x1xf32>
    %31 = math.rsqrt %30 : vector<8x1xf32>
    %32 = vector.shape_cast %31 : vector<8x1xf32> to vector<1x8x1xf32>
    %33 = vector.broadcast %32 : vector<1x8x1xf32> to vector<30x8x128xf32>
    %34 = arith.mulf %22, %33 : vector<30x8x128xf32>
    %c0_21 = arith.constant 0 : index
    %c0_22 = arith.constant 0 : index
    %35 = vector.load %arg4[%c0_21, %c0_22] : memref<1x128xf32, #tpu.memory_space<vmem>>, vector<1x128xf32>
    %36 = vector.shape_cast %35 : vector<1x128xf32> to vector<1x1x128xf32>
    %37 = vector.broadcast %36 : vector<1x1x128xf32> to vector<30x8x128xf32>
    %38 = arith.mulf %34, %37 : vector<30x8x128xf32>
    %c0_23 = arith.constant 0 : index
    %c0_24 = arith.constant 0 : index
    %39 = vector.load %arg5[%c0_23, %c0_24] : memref<1x128xf32, #tpu.memory_space<vmem>>, vector<1x128xf32>
    %40 = vector.shape_cast %39 : vector<1x128xf32> to vector<1x1x128xf32>
    %41 = vector.broadcast %40 : vector<1x1x128xf32> to vector<30x8x128xf32>
    %42 = arith.addf %38, %41 : vector<30x8x128xf32>
    %cst_25 = arith.constant 0.000000e+00 : f32
    %43 = vector.broadcast %cst_25 : f32 to vector<30x8x128xf32>
    %44 = arith.maximumf %42, %43 : vector<30x8x128xf32>
    %c0_26 = arith.constant 0 : index
    %c0_27 = arith.constant 0 : index
    %c0_28 = arith.constant 0 : index
    %45 = vector.load %arg18[%c0_26, %c0_27, %c0_28] : memref<30x8x128xf32, #tpu.memory_space<vmem>>, vector<30x8x128xf32>
    tpu.vector_store %arg18[%c0_26, %c0_27, %c0_28], %44 {strides = array<i32>} : memref<30x8x128xf32, #tpu.memory_space<vmem>>, vector<30x8x128xf32>,
    %c0_29 = arith.constant 0 : index
    %c0_30 = arith.constant 0 : index
    %c0_31 = arith.constant 0 : index
    %46 = tpu.strided_load %arg18[%c0_29, %c0_30, %c0_31] {strides = array<i32: 2, 1, 1>} : memref<30x8x128xf32, #tpu.memory_space<vmem>>, vector<13x8x128xf32>
    %c1_32 = arith.constant 1 : index
    %c0_33 = arith.constant 0 : index
    %c0_34 = arith.constant 0 : index
    %47 = tpu.strided_load %arg18[%c1_32, %c0_33, %c0_34] {strides = array<i32: 2, 1, 1>} : memref<30x8x128xf32, #tpu.memory_space<vmem>>, vector<13x8x128xf32>
    %c2_35 = arith.constant 2 : index
    %c0_36 = arith.constant 0 : index
    %c0_37 = arith.constant 0 : index
    %48 = tpu.strided_load %arg18[%c2_35, %c0_36, %c0_37] {strides = array<i32: 2, 1, 1>} : memref<30x8x128xf32, #tpu.memory_space<vmem>>, vector<13x8x128xf32>
    %c3_38 = arith.constant 3 : index
    %c0_39 = arith.constant 0 : index
    %c0_40 = arith.constant 0 : index
    %49 = tpu.strided_load %arg18[%c3_38, %c0_39, %c0_40] {strides = array<i32: 2, 1, 1>} : memref<30x8x128xf32, #tpu.memory_space<vmem>>, vector<13x8x128xf32>
    %c4_41 = arith.constant 4 : index
    %c0_42 = arith.constant 0 : index
    %c0_43 = arith.constant 0 : index
    %50 = tpu.strided_load %arg18[%c4_41, %c0_42, %c0_43] {strides = array<i32: 2, 1, 1>} : memref<30x8x128xf32, #tpu.memory_space<vmem>>, vector<13x8x128xf32>
    %51 = tpu.concatenate %46, %47, %48, %49, %50 in 2 : vector<13x8x128xf32>, vector<13x8x128xf32>, vector<13x8x128xf32>, vector<13x8x128xf32>, vector<13x8x128xf32> -> vector<13x8x640xf32>
    %52 = vector.shape_cast %51 : vector<13x8x640xf32> to vector<104x640xf32>
    %53 = arith.truncf %52 : vector<104x640xf32> to vector<104x640xbf16>
    %c0_44 = arith.constant 0 : index
    %c0_45 = arith.constant 0 : index
    %54 = vector.load %arg6[%c0_44, %c0_45] : memref<640x128xbf16, #tpu.memory_space<vmem>>, vector<640x128xbf16>
    %cst_46 = arith.constant dense<0.000000e+00> : vector<104x128xf32>
    %55 = tpu.matmul %53, %54, %cst_46 {dimension_numbers = #tpu.dot_dimension_numbers<[1], [0], [0], [1], [0, 0, 1, 1], [], []>} : vector<104x640xbf16>, vector<640x128xbf16>, vector<104x128xf32> -> vector<104x128xf32>
    %56 = vector.shape_cast %55 : vector<104x128xf32> to vector<13x8x128xf32>
    %c0_47 = arith.constant 0 : index
    %c0_48 = arith.constant 0 : index
    %57 = vector.load %arg7[%c0_47, %c0_48] : memref<1x128xf32, #tpu.memory_space<vmem>>, vector<1x128xf32>
    %58 = vector.shape_cast %57 : vector<1x128xf32> to vector<1x1x128xf32>
    %59 = vector.broadcast %58 : vector<1x1x128xf32> to vector<13x8x128xf32>
    %60 = arith.addf %56, %59 : vector<13x8x128xf32>
    %cst_49 = arith.constant dense<0.000000e+00> : vector<8x128xf32>
    %61 = vector.multi_reduction <add>, %60, %cst_49 [0] : vector<13x8x128xf32> to vector<8x128xf32>
    %cst_50 = arith.constant dense<0.000000e+00> : vector<8xf32>
    %62 = vector.multi_reduction <add>, %61, %cst_50 [1] : vector<8x128xf32> to vector<8xf32>
    %63 = vector.shape_cast %62 : vector<8xf32> to vector<8x1xf32>
    %cst_51 = arith.constant 6.00961561E-4 : f32
    %64 = vector.broadcast %cst_51 : f32 to vector<8x1xf32>
    %65 = arith.mulf %63, %64 : vector<8x1xf32>
    %66 = vector.shape_cast %65 : vector<8x1xf32> to vector<1x8x1xf32>
    %67 = vector.broadcast %66 : vector<1x8x1xf32> to vector<13x8x128xf32>
    %68 = arith.subf %60, %67 : vector<13x8x128xf32>
    %69 = arith.mulf %68, %68 : vector<13x8x128xf32>
    %cst_52 = arith.constant dense<0.000000e+00> : vector<8x128xf32>
    %70 = vector.multi_reduction <add>, %69, %cst_52 [0] : vector<13x8x128xf32> to vector<8x128xf32>
    %cst_53 = arith.constant dense<0.000000e+00> : vector<8xf32>
    %71 = vector.multi_reduction <add>, %70, %cst_53 [1] : vector<8x128xf32> to vector<8xf32>
    %72 = vector.shape_cast %71 : vector<8xf32> to vector<8x1xf32>
    %cst_54 = arith.constant 6.00961561E-4 : f32
    %73 = vector.broadcast %cst_54 : f32 to vector<8x1xf32>
    %74 = arith.mulf %72, %73 : vector<8x1xf32>
    %cst_55 = arith.constant 9.99999974E-6 : f32
    %75 = vector.broadcast %cst_55 : f32 to vector<8x1xf32>
    %76 = arith.addf %74, %75 : vector<8x1xf32>
    %77 = math.rsqrt %76 : vector<8x1xf32>
    %78 = vector.shape_cast %77 : vector<8x1xf32> to vector<1x8x1xf32>
    %79 = vector.broadcast %78 : vector<1x8x1xf32> to vector<13x8x128xf32>
    %80 = arith.mulf %68, %79 : vector<13x8x128xf32>
    %c0_56 = arith.constant 0 : index
    %c0_57 = arith.constant 0 : index
    %81 = vector.load %arg8[%c0_56, %c0_57] : memref<1x128xf32, #tpu.memory_space<vmem>>, vector<1x128xf32>
    %82 = vector.shape_cast %81 : vector<1x128xf32> to vector<1x1x128xf32>
    %83 = vector.broadcast %82 : vector<1x1x128xf32> to vector<13x8x128xf32>
    %84 = arith.mulf %80, %83 : vector<13x8x128xf32>
    %c0_58 = arith.constant 0 : index
    %c0_59 = arith.constant 0 : index
    %85 = vector.load %arg9[%c0_58, %c0_59] : memref<1x128xf32, #tpu.memory_space<vmem>>, vector<1x128xf32>
    %86 = vector.shape_cast %85 : vector<1x128xf32> to vector<1x1x128xf32>
    %87 = vector.broadcast %86 : vector<1x1x128xf32> to vector<13x8x128xf32>
    %88 = arith.addf %84, %87 : vector<13x8x128xf32>
    %cst_60 = arith.constant 0.000000e+00 : f32
    %89 = vector.broadcast %cst_60 : f32 to vector<13x8x128xf32>
    %90 = arith.maximumf %88, %89 : vector<13x8x128xf32>
    %c0_61 = arith.constant 0 : index
    %c0_62 = arith.constant 0 : index
    %c0_63 = arith.constant 0 : index
    %91 = vector.load %arg19[%c0_61, %c0_62, %c0_63] : memref<13x8x128xf32, #tpu.memory_space<vmem>>, vector<13x8x128xf32>
    tpu.vector_store %arg19[%c0_61, %c0_62, %c0_63], %90 {strides = array<i32>} : memref<13x8x128xf32, #tpu.memory_space<vmem>>, vector<13x8x128xf32>,
    %c0_64 = arith.constant 0 : index
    %c0_65 = arith.constant 0 : index
    %c0_66 = arith.constant 0 : index
    %92 = tpu.strided_load %arg19[%c0_64, %c0_65, %c0_66] {strides = array<i32: 2, 1, 1>} : memref<13x8x128xf32, #tpu.memory_space<vmem>>, vector<5x8x128xf32>
    %c1_67 = arith.constant 1 : index
    %c0_68 = arith.constant 0 : index
    %c0_69 = arith.constant 0 : index
    %93 = tpu.strided_load %arg19[%c1_67, %c0_68, %c0_69] {strides = array<i32: 2, 1, 1>} : memref<13x8x128xf32, #tpu.memory_space<vmem>>, vector<5x8x128xf32>
    %c2_70 = arith.constant 2 : index
    %c0_71 = arith.constant 0 : index
    %c0_72 = arith.constant 0 : index
    %94 = tpu.strided_load %arg19[%c2_70, %c0_71, %c0_72] {strides = array<i32: 2, 1, 1>} : memref<13x8x128xf32, #tpu.memory_space<vmem>>, vector<5x8x128xf32>
    %c3_73 = arith.constant 3 : index
    %c0_74 = arith.constant 0 : index
    %c0_75 = arith.constant 0 : index
    %95 = tpu.strided_load %arg19[%c3_73, %c0_74, %c0_75] {strides = array<i32: 2, 1, 1>} : memref<13x8x128xf32, #tpu.memory_space<vmem>>, vector<5x8x128xf32>
    %c4_76 = arith.constant 4 : index
    %c0_77 = arith.constant 0 : index
    %c0_78 = arith.constant 0 : index
    %96 = tpu.strided_load %arg19[%c4_76, %c0_77, %c0_78] {strides = array<i32: 2, 1, 1>} : memref<13x8x128xf32, #tpu.memory_space<vmem>>, vector<5x8x128xf32>
    %97 = tpu.concatenate %92, %93, %94, %95, %96 in 2 : vector<5x8x128xf32>, vector<5x8x128xf32>, vector<5x8x128xf32>, vector<5x8x128xf32>, vector<5x8x128xf32> -> vector<5x8x640xf32>
    %98 = vector.shape_cast %97 : vector<5x8x640xf32> to vector<40x640xf32>
    %99 = arith.truncf %98 : vector<40x640xf32> to vector<40x640xbf16>
    %c0_79 = arith.constant 0 : index
    %c0_80 = arith.constant 0 : index
    %100 = vector.load %arg10[%c0_79, %c0_80] : memref<640x128xbf16, #tpu.memory_space<vmem>>, vector<640x128xbf16>
    %cst_81 = arith.constant dense<0.000000e+00> : vector<40x128xf32>
    %101 = tpu.matmul %99, %100, %cst_81 {dimension_numbers = #tpu.dot_dimension_numbers<[1], [0], [0], [1], [0, 0, 1, 1], [], []>} : vector<40x640xbf16>, vector<640x128xbf16>, vector<40x128xf32> -> vector<40x128xf32>
    %102 = vector.shape_cast %101 : vector<40x128xf32> to vector<5x8x128xf32>
    %c0_82 = arith.constant 0 : index
    %c0_83 = arith.constant 0 : index
    %103 = vector.load %arg11[%c0_82, %c0_83] : memref<1x128xf32, #tpu.memory_space<vmem>>, vector<1x128xf32>
    %104 = vector.shape_cast %103 : vector<1x128xf32> to vector<1x1x128xf32>
    %105 = vector.broadcast %104 : vector<1x1x128xf32> to vector<5x8x128xf32>
    %106 = arith.addf %102, %105 : vector<5x8x128xf32>
    %cst_84 = arith.constant dense<0.000000e+00> : vector<8x128xf32>
    %107 = vector.multi_reduction <add>, %106, %cst_84 [0] : vector<5x8x128xf32> to vector<8x128xf32>
    %cst_85 = arith.constant dense<0.000000e+00> : vector<8xf32>
    %108 = vector.multi_reduction <add>, %107, %cst_85 [1] : vector<8x128xf32> to vector<8xf32>
    %109 = vector.shape_cast %108 : vector<8xf32> to vector<8x1xf32>
    %cst_86 = arith.constant 1.562500e-03 : f32
    %110 = vector.broadcast %cst_86 : f32 to vector<8x1xf32>
    %111 = arith.mulf %109, %110 : vector<8x1xf32>
    %112 = vector.shape_cast %111 : vector<8x1xf32> to vector<1x8x1xf32>
    %113 = vector.broadcast %112 : vector<1x8x1xf32> to vector<5x8x128xf32>
    %114 = arith.subf %106, %113 : vector<5x8x128xf32>
    %115 = arith.mulf %114, %114 : vector<5x8x128xf32>
    %cst_87 = arith.constant dense<0.000000e+00> : vector<8x128xf32>
    %116 = vector.multi_reduction <add>, %115, %cst_87 [0] : vector<5x8x128xf32> to vector<8x128xf32>
    %cst_88 = arith.constant dense<0.000000e+00> : vector<8xf32>
    %117 = vector.multi_reduction <add>, %116, %cst_88 [1] : vector<8x128xf32> to vector<8xf32>
    %118 = vector.shape_cast %117 : vector<8xf32> to vector<8x1xf32>
    %cst_89 = arith.constant 1.562500e-03 : f32
    %119 = vector.broadcast %cst_89 : f32 to vector<8x1xf32>
    %120 = arith.mulf %118, %119 : vector<8x1xf32>
    %cst_90 = arith.constant 9.99999974E-6 : f32
    %121 = vector.broadcast %cst_90 : f32 to vector<8x1xf32>
    %122 = arith.addf %120, %121 : vector<8x1xf32>
    %123 = math.rsqrt %122 : vector<8x1xf32>
    %124 = vector.shape_cast %123 : vector<8x1xf32> to vector<1x8x1xf32>
    %125 = vector.broadcast %124 : vector<1x8x1xf32> to vector<5x8x128xf32>
    %126 = arith.mulf %114, %125 : vector<5x8x128xf32>
    %c0_91 = arith.constant 0 : index
    %c0_92 = arith.constant 0 : index
    %127 = vector.load %arg12[%c0_91, %c0_92] : memref<1x128xf32, #tpu.memory_space<vmem>>, vector<1x128xf32>
    %128 = vector.shape_cast %127 : vector<1x128xf32> to vector<1x1x128xf32>
    %129 = vector.broadcast %128 : vector<1x1x128xf32> to vector<5x8x128xf32>
    %130 = arith.mulf %126, %129 : vector<5x8x128xf32>
    %c0_93 = arith.constant 0 : index
    %c0_94 = arith.constant 0 : index
    %131 = vector.load %arg13[%c0_93, %c0_94] : memref<1x128xf32, #tpu.memory_space<vmem>>, vector<1x128xf32>
    %132 = vector.shape_cast %131 : vector<1x128xf32> to vector<1x1x128xf32>
    %133 = vector.broadcast %132 : vector<1x1x128xf32> to vector<5x8x128xf32>
    %134 = arith.addf %130, %133 : vector<5x8x128xf32>
    %cst_95 = arith.constant 0.000000e+00 : f32
    %135 = vector.broadcast %cst_95 : f32 to vector<5x8x128xf32>
    %136 = arith.maximumf %134, %135 : vector<5x8x128xf32>
    %cst_96 = arith.constant dense<0.000000e+00> : vector<8x128xf32>
    %137 = vector.multi_reduction <add>, %136, %cst_96 [0] : vector<5x8x128xf32> to vector<8x128xf32>
    %cst_97 = arith.constant 5.000000e+00 : f32
    %138 = vector.broadcast %cst_97 : f32 to vector<8x128xf32>
    %139 = arith.divf %137, %138 : vector<8x128xf32>
    %140 = arith.truncf %139 : vector<8x128xf32> to vector<8x128xbf16>
    %c0_98 = arith.constant 0 : index
    %c0_99 = arith.constant 0 : index
    %141 = vector.load %arg14[%c0_98, %c0_99] : memref<128x256xbf16, #tpu.memory_space<vmem>>, vector<128x256xbf16>
    %cst_100 = arith.constant dense<0.000000e+00> : vector<8x256xf32>
    %142 = tpu.matmul %140, %141, %cst_100 {dimension_numbers = #tpu.dot_dimension_numbers<[1], [0], [0], [1], [0, 0, 1, 1], [], []>} : vector<8x128xbf16>, vector<128x256xbf16>, vector<8x256xf32> -> vector<8x256xf32>
    %c0_101 = arith.constant 0 : index
    %c0_102 = arith.constant 0 : index
    %143 = vector.load %arg15[%c0_101, %c0_102] : memref<1x256xf32, #tpu.memory_space<vmem>>, vector<1x256xf32>
    %144 = vector.broadcast %143 : vector<1x256xf32> to vector<8x256xf32>
    %145 = arith.addf %142, %144 : vector<8x256xf32>
    %146 = vector.extract_strided_slice %145 {offsets = [0, 0], sizes = [8, 128], strides = [1, 1]} : vector<8x256xf32> to vector<8x128xf32>
    %147 = vector.extract_strided_slice %145 {offsets = [0, 128], sizes = [8, 128], strides = [1, 1]} : vector<8x256xf32> to vector<8x128xf32>
    %c0_103 = arith.constant 0 : index
    %c0_104 = arith.constant 0 : index
    %148 = vector.load %arg16[%c0_103, %c0_104] : memref<8x128xf32, #tpu.memory_space<vmem>>, vector<8x128xf32>
    %149 = math.exp %147 : vector<8x128xf32>
    %150 = arith.mulf %148, %149 : vector<8x128xf32>
    %151 = arith.addf %146, %150 : vector<8x128xf32>
    %152 = tpu.concatenate %146, %147, %151 in 1 : vector<8x128xf32>, vector<8x128xf32>, vector<8x128xf32> -> vector<8x384xf32>
    %c0_105 = arith.constant 0 : index
    %c0_106 = arith.constant 0 : index
    %153 = vector.load %arg17[%c0_105, %c0_106] : memref<8x384xf32, #tpu.memory_space<vmem>>, vector<8x384xf32>
    tpu.vector_store %arg17[%c0_105, %c0_106], %152 {strides = array<i32>} : memref<8x384xf32, #tpu.memory_space<vmem>>, vector<8x384xf32>,
    return
  }
  func.func @transform_0(%arg0: i32) -> (i32, i32, i32) {
    %c0_i32 = arith.constant 0 : i32
    %c0_i32_0 = arith.constant 0 : i32
    %c0_i32_1 = arith.constant 0 : i32
    return %c0_i32, %arg0, %c0_i32_0 : i32, i32, i32
  }
  func.func @transform_1(%arg0: i32) -> (i32, i32) {
    %c0_i32 = arith.constant 0 : i32
    %c0_i32_0 = arith.constant 0 : i32
    %c0_i32_1 = arith.constant 0 : i32
    return %c0_i32, %c0_i32_0 : i32, i32
  }
  func.func @transform_2(%arg0: i32) -> (i32, i32) {
    %c0_i32 = arith.constant 0 : i32
    %c0_i32_0 = arith.constant 0 : i32
    %c0_i32_1 = arith.constant 0 : i32
    return %c0_i32, %c0_i32_0 : i32, i32
  }
  func.func @transform_3(%arg0: i32) -> (i32, i32) {
    %c0_i32 = arith.constant 0 : i32
    %c0_i32_0 = arith.constant 0 : i32
    %c0_i32_1 = arith.constant 0 : i32
    return %c0_i32, %c0_i32_0 : i32, i32
  }
  func.func @transform_4(%arg0: i32) -> (i32, i32) {
    %c0_i32 = arith.constant 0 : i32
    %c0_i32_0 = arith.constant 0 : i32
    %c0_i32_1 = arith.constant 0 : i32
    return %c0_i32, %c0_i32_0 : i32, i32
  }
  func.func @transform_5(%arg0: i32) -> (i32, i32) {
    %c0_i32 = arith.constant 0 : i32
    %c0_i32_0 = arith.constant 0 : i32
    %c0_i32_1 = arith.constant 0 : i32
    return %c0_i32, %c0_i32_0 : i32, i32
  }
  func.func @transform_6(%arg0: i32) -> (i32, i32) {
    %c0_i32 = arith.constant 0 : i32
    %c0_i32_0 = arith.constant 0 : i32
    %c0_i32_1 = arith.constant 0 : i32
    return %c0_i32, %c0_i32_0 : i32, i32
  }
  func.func @transform_7(%arg0: i32) -> (i32, i32) {
    %c0_i32 = arith.constant 0 : i32
    %c0_i32_0 = arith.constant 0 : i32
    %c0_i32_1 = arith.constant 0 : i32
    return %c0_i32, %c0_i32_0 : i32, i32
  }
  func.func @transform_8(%arg0: i32) -> (i32, i32) {
    %c0_i32 = arith.constant 0 : i32
    %c0_i32_0 = arith.constant 0 : i32
    %c0_i32_1 = arith.constant 0 : i32
    return %c0_i32, %c0_i32_0 : i32, i32
  }
  func.func @transform_9(%arg0: i32) -> (i32, i32) {
    %c0_i32 = arith.constant 0 : i32
    %c0_i32_0 = arith.constant 0 : i32
    %c0_i32_1 = arith.constant 0 : i32
    return %c0_i32, %c0_i32_0 : i32, i32
  }
  func.func @transform_10(%arg0: i32) -> (i32, i32) {
    %c0_i32 = arith.constant 0 : i32
    %c0_i32_0 = arith.constant 0 : i32
    %c0_i32_1 = arith.constant 0 : i32
    return %c0_i32, %c0_i32_0 : i32, i32
  }
  func.func @transform_11(%arg0: i32) -> (i32, i32) {
    %c0_i32 = arith.constant 0 : i32
    %c0_i32_0 = arith.constant 0 : i32
    %c0_i32_1 = arith.constant 0 : i32
    return %c0_i32, %c0_i32_0 : i32, i32
  }
  func.func @transform_12(%arg0: i32) -> (i32, i32) {
    %c0_i32 = arith.constant 0 : i32
    %c0_i32_0 = arith.constant 0 : i32
    %c0_i32_1 = arith.constant 0 : i32
    return %c0_i32, %c0_i32_0 : i32, i32
  }
  func.func @transform_13(%arg0: i32) -> (i32, i32) {
    %c0_i32 = arith.constant 0 : i32
    %c0_i32_0 = arith.constant 0 : i32
    %c0_i32_1 = arith.constant 0 : i32
    return %c0_i32, %c0_i32_0 : i32, i32
  }
  func.func @transform_14(%arg0: i32) -> (i32, i32) {
    %c0_i32 = arith.constant 0 : i32
    %c0_i32_0 = arith.constant 0 : i32
    %c0_i32_1 = arith.constant 0 : i32
    return %c0_i32, %c0_i32_0 : i32, i32
  }
  func.func @transform_15(%arg0: i32) -> (i32, i32) {
    %c0_i32 = arith.constant 0 : i32
    %c0_i32_0 = arith.constant 0 : i32
    return %arg0, %c0_i32 : i32, i32
  }
  func.func @transform_16(%arg0: i32) -> (i32, i32) {
    %c0_i32 = arith.constant 0 : i32
    %c0_i32_0 = arith.constant 0 : i32
    return %arg0, %c0_i32 : i32, i32
  }
}

</mosaic_0001>

<bundles_post_ra>
// kernel: timbre_encoder_forward.1
= control target key start
LH: loop header
LB: loop body
LE: loop exit
PB: predicated region body
PF: predicated region fallthrough
CT: control target
= control target key end

     0   :  { %s6477_s0 = inlined_call_operand.vmem [shape: f32[64,16,128], index: 0, kind: input, shape index: {}]   ;;  %s6478_s1 = inlined_call_operand.vmem [shape: bf16[640,128], index: 1, kind: input, shape index: {}]   ;;  %s6479_s2 = inlined_call_operand.vmem [shape: f32[1,128], index: 2, kind: input, shape index: {}]   ;;  %s6480_s3 = inlined_call_operand.vmem [shape: f32[1,128], index: 3, kind: input, shape index: {}]   ;;  %s6481_s4 = inlined_call_operand.vmem [shape: f32[1,128], index: 4, kind: input, shape index: {}]   ;;  %s6482_s5 = inlined_call_operand.vmem [shape: bf16[640,128], index: 5, kind: input, shape index: {}]   ;;  %s6483_s6 = inlined_call_operand.vmem [shape: f32[1,128], index: 6, kind: input, shape index: {}]   ;;  %s6484_s7 = inlined_call_operand.vmem [shape: f32[1,128], index: 7, kind: input, shape index: {}]   ;;  %s6485_s8 = inlined_call_operand.vmem [shape: f32[1,128], index: 8, kind: input, shape index: {}]   ;;  %s6486_s9 = inlined_call_operand.vmem [shape: bf16[640,128], index: 9, kind: input, shape index: {}]   ;;  %s6487_s10 = inlined_call_operand.vmem [shape: f32[1,128], index: 10, kind: input, shape index: {}]   ;;  %s6488_s11 = inlined_call_operand.vmem [shape: f32[1,128], index: 11, kind: input, shape index: {}]   ;;  %s6489_s12 = inlined_call_operand.vmem [shape: f32[1,128], index: 12, kind: input, shape index: {}]   ;;  %s6490_s13 = inlined_call_operand.vmem [shape: bf16[128,256], index: 13, kind: input, shape index: {}]   ;;  %s6491_s14 = inlined_call_operand.vmem [shape: f32[1,256], index: 14, kind: input, shape index: {}]   ;;  %s6492_s15 = inlined_call_operand.vmem [shape: f32[16,128], index: 15, kind: input, shape index: {}]   ;;  %s6493_s16 = inlined_call_operand.vmem [shape: f32[16,384], index: 16, kind: output, shape index: {}]  }
   0x1   :  { %6502 = sst [smem:[#allocation14_spill]] %s6477_s0 }
   0x2   :  { %s4658_s21 = smov 0   ;;  %s4660_s22 = smov 0  }
   0x3   :  { %s4662_s23 = smov 0  }
   0x4 LB: > { %s4675_s25 = sadd.s32 1, %s4570_s23   ;;  %s33_s27 = sadd.s32 1, %s4566_s22  ;;  %s4570_s23 = sphi %s4662_s23, %s6526_s23   ;;  %s4566_s22 = sphi %s4660_s22, %s6525_s22   ;;  %s4562_s21 = sphi %s4658_s21, %s6524_s21  }
   0x5   : > { %s30_s26 = ssub.s32 %s4570_s23, %s4675_s25  ;;  %p40_p1 = scmp.ne.s32.totalorder %s4566_s22, %s4562_s21 }
   0x6   : > { %p31_p0 = scmp.eq.s32.totalorder %s30_s26, 0  ;;  %p41_p2 = scmp.eq.s32.totalorder %s4570_s23, 0 }
   0x7   : > { %p3694_p4 = scmp.ge.s32.totalorder %s4570_s23, 2 }
   0x8   : > { %s4684_s28 = scalar_select %p31_p0, %s4566_s22, %s33_s27  }
   0x9   : > { %p42_p3 = por %p41_p2, %p40_p1  ;;  %454 = sbr.rel (%p3694_p4) target bundleno = 88 (0x58), region = 72 }
   0xa   : > { %6503 = sst [smem:[#allocation5_spill]] %s4684_s28 }
   0xe   : > { %457 = sbr.rel (!%p42_p3) target bundleno = 88 (0x58), region = 76  ;;  %s459_s29 = sand.u32 (%p42_p3), 1, %s4566_s22  }
   0xf   : > { %s3696_s30 = sshll.u32 (%p42_p3), %s4570_s23, 3  ;;  %s3695_s0 = sshll.u32 (%p42_p3), %s459_s29, 9 }
  0x10   : > { %s6504_s19 = sld [smem:[#allocation14_spill]] (%p42_p3)  ;;  %s4697_s26 = scalar_lea.vmem (%p42_p3), [#allocation4], %s3695_s0 }
  0x16   : > { %s4692_s20 = scalar_lea.vmem %s6504_s19, %s3696_s30 }
  0x17   : > { %v618_v0 = vld [vmem:[%s4692_s20] sm:$0xff]  ;;  %v620_v1 = vld [vmem:[%s4692_s20 + $0x10] sm:$0xff] }
  0x18   : > { %v622_v2 = vld [vmem:[%s4692_s20 + $0x20] sm:$0xff]  ;;  %619 = vst [vmem:[%s4697_s26] sm:$0xff] %v618_v0  ;;  %v624_v3 = vld [vmem:[%s4692_s20 + $0x30] sm:$0xff] }
  0x19   : > { %621 = vst [vmem:[%s4697_s26 + $0x8] sm:$0xff] %v620_v1  ;;  %v626_v4 = vld [vmem:[%s4692_s20 + $0x40] sm:$0xff]  ;;  %v628_v5 = vld [vmem:[%s4692_s20 + $0x50] sm:$0xff] }
  0x1a   : > { %623 = vst [vmem:[%s4697_s26 + $0x10] sm:$0xff] %v622_v2  ;;  %v630_v6 = vld [vmem:[%s4692_s20 + $0x60] sm:$0xff]  ;;  %v632_v7 = vld [vmem:[%s4692_s20 + $0x70] sm:$0xff] }
  0x1b   : > { %625 = vst [vmem:[%s4697_s26 + $0x18] sm:$0xff] %v624_v3  ;;  %v634_v8 = vld [vmem:[%s4692_s20 + $0x80] sm:$0xff]  ;;  %v636_v9 = vld [vmem:[%s4692_s20 + $0x90] sm:$0xff] }
  0x1c   : > { %627 = vst [vmem:[%s4697_s26 + $0x20] sm:$0xff] %v626_v4  ;;  %v638_v10 = vld [vmem:[%s4692_s20 + $0xa0] sm:$0xff]  ;;  %v640_v11 = vld [vmem:[%s4692_s20 + $0xb0] sm:$0xff] }
  0x1d   : > { %629 = vst [vmem:[%s4697_s26 + $0x28] sm:$0xff] %v628_v5  ;;  %v642_v12 = vld [vmem:[%s4692_s20 + $0xc0] sm:$0xff]  ;;  %v644_v13 = vld [vmem:[%s4692_s20 + $0xd0] sm:$0xff] }
  0x1e   : > { %631 = vst [vmem:[%s4697_s26 + $0x30] sm:$0xff] %v630_v6  ;;  %v646_v14 = vld [vmem:[%s4692_s20 + $0xe0] sm:$0xff]  ;;  %v648_v15 = vld [vmem:[%s4692_s20 + $0xf0] sm:$0xff] }
  0x1f   : > { %633 = vst [vmem:[%s4697_s26 + $0x38] sm:$0xff] %v632_v7  ;;  %v650_v16 = vld [vmem:[%s4692_s20 + $0x100] sm:$0xff]  ;;  %v652_v17 = vld [vmem:[%s4692_s20 + $0x110] sm:$0xff] }
  0x20   : > { %635 = vst [vmem:[%s4697_s26 + $0x40] sm:$0xff] %v634_v8  ;;  %v654_v18 = vld [vmem:[%s4692_s20 + $0x120] sm:$0xff]  ;;  %v656_v19 = vld [vmem:[%s4692_s20 + $0x130] sm:$0xff] }
  0x21   : > { %637 = vst [vmem:[%s4697_s26 + $0x48] sm:$0xff] %v636_v9  ;;  %v658_v20 = vld [vmem:[%s4692_s20 + $0x140] sm:$0xff]  ;;  %v660_v21 = vld [vmem:[%s4692_s20 + $0x150] sm:$0xff] }
  0x22   : > { %639 = vst [vmem:[%s4697_s26 + $0x50] sm:$0xff] %v638_v10  ;;  %v662_v22 = vld [vmem:[%s4692_s20 + $0x160] sm:$0xff]  ;;  %v664_v23 = vld [vmem:[%s4692_s20 + $0x170] sm:$0xff] }
  0x23   : > { %641 = vst [vmem:[%s4697_s26 + $0x58] sm:$0xff] %v640_v11  ;;  %v666_v24 = vld [vmem:[%s4692_s20 + $0x180] sm:$0xff]  ;;  %v668_v25 = vld [vmem:[%s4692_s20 + $0x190] sm:$0xff] }
  0x24   : > { %643 = vst [vmem:[%s4697_s26 + $0x60] sm:$0xff] %v642_v12  ;;  %v670_v26 = vld [vmem:[%s4692_s20 + $0x1a0] sm:$0xff]  ;;  %v672_v27 = vld [vmem:[%s4692_s20 + $0x1b0] sm:$0xff] }
  0x25   : > { %645 = vst [vmem:[%s4697_s26 + $0x68] sm:$0xff] %v644_v13  ;;  %v674_v28 = vld [vmem:[%s4692_s20 + $0x1c0] sm:$0xff]  ;;  %v676_v29 = vld [vmem:[%s4692_s20 + $0x1d0] sm:$0xff] }
  0x26   : > { %647 = vst [vmem:[%s4697_s26 + $0x70] sm:$0xff] %v646_v14  ;;  %v678_v30 = vld [vmem:[%s4692_s20 + $0x1e0] sm:$0xff]  ;;  %v680_v31 = vld [vmem:[%s4692_s20 + $0x1f0] sm:$0xff] }
  0x27   : > { %649 = vst [vmem:[%s4697_s26 + $0x78] sm:$0xff] %v648_v15  ;;  %v682_v32 = vld [vmem:[%s4692_s20 + $0x200] sm:$0xff]  ;;  %v684_v33 = vld [vmem:[%s4692_s20 + $0x210] sm:$0xff] }
  0x28   : > { %651 = vst [vmem:[%s4697_s26 + $0x80] sm:$0xff] %v650_v16  ;;  %v686_v34 = vld [vmem:[%s4692_s20 + $0x220] sm:$0xff]  ;;  %v688_v35 = vld [vmem:[%s4692_s20 + $0x230] sm:$0xff] }
  0x29   : > { %653 = vst [vmem:[%s4697_s26 + $0x88] sm:$0xff] %v652_v17  ;;  %v690_v36 = vld [vmem:[%s4692_s20 + $0x240] sm:$0xff]  ;;  %v692_v37 = vld [vmem:[%s4692_s20 + $0x250] sm:$0xff] }
  0x2a   : > { %655 = vst [vmem:[%s4697_s26 + $0x90] sm:$0xff] %v654_v18  ;;  %v694_v38 = vld [vmem:[%s4692_s20 + $0x260] sm:$0xff]  ;;  %v696_v39 = vld [vmem:[%s4692_s20 + $0x270] sm:$0xff] }
  0x2b   : > { %657 = vst [vmem:[%s4697_s26 + $0x98] sm:$0xff] %v656_v19  ;;  %v698_v40 = vld [vmem:[%s4692_s20 + $0x280] sm:$0xff]  ;;  %v700_v41 = vld [vmem:[%s4692_s20 + $0x290] sm:$0xff] }
  0x2c   : > { %659 = vst [vmem:[%s4697_s26 + $0xa0] sm:$0xff] %v658_v20  ;;  %v702_v42 = vld [vmem:[%s4692_s20 + $0x2a0] sm:$0xff]  ;;  %v704_v43 = vld [vmem:[%s4692_s20 + $0x2b0] sm:$0xff] }
  0x2d   : > { %661 = vst [vmem:[%s4697_s26 + $0xa8] sm:$0xff] %v660_v21  ;;  %v706_v44 = vld [vmem:[%s4692_s20 + $0x2c0] sm:$0xff]  ;;  %v708_v45 = vld [vmem:[%s4692_s20 + $0x2d0] sm:$0xff] }
  0x2e   : > { %663 = vst [vmem:[%s4697_s26 + $0xb0] sm:$0xff] %v662_v22  ;;  %v710_v46 = vld [vmem:[%s4692_s20 + $0x2e0] sm:$0xff]  ;;  %v712_v47 = vld [vmem:[%s4692_s20 + $0x2f0] sm:$0xff] }
  0x2f   : > { %665 = vst [vmem:[%s4697_s26 + $0xb8] sm:$0xff] %v664_v23  ;;  %v714_v48 = vld [vmem:[%s4692_s20 + $0x300] sm:$0xff]  ;;  %v716_v49 = vld [vmem:[%s4692_s20 + $0x310] sm:$0xff] }
  0x30   : > { %667 = vst [vmem:[%s4697_s26 + $0xc0] sm:$0xff] %v666_v24  ;;  %v718_v50 = vld [vmem:[%s4692_s20 + $0x320] sm:$0xff]  ;;  %v720_v51 = vld [vmem:[%s4692_s20 + $0x330] sm:$0xff] }
  0x31   : > { %669 = vst [vmem:[%s4697_s26 + $0xc8] sm:$0xff] %v668_v25  ;;  %v722_v52 = vld [vmem:[%s4692_s20 + $0x340] sm:$0xff]  ;;  %v724_v53 = vld [vmem:[%s4692_s20 + $0x350] sm:$0xff] }
  0x32   : > { %671 = vst [vmem:[%s4697_s26 + $0xd0] sm:$0xff] %v670_v26  ;;  %v726_v54 = vld [vmem:[%s4692_s20 + $0x360] sm:$0xff]  ;;  %v728_v55 = vld [vmem:[%s4692_s20 + $0x370] sm:$0xff] }
  0x33   : > { %673 = vst [vmem:[%s4697_s26 + $0xd8] sm:$0xff] %v672_v27  ;;  %v730_v56 = vld [vmem:[%s4692_s20 + $0x380] sm:$0xff]  ;;  %v732_v57 = vld [vmem:[%s4692_s20 + $0x390] sm:$0xff] }
  0x34   : > { %675 = vst [vmem:[%s4697_s26 + $0xe0] sm:$0xff] %v674_v28  ;;  %v734_v58 = vld [vmem:[%s4692_s20 + $0x3a0] sm:$0xff]  ;;  %v736_v59 = vld [vmem:[%s4692_s20 + $0x3b0] sm:$0xff] }
  0x35   : > { %677 = vst [vmem:[%s4697_s26 + $0xe8] sm:$0xff] %v676_v29  ;;  %v738_v60 = vld [vmem:[%s4692_s20 + $0x3c0] sm:$0xff]  ;;  %v740_v61 = vld [vmem:[%s4692_s20 + $0x3d0] sm:$0xff] }
  0x36   : > { %679 = vst [vmem:[%s4697_s26 + $0xf0] sm:$0xff] %v678_v30  ;;  %v742_v62 = vld [vmem:[%s4692_s20 + $0x3e0] sm:$0xff]  ;;  %v744_v63 = vld [vmem:[%s4692_s20 + $0x3f0] sm:$0xff] }
  0x37   : > { %681 = vst [vmem:[%s4697_s26 + $0xf8] sm:$0xff] %v680_v31 }
  0x38   : > { %683 = vst [vmem:[%s4697_s26 + $0x100] sm:$0xff] %v682_v32 }
  0x39   : > { %685 = vst [vmem:[%s4697_s26 + $0x108] sm:$0xff] %v684_v33 }
  0x3a   : > { %687 = vst [vmem:[%s4697_s26 + $0x110] sm:$0xff] %v686_v34 }
  0x3b   : > { %689 = vst [vmem:[%s4697_s26 + $0x118] sm:$0xff] %v688_v35 }
  0x3c   : > { %691 = vst [vmem:[%s4697_s26 + $0x120] sm:$0xff] %v690_v36 }
  0x3d   : > { %693 = vst [vmem:[%s4697_s26 + $0x128] sm:$0xff] %v692_v37 }
  0x3e   : > { %695 = vst [vmem:[%s4697_s26 + $0x130] sm:$0xff] %v694_v38 }
  0x3f   : > { %697 = vst [vmem:[%s4697_s26 + $0x138] sm:$0xff] %v696_v39 }
  0x40   : > { %699 = vst [vmem:[%s4697_s26 + $0x140] sm:$0xff] %v698_v40 }
  0x41   : > { %701 = vst [vmem:[%s4697_s26 + $0x148] sm:$0xff] %v700_v41 }
  0x42   : > { %703 = vst [vmem:[%s4697_s26 + $0x150] sm:$0xff] %v702_v42 }
  0x43   : > { %705 = vst [vmem:[%s4697_s26 + $0x158] sm:$0xff] %v704_v43 }
  0x44   : > { %707 = vst [vmem:[%s4697_s26 + $0x160] sm:$0xff] %v706_v44 }
  0x45   : > { %709 = vst [vmem:[%s4697_s26 + $0x168] sm:$0xff] %v708_v45 }
  0x46   : > { %711 = vst [vmem:[%s4697_s26 + $0x170] sm:$0xff] %v710_v46 }
  0x47   : > { %713 = vst [vmem:[%s4697_s26 + $0x178] sm:$0xff] %v712_v47 }
  0x48   : > { %715 = vst [vmem:[%s4697_s26 + $0x180] sm:$0xff] %v714_v48 }
  0x49   : > { %717 = vst [vmem:[%s4697_s26 + $0x188] sm:$0xff] %v716_v49 }
  0x4a   : > { %719 = vst [vmem:[%s4697_s26 + $0x190] sm:$0xff] %v718_v50 }
  0x4b   : > { %721 = vst [vmem:[%s4697_s26 + $0x198] sm:$0xff] %v720_v51 }
  0x4c   : > { %723 = vst [vmem:[%s4697_s26 + $0x1a0] sm:$0xff] %v722_v52 }
  0x4d   : > { %725 = vst [vmem:[%s4697_s26 + $0x1a8] sm:$0xff] %v724_v53 }
  0x4e   : > { %727 = vst [vmem:[%s4697_s26 + $0x1b0] sm:$0xff] %v726_v54 }
  0x4f   : > { %729 = vst [vmem:[%s4697_s26 + $0x1b8] sm:$0xff] %v728_v55 }
  0x50   : > { %731 = vst [vmem:[%s4697_s26 + $0x1c0] sm:$0xff] %v730_v56 }
  0x51   : > { %733 = vst [vmem:[%s4697_s26 + $0x1c8] sm:$0xff] %v732_v57 }
  0x52   : > { %735 = vst [vmem:[%s4697_s26 + $0x1d0] sm:$0xff] %v734_v58 }
  0x53   : > { %737 = vst [vmem:[%s4697_s26 + $0x1d8] sm:$0xff] %v736_v59 }
  0x54   : > { %739 = vst [vmem:[%s4697_s26 + $0x1e0] sm:$0xff] %v738_v60 }
  0x55   : > { %741 = vst [vmem:[%s4697_s26 + $0x1e8] sm:$0xff] %v740_v61 }
  0x56   : > { %743 = vst [vmem:[%s4697_s26 + $0x1f0] sm:$0xff] %v742_v62 }
  0x57   : > { %745 = vst [vmem:[%s4697_s26 + $0x1f8] sm:$0xff] %v744_v63 }
  0x58 PF: > { %p3697_p5 = scmp.ge.s32.totalorder %s4570_s23, 1  ;;  %p757_p6 = scmp.lt.s32.totalorder %s4570_s23, 3 }
  0x5a   : > { %p758_p7 = pnand %p3697_p5, %p757_p6 }
  0x5c   : > { %761 = sbr.rel (%p758_p7) target bundleno = 2407 (0x967), region = 118 }
  0x61   : > { %v4374_v0 = vld [vmem:[%s6478_s1 + $0x38] sm:$0xff]  ;;  %v4373_v4 = vld [vmem:[%s6478_s1 + $0x30] sm:$0xff]  ;;  %v4372_v8 = vld [vmem:[%s6478_s1 + $0x28] sm:$0xff]  ;;  %s764_s27 = sand.u32 1, %s4562_s21   ;;  %s6521_s29 = sadd.s32 4294967295, %s4570_s23  }
  0x62   : > { %v4382_v1 = vld [vmem:[%s6478_s1 + $0x78] sm:$0xff]  ;;  %1375 = vmatpush.bf16.msra.mxu0 %v4374_v0  ;;  %v4381_v5 = vld [vmem:[%s6478_s1 + $0x70] sm:$0xff]  ;;  %v4380_v9 = vld [vmem:[%s6478_s1 + $0x68] sm:$0xff]  ;;  %s3698_s21 = sshll.u32 %s764_s27, 9  ;;  %p817_p8 = scmp.lt.s32.totalorder %s6521_s29, 1 }
  0x63   : > { %v4390_v2 = vld [vmem:[%s6478_s1 + $0xb8] sm:$0xff]  ;;  %1459 = vmatpush.bf16.msra.mxu1 %v4382_v1  ;;  %v4389_v6 = vld [vmem:[%s6478_s1 + $0xb0] sm:$0xff]  ;;  %v4388_v10 = vld [vmem:[%s6478_s1 + $0xa8] sm:$0xff]  ;;  %s4920_s28 = scalar_lea.vmem [#allocation4], %s3698_s21  ;;  %s6522_s30 = smov %s6521_s29 }
  0x64   : > { %v4398_v3 = vld [vmem:[%s6478_s1 + $0xf8] sm:$0xff]  ;;  %1543 = vmatpush.bf16.msra.mxu2 %v4390_v2  ;;  %v4397_v7 = vld [vmem:[%s6478_s1 + $0xf0] sm:$0xff]  ;;  %v4396_v11 = vld [vmem:[%s6478_s1 + $0xe8] sm:$0xff]  ;;  %s6528_s30 = smov (!%p817_p8, %s6522_s30), 1 }
  0x65   : > { %1627 = vmatpush.bf16.msra.mxu3 %v4398_v3  ;;  %v4371_v12 = vld [vmem:[%s6478_s1 + $0x20] sm:$0xff]  ;;  %v4370_v16 = vld [vmem:[%s6478_s1 + $0x18] sm:$0xff]  ;;  %v4369_v20 = vld [vmem:[%s6478_s1 + $0x10] sm:$0xff]  ;;  %s4503_s18 = smul.u32 24, %s6528_s30  ;;  %s3699_s27 = sshll.u32 %s6528_s30, 3 }
  0x66   : > { %1376 = vmatpush.bf16.msra.mxu0 %v4373_v4  ;;  %v4379_v13 = vld [vmem:[%s6478_s1 + $0x60] sm:$0xff]  ;;  %v4378_v17 = vld [vmem:[%s6478_s1 + $0x58] sm:$0xff]  ;;  %v4377_v21 = vld [vmem:[%s6478_s1 + $0x50] sm:$0xff] }
  0x67   : > { %1460 = vmatpush.bf16.msra.mxu1 %v4381_v5  ;;  %v4387_v14 = vld [vmem:[%s6478_s1 + $0xa0] sm:$0xff]  ;;  %v4386_v18 = vld [vmem:[%s6478_s1 + $0x98] sm:$0xff]  ;;  %v4385_v22 = vld [vmem:[%s6478_s1 + $0x90] sm:$0xff]  ;;  %s825_s20 = scalar_lea.vmem %s6493_s16, %s4503_s18 }
  0x68   : > { %1544 = vmatpush.bf16.msra.mxu2 %v4389_v6  ;;  %v4395_v15 = vld [vmem:[%s6478_s1 + $0xe0] sm:$0xff]  ;;  %v4394_v19 = vld [vmem:[%s6478_s1 + $0xd8] sm:$0xff]  ;;  %v4393_v23 = vld [vmem:[%s6478_s1 + $0xd0] sm:$0xff] }
  0x69   : > { %1628 = vmatpush.bf16.msra.mxu3 %v4397_v7  ;;  %v4368_v24 = vld [vmem:[%s6478_s1 + $0x8] sm:$0xff]  ;;  %v4367_v28 = vld [vmem:[%s6478_s1] sm:$0xff]  ;;  %v827_v32 = vld [vmem:[%s4920_s28 + $0x10] sm:$0xff] }
  0x6a   : > { %1377 = vmatpush.bf16.msra.mxu0 %v4372_v8  ;;  %v4376_v25 = vld [vmem:[%s6478_s1 + $0x48] sm:$0xff]  ;;  %v4375_v29 = vld [vmem:[%s6478_s1 + $0x40] sm:$0xff]  ;;  %v3702_v34 = vld [vmem:[%s4920_s28 + $0x18] sm:$0xff] }
  0x6b   : > { %1461 = vmatpush.bf16.msra.mxu1 %v4380_v9  ;;  %v4384_v26 = vld [vmem:[%s6478_s1 + $0x88] sm:$0xff]  ;;  %v4383_v30 = vld [vmem:[%s6478_s1 + $0x80] sm:$0xff]  ;;  %v4406_v38 = vld [vmem:[%s6478_s1 + $0x138] sm:$0xff] }
  0x6c   : > { %1545 = vmatpush.bf16.msra.mxu2 %v4388_v10  ;;  %v4392_v27 = vld [vmem:[%s6478_s1 + $0xc8] sm:$0xff]  ;;  %v826_v31 = vld [vmem:[%s4920_s28] sm:$0xff]  ;;  %v4405_v43 = vld [vmem:[%s6478_s1 + $0x130] sm:$0xff] }
  0x6d   : > { %1629 = vmatpush.bf16.msra.mxu3 %v4396_v11  ;;  %v3701_v33 = vld [vmem:[%s4920_s28 + $0x8] sm:$0xff]  ;;  %v4391_v35 = vld [vmem:[%s6478_s1 + $0xc0] sm:$0xff]  ;;  %v980_v39 = vpack.c.bf16 %v827_v32, %v826_v31  ;;  %v829_v44 = vld [vmem:[%s4920_s28 + $0x30] sm:$0xff] }
  0x6e   : > { %1378 = vmatpush.bf16.msra.mxu0 %v4371_v12  ;;  %v3732_v36 = vld [vmem:[%s4920_s28 + $0x20] sm:$0xff]  ;;  %v3762_v37 = vld [vmem:[%s4920_s28 + $0x28] sm:$0xff]  ;;  %v981_v40 = vpack.c.bf16 %v3702_v34, %v3701_v33  ;;  %v3704_v45 = vld [vmem:[%s4920_s28 + $0x38] sm:$0xff] }
  0x6f   : > { %1462 = vmatpush.bf16.msra.mxu1 %v4379_v13  ;;  %v982_v41 = vpack.c.bf16 %v3732_v36, %v827_v32  ;;  %v983_v42 = vpack.c.bf16 %v3762_v37, %v3702_v34  ;;  %v3734_v46 = vld [vmem:[%s4920_s28 + $0x40] sm:$0xff]  ;;  %v3764_v47 = vld [vmem:[%s4920_s28 + $0x48] sm:$0xff]  ;;  %v4941_v48 = vpack.c.bf16 %v829_v44, %v3732_v36  ;;  %v986_v49 = vpack.c.bf16 %v3704_v45, %v3762_v37  ;;  %v831_v53 = vld [vmem:[%s4920_s28 + $0x50] sm:$0xff] }
  0x70   : > { %1546 = vmatpush.bf16.msra.mxu2 %v4387_v14  ;;  %v987_v50 = vpack.c.bf16 %v3734_v46, %v829_v44  ;;  %v988_v51 = vpack.c.bf16 %v3764_v47, %v3704_v45  ;;  %v4404_v52 = vld [vmem:[%s6478_s1 + $0x128] sm:$0xff]  ;;  %v3706_v54 = vld [vmem:[%s4920_s28 + $0x58] sm:$0xff]  ;;  %v3736_v55 = vld [vmem:[%s4920_s28 + $0x60] sm:$0xff]  ;;  %v4951_v57 = vpack.c.bf16 %v831_v53, %v3734_v46 }
  0x71   : > { %1630 = vmatpush.bf16.msra.mxu3 %v4395_v15  ;;  %v3766_v56 = vld [vmem:[%s4920_s28 + $0x68] sm:$0xff]  ;;  %v991_v58 = vpack.c.bf16 %v3706_v54, %v3764_v47  ;;  %v992_v59 = vpack.c.bf16 %v3736_v55, %v831_v53  ;;  %v833_v61 = vld [vmem:[%s4920_s28 + $0x70] sm:$0xff]  ;;  %v3708_v62 = vld [vmem:[%s4920_s28 + $0x78] sm:$0xff] }
  0x72   : > { %1379 = vmatpush.bf16.msra.mxu0 %v4370_v16  ;;  %v993_v60 = vpack.c.bf16 %v3766_v56, %v3706_v54  ;;  %v3738_v63 = vld [vmem:[%s4920_s28 + $0x80] sm:$0xff]  ;;  %v3768_v0 = vld [vmem:[%s4920_s28 + $0x88] sm:$0xff]  ;;  %v4958_v1 = vpack.c.bf16 %v833_v61, %v3736_v55  ;;  %v996_v2 = vpack.c.bf16 %v3708_v62, %v3766_v56  ;;  %v835_v6 = vld [vmem:[%s4920_s28 + $0x90] sm:$0xff] }
  0x73   : > { %1463 = vmatpush.bf16.msra.mxu1 %v4378_v17  ;;  %v997_v3 = vpack.c.bf16 %v3738_v63, %v833_v61  ;;  %v998_v4 = vpack.c.bf16 %v3768_v0, %v3708_v62  ;;  %v4403_v5 = vld [vmem:[%s6478_s1 + $0x120] sm:$0xff]  ;;  %v3710_v7 = vld [vmem:[%s4920_s28 + $0x98] sm:$0xff]  ;;  %v3770_v9 = vld [vmem:[%s4920_s28 + $0xa8] sm:$0xff]  ;;  %v4968_v10 = vpack.c.bf16 %v835_v6, %v3738_v63 }
  0x74   : > { %1547 = vmatpush.bf16.msra.mxu2 %v4386_v18  ;;  %v3740_v8 = vld [vmem:[%s4920_s28 + $0xa0] sm:$0xff]  ;;  %v1001_v11 = vpack.c.bf16 %v3710_v7, %v3768_v0  ;;  %v1003_v13 = vpack.c.bf16 %v3770_v9, %v3710_v7  ;;  %v837_v14 = vld [vmem:[%s4920_s28 + $0xb0] sm:$0xff]  ;;  %v3712_v15 = vld [vmem:[%s4920_s28 + $0xb8] sm:$0xff] }
  0x75   : > { %1631 = vmatpush.bf16.msra.mxu3 %v4394_v19  ;;  %v1002_v12 = vpack.c.bf16 %v3740_v8, %v835_v6  ;;  %v3742_v16 = vld [vmem:[%s4920_s28 + $0xc0] sm:$0xff]  ;;  %v3772_v17 = vld [vmem:[%s4920_s28 + $0xc8] sm:$0xff]  ;;  %v4975_v18 = vpack.c.bf16 %v837_v14, %v3740_v8  ;;  %v1006_v19 = vpack.c.bf16 %v3712_v15, %v3770_v9  ;;  %v841_v31 = vld [vmem:[%s4920_s28 + $0xf0] sm:$0xff] }
  0x76   : > { %1380 = vmatpush.bf16.msra.mxu0 %v4369_v20  ;;  %v1007_v20 = vpack.c.bf16 %v3742_v16, %v837_v14  ;;  %v3716_v32 = vld [vmem:[%s4920_s28 + $0xf8] sm:$0xff]  ;;  %v3746_v33 = vld [vmem:[%s4920_s28 + $0x100] sm:$0xff]  ;;  %v3776_v34 = vld [vmem:[%s4920_s28 + $0x108] sm:$0xff] }
  0x77   : > { %1464 = vmatpush.bf16.msra.mxu1 %v4377_v21  ;;  %v1008_v21 = vpack.c.bf16 %v3772_v17, %v3712_v15  ;;  %v1017_v37 = vpack.c.bf16 %v3746_v33, %v841_v31  ;;  %v3720_v61 = vld [vmem:[%s4920_s28 + $0x138] sm:$0xff]  ;;  %v3750_v62 = vld [vmem:[%s4920_s28 + $0x140] sm:$0xff]  ;;  %v3780_v63 = vld [vmem:[%s4920_s28 + $0x148] sm:$0xff] }
  0x78   : > { %1548 = vmatpush.bf16.msra.mxu2 %v4385_v22  ;;  %v4402_v22 = vld [vmem:[%s6478_s1 + $0x118] sm:$0xff]  ;;  %v1028_v9 = vpack.c.bf16 %v3780_v63, %v3720_v61 }
  0x79   : > { %1632 = vmatpush.bf16.msra.mxu3 %v4393_v23  ;;  %v839_v23 = vld [vmem:[%s4920_s28 + $0xd0] sm:$0xff] }
  0x7a   : > { %1381 = vmatpush.bf16.msra.mxu0 %v4368_v24  ;;  %v3714_v24 = vld [vmem:[%s4920_s28 + $0xd8] sm:$0xff] }
  0x7b   : > { %1465 = vmatpush.bf16.msra.mxu1 %v4376_v25  ;;  %v3744_v25 = vld [vmem:[%s4920_s28 + $0xe0] sm:$0xff] }
  0x7c   : > { %1549 = vmatpush.bf16.msra.mxu2 %v4384_v26  ;;  %v3774_v26 = vld [vmem:[%s4920_s28 + $0xe8] sm:$0xff] }
  0x7d   : > { %1633 = vmatpush.bf16.msra.mxu3 %v4392_v27  ;;  %v4985_v27 = vpack.c.bf16 %v839_v23, %v3742_v16  ;;  %v1016_v36 = vpack.c.bf16 %v3716_v32, %v3774_v26 }
  0x7e   : > { %1382 = vmatpush.bf16.msra.mxu0 %v4367_v28  ;;  %v1011_v28 = vpack.c.bf16 %v3714_v24, %v3772_v17 }
  0x7f   : > { %1466 = vmatpush.bf16.msra.mxu1 %v4375_v29  ;;  %v1012_v29 = vpack.c.bf16 %v3744_v25, %v839_v23  ;;  %v3722_v23 = vld [vmem:[%s4920_s28 + $0x158] sm:$0xff] }
  0x80   : > { %1550 = vmatpush.bf16.msra.mxu2 %v4383_v30  ;;  %v1013_v30 = vpack.c.bf16 %v3774_v26, %v3714_v24  ;;  %v3752_v24 = vld [vmem:[%s4920_s28 + $0x160] sm:$0xff] }
  0x81   : > { %1634 = vmatpush.bf16.msra.mxu3 %v4391_v35  ;;  %1383 = vmatmul.bf16.vlgmr.msra.gmra.mxu0 %v980_v39  ;;  %v4992_v35 = vpack.c.bf16 %v841_v31, %v3744_v25  ;;  %v4401_v39 = vld [vmem:[%s6478_s1 + $0x110] sm:$0xff]  ;;  %v3782_v25 = vld [vmem:[%s4920_s28 + $0x168] sm:$0xff] }
  0x82   : > { %1711 = vmatpush.bf16.msrb.mxu0 %v4406_v38  ;;  %1467 = vmatmul.bf16.vlgmr.msra.gmra.mxu1 %v981_v40  ;;  %v1018_v38 = vpack.c.bf16 %v3776_v34, %v3716_v32  ;;  %v843_v40 = vld [vmem:[%s4920_s28 + $0x110] sm:$0xff] }
  0x83   : > { %1551 = vmatmul.bf16.vlgmr.msra.gmra.mxu2 %v982_v41  ;;  %v3718_v41 = vld [vmem:[%s4920_s28 + $0x118] sm:$0xff]  ;;  %v5002_v44 = vpack.c.bf16 %v843_v40, %v3746_v33 }
  0x84   : > { %1635 = vmatmul.bf16.vlgmr.msra.gmra.mxu3 %v983_v42  ;;  %v3748_v42 = vld [vmem:[%s4920_s28 + $0x120] sm:$0xff]  ;;  %v1021_v45 = vpack.c.bf16 %v3718_v41, %v3776_v34 }
  0x86   : > { %1712 = vmatpush.bf16.msrb.mxu0 %v4405_v43  ;;  %v3778_v43 = vld [vmem:[%s4920_s28 + $0x128] sm:$0xff] }
  0x8a   : > { %1713 = vmatpush.bf16.msrb.mxu0 %v4404_v52 }
  0x8e   : > { %1714 = vmatpush.bf16.msrb.mxu0 %v4403_v5 }
  0x91   : > { %1388 = vmatmul.bf16.gmra.mxu0 %v4941_v48 }
  0x92   : > { %1472 = vmatmul.bf16.gmra.mxu1 %v986_v49  ;;  %1715 = vmatpush.bf16.msrb.mxu0 %v4402_v22  ;;  %v1022_v49 = vpack.c.bf16 %v3748_v42, %v843_v40  ;;  %v847_v22 = vld [vmem:[%s4920_s28 + $0x150] sm:$0xff] }
  0x93   : > { %1556 = vmatmul.bf16.gmra.mxu2 %v987_v50  ;;  %v1023_v50 = vpack.c.bf16 %v3778_v43, %v3718_v41  ;;  %v1032_v34 = vpack.c.bf16 %v3752_v24, %v847_v22 }
  0x94   : > { %1640 = vmatmul.bf16.gmra.mxu3 %v988_v51 }
  0x96   : > { %1716 = vmatpush.bf16.msrb.mxu0 %v4401_v39 }
  0xa1   : > { %1393 = vmatmul.bf16.gmra.mxu0 %v4951_v57 }
  0xa2   : > { %1477 = vmatmul.bf16.gmra.mxu1 %v991_v58 }
  0xa3   : > { %1561 = vmatmul.bf16.gmra.mxu2 %v992_v59 }
  0xa4   : > { %1645 = vmatmul.bf16.gmra.mxu3 %v993_v60  ;;  %v845_v60 = vld [vmem:[%s4920_s28 + $0x130] sm:$0xff] }
  0xa5   : > { %v1027_v8 = vpack.c.bf16 %v3750_v62, %v845_v60 }
  0xb1   : > { %1398 = vmatmul.bf16.gmra.mxu0 %v4958_v1 }
  0xb2   : > { %1482 = vmatmul.bf16.gmra.mxu1 %v996_v2 }
  0xb3   : > { %1566 = vmatmul.bf16.gmra.mxu2 %v997_v3  ;;  %v5011_v3 = vpack.c.bf16 %v845_v60, %v3748_v42 }
  0xb4   : > { %1650 = vmatmul.bf16.gmra.mxu3 %v998_v4  ;;  %v1026_v4 = vpack.c.bf16 %v3720_v61, %v3778_v43 }
  0xc1   : > { %1403 = vmatmul.bf16.gmra.mxu0 %v4968_v10 }
  0xc2   : > { %1487 = vmatmul.bf16.gmra.mxu1 %v1001_v11 }
  0xc3   : > { %1571 = vmatmul.bf16.gmra.mxu2 %v1002_v12 }
  0xc4   : > { %1655 = vmatmul.bf16.gmra.mxu3 %v1003_v13 }
  0xd1   : > { %1408 = vmatmul.bf16.gmra.mxu0 %v4975_v18 }
  0xd2   : > { %1492 = vmatmul.bf16.gmra.mxu1 %v1006_v19  ;;  %v4400_v19 = vld [vmem:[%s6478_s1 + $0x108] sm:$0xff] }
  0xd3   : > { %1576 = vmatmul.bf16.gmra.mxu2 %v1007_v20  ;;  %1717 = vmatpush.bf16.msrb.mxu0 %v4400_v19 }
  0xd4   : > { %1660 = vmatmul.bf16.gmra.mxu3 %v1008_v21 }
  0xe1   : > { %1413 = vmatmul.bf16.gmra.mxu0 %v4985_v27 }
  0xe2   : > { %1497 = vmatmul.bf16.gmra.mxu1 %v1011_v28 }
  0xe3   : > { %1581 = vmatmul.bf16.gmra.mxu2 %v1012_v29  ;;  %v5025_v29 = vpack.c.bf16 %v847_v22, %v3750_v62 }
  0xe4   : > { %1665 = vmatmul.bf16.gmra.mxu3 %v1013_v30  ;;  %v1031_v30 = vpack.c.bf16 %v3722_v23, %v3780_v63 }
  0xf1   : > { %1418 = vmatmul.bf16.gmra.mxu0 %v4992_v35 }
  0xf2   : > { %1502 = vmatmul.bf16.gmra.mxu1 %v1016_v36  ;;  %v1033_v36 = vpack.c.bf16 %v3782_v25, %v3722_v23 }
  0xf3   : > { %1586 = vmatmul.bf16.gmra.mxu2 %v1017_v37 }
  0xf4   : > { %1670 = vmatmul.bf16.gmra.mxu3 %v1018_v38 }
  0xfe   : > { %v1384_v46 = vpop.f32.mrf.mxu0 }
  0xff   : > { %v1468_v47 = vpop.f32.mrf.mxu1 }
 0x100   : > { %v1469_v51 = vadd.f32 %v1468_v47, %v1384_v46  ;;  %v849_v47 = vld [vmem:[%s4920_s28 + $0x170] sm:$0xff] }
 0x101   : > { %1423 = vmatmul.bf16.gmra.mxu0 %v5002_v44 }
 0x102   : > { %1507 = vmatmul.bf16.gmra.mxu1 %v1021_v45 }
 0x103   : > { %1591 = vmatmul.bf16.gmra.mxu2 %v1022_v49  ;;  %v3724_v49 = vld [vmem:[%s4920_s28 + $0x178] sm:$0xff] }
 0x104   : > { %1675 = vmatmul.bf16.gmra.mxu3 %v1023_v50  ;;  %v3754_v50 = vld [vmem:[%s4920_s28 + $0x180] sm:$0xff] }
 0x105   : > { %v1037_v61 = vpack.c.bf16 %v3754_v50, %v849_v47 }
 0x106   : > { %v1552_v52 = vpop.f32.mrf.mxu2  ;;  %v1386_v55 = vpop.f32.mrf.mxu0 }
 0x107   : > { %v1636_v53 = vpop.f32.mrf.mxu3  ;;  %v1553_v54 = vadd.f32 %v1552_v52, %v1469_v51  ;;  %v1470_v56 = vpop.f32.mrf.mxu1  ;;  %v3784_v51 = vld [vmem:[%s4920_s28 + $0x188] sm:$0xff] }
 0x108   : > { %v1471_v58 = vadd.f32 %v1470_v56, %v1386_v55  ;;  %v1036_v55 = vpack.c.bf16 %v3724_v49, %v3782_v25  ;;  %v1038_v62 = vpack.c.bf16 %v3784_v51, %v3724_v49 }
 0x109   : > { %v5005_v59 = vadd.f32 %v1636_v53, %v1553_v54  ;;  %v5036_v54 = vpack.c.bf16 %v849_v47, %v3752_v24 }
 0x10e   : > { %v1554_v0 = vpop.f32.mrf.mxu2  ;;  %v1389_v6 = vpop.f32.mrf.mxu0 }
 0x10f   : > { %v1638_v2 = vpop.f32.mrf.mxu3  ;;  %v1555_v5 = vadd.f32 %v1554_v0, %v1471_v58  ;;  %v1473_v7 = vpop.f32.mrf.mxu1 }
 0x110   : > { %v1474_v11 = vadd.f32 %v1473_v7, %v1389_v6 }
 0x111   : > { %v5013_v12 = vadd.f32 %v1638_v2, %v1555_v5  ;;  %1428 = vmatmul.bf16.gmra.mxu0 %v5011_v3  ;;  %v4399_v2 = vld [vmem:[%s6478_s1 + $0x100] sm:$0xff] }
 0x112   : > { %1512 = vmatmul.bf16.gmra.mxu1 %v1026_v4  ;;  %1718 = vmatpush.bf16.msrb.mxu0 %v4399_v2  ;;  %v5087_v2 = vld [vmem:[%s4920_s28 + $0x1e0] sm:$0xff] }
 0x113   : > { %1596 = vmatmul.bf16.gmra.mxu2 %v1027_v8 }
 0x114   : > { %1680 = vmatmul.bf16.gmra.mxu3 %v1028_v9 }
 0x116   : > { %v1557_v13 = vpop.f32.mrf.mxu2  ;;  %v1391_v16 = vpop.f32.mrf.mxu0 }
 0x117   : > { %v1641_v14 = vpop.f32.mrf.mxu3  ;;  %v1558_v15 = vadd.f32 %v1557_v13, %v1474_v11  ;;  %v1475_v17 = vpop.f32.mrf.mxu1  ;;  %v851_v11 = vld [vmem:[%s4920_s28 + $0x190] sm:$0xff]  ;;  %v3726_v13 = vld [vmem:[%s4920_s28 + $0x198] sm:$0xff] }
 0x118   : > { %v1476_v20 = vadd.f32 %v1475_v17, %v1391_v16  ;;  %v5058_v19 = vpack.c.bf16 %v851_v11, %v3754_v50 }
 0x119   : > { %v5019_v21 = vadd.f32 %v1641_v14, %v1558_v15  ;;  %v3756_v14 = vld [vmem:[%s4920_s28 + $0x1a0] sm:$0xff]  ;;  %v3786_v15 = vld [vmem:[%s4920_s28 + $0x1a8] sm:$0xff] }
 0x11a   : > { %v1042_v24 = vpack.c.bf16 %v3756_v14, %v851_v11  ;;  %v1043_v25 = vpack.c.bf16 %v3786_v15, %v3726_v13 }
 0x11e   : > { %v1559_v26 = vpop.f32.mrf.mxu2  ;;  %v1394_v32 = vpop.f32.mrf.mxu0 }
 0x11f   : > { %v1643_v28 = vpop.f32.mrf.mxu3  ;;  %v1560_v31 = vadd.f32 %v1559_v26, %v1476_v20  ;;  %v1478_v33 = vpop.f32.mrf.mxu1  ;;  %v1041_v20 = vpack.c.bf16 %v3726_v13, %v3784_v51 }
 0x120   : > { %v1479_v37 = vadd.f32 %v1478_v33, %v1394_v32 }
 0x121   : > { %v5027_v38 = vadd.f32 %v1643_v28, %v1560_v31  ;;  %1433 = vmatmul.bf16.gmra.mxu0 %v5025_v29 }
 0x122   : > { %1517 = vmatmul.bf16.gmra.mxu1 %v1031_v30 }
 0x123   : > { %1601 = vmatmul.bf16.gmra.mxu2 %v1032_v34 }
 0x124   : > { %1685 = vmatmul.bf16.gmra.mxu3 %v1033_v36  ;;  %v853_v36 = vld [vmem:[%s4920_s28 + $0x1b0] sm:$0xff] }
 0x126   : > { %v1562_v39 = vpop.f32.mrf.mxu2  ;;  %v1396_v42 = vpop.f32.mrf.mxu0 }
 0x127   : > { %v1646_v40 = vpop.f32.mrf.mxu3  ;;  %v1563_v41 = vadd.f32 %v1562_v39, %v1479_v37  ;;  %v1480_v43 = vpop.f32.mrf.mxu1  ;;  %v3728_v37 = vld [vmem:[%s4920_s28 + $0x1b8] sm:$0xff]  ;;  %v3758_v39 = vld [vmem:[%s4920_s28 + $0x1c0] sm:$0xff] }
 0x128   : > { %v1481_v45 = vadd.f32 %v1480_v43, %v1396_v42  ;;  %v5075_v43 = vpack.c.bf16 %v853_v36, %v3756_v14  ;;  %v1047_v50 = vpack.c.bf16 %v3758_v39, %v853_v36 }
 0x129   : > { %v5030_v46 = vadd.f32 %v1646_v40, %v1563_v41  ;;  %v3788_v40 = vld [vmem:[%s4920_s28 + $0x1c8] sm:$0xff] }
 0x12a   : > { %v1048_v51 = vpack.c.bf16 %v3788_v40, %v3728_v37 }
 0x12e   : > { %v1564_v52 = vpop.f32.mrf.mxu2  ;;  %v1399_v58 = vpop.f32.mrf.mxu0 }
 0x12f   : > { %v1648_v53 = vpop.f32.mrf.mxu3  ;;  %v1565_v56 = vadd.f32 %v1564_v52, %v1481_v45  ;;  %v1483_v60 = vpop.f32.mrf.mxu1  ;;  %v1046_v45 = vpack.c.bf16 %v3728_v37, %v3786_v15 }
 0x130   : > { %v1484_v63 = vadd.f32 %v1483_v60, %v1399_v58 }
 0x131   : > { %v5038_v0 = vadd.f32 %v1648_v53, %v1565_v56  ;;  %1438 = vmatmul.bf16.gmra.mxu0 %v5036_v54 }
 0x132   : > { %1522 = vmatmul.bf16.gmra.mxu1 %v1036_v55 }
 0x133   : > { %1606 = vmatmul.bf16.gmra.mxu2 %v1037_v61 }
 0x134   : > { %1690 = vmatmul.bf16.gmra.mxu3 %v1038_v62  ;;  %v855_v62 = vld [vmem:[%s4920_s28 + $0x1d0] sm:$0xff] }
 0x135   : > { %v5094_v11 = vpack.c.bf16 %v855_v62, %v3758_v39 }
 0x136   : > { %v1567_v4 = vpop.f32.mrf.mxu2  ;;  %v5044_v7 = vpop.f32.mrf.mxu0 }
 0x137   : > { %v1651_v5 = vpop.f32.mrf.mxu3  ;;  %v1568_v6 = vadd.f32 %v1567_v4, %v1484_v63  ;;  %v5046_v8 = vpop.f32.mrf.mxu1  ;;  %v3730_v63 = vld [vmem:[%s4920_s28 + $0x1d8] sm:$0xff]  ;;  %v3790_v4 = vld [vmem:[%s4920_s28 + $0x1e8] sm:$0xff] }
 0x138   : > { %v1051_v13 = vpack.c.bf16 %v3730_v63, %v3788_v40 }
 0x139   : > { %v5048_v9 = vadd.f32 %v1651_v5, %v1568_v6 }
 0x13e   : > { %v5054_v16 = vpop.f32.mrf.mxu2  ;;  %v1404_v22 = vpop.f32.mrf.mxu0 }
 0x13f   : > { %v5056_v17 = vpop.f32.mrf.mxu3  ;;  %v1488_v23 = vpop.f32.mrf.mxu1 }
 0x140   : > { %v1489_v26 = vadd.f32 %v1488_v23, %v1404_v22  ;;  %v1053_v22 = vpack.c.bf16 %v3790_v4, %v3730_v63 }
 0x141   : > { %1443 = vmatmul.bf16.gmra.mxu0 %v5058_v19 }
 0x142   : > { %1527 = vmatmul.bf16.gmra.mxu1 %v1041_v20  ;;  %v1052_v20 = vpack.c.bf16 %v5087_v2, %v855_v62 }
 0x143   : > { %1611 = vmatmul.bf16.gmra.mxu2 %v1042_v24 }
 0x144   : > { %1695 = vmatmul.bf16.gmra.mxu3 %v1043_v25 }
 0x146   : > { %v1572_v28 = vpop.f32.mrf.mxu2  ;;  %v5061_v32 = vpop.f32.mrf.mxu0 }
 0x147   : > { %v1656_v30 = vpop.f32.mrf.mxu3  ;;  %v1573_v31 = vadd.f32 %v1572_v28, %v1489_v26  ;;  %v5063_v33 = vpop.f32.mrf.mxu1 }
 0x149   : > { %v5065_v34 = vadd.f32 %v1656_v30, %v1573_v31 }
 0x14e   : > { %v5071_v41 = vpop.f32.mrf.mxu2  ;;  %v1409_v47 = vpop.f32.mrf.mxu0 }
 0x14f   : > { %v5073_v42 = vpop.f32.mrf.mxu3  ;;  %v1493_v49 = vpop.f32.mrf.mxu1 }
 0x150   : > { %v1494_v52 = vadd.f32 %v1493_v49, %v1409_v47 }
 0x151   : > { %1448 = vmatmul.bf16.gmra.mxu0 %v5075_v43 }
 0x152   : > { %1532 = vmatmul.bf16.gmra.mxu1 %v1046_v45 }
 0x153   : > { %1616 = vmatmul.bf16.gmra.mxu2 %v1047_v50 }
 0x154   : > { %1700 = vmatmul.bf16.gmra.mxu3 %v1048_v51 }
 0x156   : > { %v1577_v53 = vpop.f32.mrf.mxu2  ;;  %v5078_v58 = vpop.f32.mrf.mxu0 }
 0x157   : > { %v1661_v55 = vpop.f32.mrf.mxu3  ;;  %v1578_v56 = vadd.f32 %v1577_v53, %v1494_v52  ;;  %v5080_v60 = vpop.f32.mrf.mxu1 }
 0x159   : > { %v5082_v61 = vadd.f32 %v1661_v55, %v1578_v56 }
 0x15e   : > { %v5090_v5 = vpop.f32.mrf.mxu2  ;;  %v1414_v14 = vpop.f32.mrf.mxu0 }
 0x15f   : > { %v5092_v6 = vpop.f32.mrf.mxu3  ;;  %v1498_v15 = vpop.f32.mrf.mxu1 }
 0x160   : > { %v1499_v23 = vadd.f32 %v1498_v15, %v1414_v14 }
 0x161   : > { %1453 = vmatmul.bf16.gmra.mxu0 %v5094_v11 }
 0x162   : > { %1537 = vmatmul.bf16.gmra.mxu1 %v1051_v13 }
 0x163   : > { %1621 = vmatmul.bf16.gmra.mxu2 %v1052_v20 }
 0x164   : > { %1705 = vmatmul.bf16.gmra.mxu3 %v1053_v22 }
 0x166   : > { %v1582_v24 = vpop.f32.mrf.mxu2  ;;  %v5098_v28 = vpop.f32.mrf.mxu0 }
 0x167   : > { %v1666_v25 = vpop.f32.mrf.mxu3  ;;  %v1583_v26 = vadd.f32 %v1582_v24, %v1499_v23  ;;  %v5100_v30 = vpop.f32.mrf.mxu1 }
 0x169   : > { %v5102_v31 = vadd.f32 %v1666_v25, %v1583_v26 }
 0x16e   : > { %v5104_v36 = vpop.f32.mrf.mxu2  ;;  %v1419_v39 = vpop.f32.mrf.mxu0 }
 0x16f   : > { %v5106_v37 = vpop.f32.mrf.mxu3  ;;  %v1503_v40 = vpop.f32.mrf.mxu1 }
 0x170   : > { %v1504_v45 = vadd.f32 %v1503_v40, %v1419_v39 }
 0x171   : > { %1719 = vmatmul.bf16.vlgmr.msrb.gmra.mxu0 %v4941_v48 }
 0x176   : > { %v1587_v47 = vpop.f32.mrf.mxu2  ;;  %v5109_v51 = vpop.f32.mrf.mxu0 }
 0x177   : > { %v1671_v49 = vpop.f32.mrf.mxu3  ;;  %v1588_v50 = vadd.f32 %v1587_v47, %v1504_v45  ;;  %v5111_v52 = vpop.f32.mrf.mxu1 }
 0x179   : > { %v5113_v53 = vadd.f32 %v1671_v49, %v1588_v50 }
 0x17e   : > { %v5115_v55 = vpop.f32.mrf.mxu2  ;;  %v1424_v62 = vpop.f32.mrf.mxu0 }
 0x17f   : > { %v5117_v56 = vpop.f32.mrf.mxu3  ;;  %v1508_v63 = vpop.f32.mrf.mxu1 }
 0x180   : > { %v1509_v4 = vadd.f32 %v1508_v63, %v1424_v62 }
 0x181   : > { %1724 = vmatmul.bf16.gmra.mxu0 %v4951_v57 }
 0x186   : > { %v1592_v13 = vpop.f32.mrf.mxu2  ;;  %v5120_v15 = vpop.f32.mrf.mxu0 }
 0x187   : > { %v1676_v48 = vpop.f32.mrf.mxu3  ;;  %v1593_v14 = vadd.f32 %v1592_v13, %v1509_v4  ;;  %v5122_v20 = vpop.f32.mrf.mxu1 }
 0x189   : > { %v5124_v22 = vadd.f32 %v1676_v48, %v1593_v14 }
 0x18e   : > { %v5126_v23 = vpop.f32.mrf.mxu2  ;;  %v1429_v25 = vpop.f32.mrf.mxu0 }
 0x18f   : > { %v5128_v24 = vpop.f32.mrf.mxu3  ;;  %v1513_v26 = vpop.f32.mrf.mxu1 }
 0x190   : > { %v1514_v39 = vadd.f32 %v1513_v26, %v1429_v25 }
 0x191   : > { %1729 = vmatmul.bf16.gmra.mxu0 %v4958_v1 }
 0x196   : > { %v1597_v40 = vpop.f32.mrf.mxu2  ;;  %v5131_v47 = vpop.f32.mrf.mxu0 }
 0x197   : > { %v1681_v57 = vpop.f32.mrf.mxu3  ;;  %v1598_v45 = vadd.f32 %v1597_v40, %v1514_v39 }
 0x199   : > { %v5133_v49 = vadd.f32 %v1681_v57, %v1598_v45 }
 0x19e   : > { %v5135_v50 = vpop.f32.mrf.mxu0 }
 0x1a1   : > { %1734 = vmatmul.bf16.gmra.mxu0 %v4968_v10 }
 0x1a6   : > { %v5138_v62 = vpop.f32.mrf.mxu0 }
 0x1ae   : > { %v5140_v63 = vpop.f32.mrf.mxu0 }
 0x1b1   : > { %1739 = vmatmul.bf16.gmra.mxu0 %v4975_v18 }
 0x1b6   : > { %v5143_v4 = vpop.f32.mrf.mxu0 }
 0x1be   : > { %v5145_v1 = vpop.f32.mrf.mxu0 }
 0x1c1   : > { %1744 = vmatmul.bf16.gmra.mxu0 %v4985_v27 }
 0x1c6   : > { %v5148_v13 = vpop.f32.mrf.mxu0 }
 0x1ce   : > { %v5150_v48 = vpop.f32.mrf.mxu0 }
 0x1d1   : > { %1749 = vmatmul.bf16.gmra.mxu0 %v4992_v35 }
 0x1d6   : > { %v5153_v14 = vpop.f32.mrf.mxu0 }
 0x1de   : > { %v5155_v10 = vpop.f32.mrf.mxu0 }
 0x1e1   : > { %1754 = vmatmul.bf16.gmra.mxu0 %v5002_v44 }
 0x1e6   : > { %v5158_v25 = vpop.f32.mrf.mxu0 }
 0x1ee   : > { %v1720_v18 = vpop.f32.mrf.mxu0 }
 0x1ef   : > { %v5161_v26 = vadd.f32 %v1720_v18, %v5005_v59 }
 0x1f1   : > { %1759 = vmatmul.bf16.gmra.mxu0 %v5011_v3 }
 0x1f6   : > { %v1722_v27 = vpop.f32.mrf.mxu0 }
 0x1f7   : > { %v5165_v39 = vadd.f32 %v1722_v27, %v5013_v12 }
 0x1fe   : > { %v1725_v40 = vpop.f32.mrf.mxu0 }
 0x1ff   : > { %v5168_v35 = vadd.f32 %v1725_v40, %v5019_v21 }
 0x201   : > { %1764 = vmatmul.bf16.gmra.mxu0 %v5025_v29 }
 0x206   : > { %v1727_v57 = vpop.f32.mrf.mxu0 }
 0x207   : > { %v5172_v44 = vadd.f32 %v1727_v57, %v5027_v38  ;;  %v1496_v57 = vadd.f32 %v5080_v60, %v5078_v58 }
 0x20e   : > { %v1730_v45 = vpop.f32.mrf.mxu0 }
 0x20f   : > { %v5175_v59 = vadd.f32 %v1730_v45, %v5030_v46  ;;  %v1491_v46 = vadd.f32 %v5063_v33, %v5061_v32  ;;  %v1580_v32 = vadd.f32 %v5090_v5, %v1496_v57 }
 0x211   : > { %1769 = vmatmul.bf16.gmra.mxu0 %v5036_v54  ;;  %v1575_v54 = vadd.f32 %v5071_v41, %v1491_v46  ;;  %v1664_v33 = vadd.f32 %v5092_v6, %v1580_v32  ;;  %v5225_v46 = vpop.f32.mrf.mxu1 }
 0x216   : > { %v1732_v3 = vpop.f32.mrf.mxu0 }
 0x217   : > { %v5179_v12 = vadd.f32 %v1732_v3, %v5038_v0  ;;  %v1659_v0 = vadd.f32 %v5073_v42, %v1575_v54  ;;  %v3820_v42 = vld [vmem:[%s4920_s28 + $0x1f0] sm:$0xff]  ;;  %v5231_v54 = vpop.f32.mrf.mxu3  ;;  %s820_s28 = scalar_lea.vmem %s6492_s15, %s3699_s27 }
 0x21e   : > { %v1735_v18 = vpop.f32.mrf.mxu0 }
 0x21f   : > { %v5182_v21 = vadd.f32 %v1735_v18, %v5048_v9  ;;  %v1501_v18 = vadd.f32 %v5100_v30, %v5098_v28  ;;  %v5246_v32 = vpop.f32.mrf.mxu3 }
 0x221   : > { %1774 = vmatmul.bf16.gmra.mxu0 %v5058_v19  ;;  %v1585_v60 = vadd.f32 %v5104_v36, %v1501_v18 }
 0x226   : > { %v5185_v29 = vpop.f32.mrf.mxu0 }
 0x22e   : > { %v1740_v38 = vpop.f32.mrf.mxu0 }
 0x22f   : > { %v5190_v27 = vadd.f32 %v1740_v38, %v5065_v34  ;;  %v1506_v38 = vadd.f32 %v5111_v52, %v5109_v51  ;;  %v1511_v51 = vadd.f32 %v5122_v20, %v5120_v15 }
 0x231   : > { %1779 = vmatmul.bf16.gmra.mxu0 %v5075_v43  ;;  %v1054_v43 = vpack.c.bf16 %v3820_v42, %v5087_v2  ;;  %v1590_v28 = vadd.f32 %v5115_v55, %v1506_v38  ;;  %v5239_v55 = vpop.f32.mrf.mxu1  ;;  %v5282_v38 = vld [vmem:[%s6479_s2] ss:$0 sm:$0xff] }
 0x233   : > { %v1674_v30 = vadd.f32 %v5117_v56, %v1590_v28 }
 0x236   : > { %v1742_v9 = vpop.f32.mrf.mxu0 }
 0x237   : > { %v5195_v40 = vadd.f32 %v1742_v9, %v1659_v0 }
 0x23e   : > { %v1745_v19 = vpop.f32.mrf.mxu0 }
 0x23f   : > { %v5200_v45 = vadd.f32 %v1745_v19, %v5082_v61  ;;  %v1669_v61 = vadd.f32 %v5106_v37, %v1585_v60  ;;  %v5229_v37 = vpop.f32.mrf.mxu2 }
 0x241   : > { %1784 = vmatmul.bf16.gmra.mxu0 %v5094_v11 }
 0x246   : > { %v1747_v34 = vpop.f32.mrf.mxu0 }
 0x247   : > { %v5205_v41 = vadd.f32 %v1747_v34, %v1664_v33  ;;  %v5241_v56 = vpop.f32.mrf.mxu2  ;;  %v5248_v33 = vpop.f32.mrf.mxu1 }
 0x24e   : > { %v1750_v3 = vpop.f32.mrf.mxu0 }
 0x24f   : > { %v5212_v58 = vadd.f32 %v1750_v3, %v5102_v31  ;;  %v5250_v34 = vpop.f32.mrf.mxu2 }
 0x251   : > { %1789 = vmatmul.bf16.gmra.mxu0 %v1054_v43 }
 0x256   : > { %v1752_v5 = vpop.f32.mrf.mxu0 }
 0x257   : > { %v5216_v6 = vadd.f32 %v1752_v5, %v1669_v61 }
 0x25e   : > { %v1755_v11 = vpop.f32.mrf.mxu0 }
 0x25f   : > { %v5221_v2 = vadd.f32 %v1755_v11, %v5113_v53  ;;  %v1595_v53 = vadd.f32 %v5126_v23, %v1511_v51  ;;  %v5257_v23 = vpop.f32.mrf.mxu1 }
 0x261   : > { %v1679_v9 = vadd.f32 %v5128_v24, %v1595_v53  ;;  %v5261_v24 = vpop.f32.mrf.mxu2  ;;  %v5297_v53 = vadd.f32 %v5282_v38, %v5161_v26  ;;  %v5315_v26 = vadd.f32 %v5282_v38, %v5175_v59 }
 0x266   : > { %v1757_v31 = vpop.f32.mrf.mxu0 }
 0x267   : > { %v5227_v36 = vadd.f32 %v1757_v31, %v1674_v30  ;;  %v5267_v18 = vpop.f32.mrf.mxu1  ;;  %v1486_v30 = vadd.f32 %v5046_v8, %v5044_v7  ;;  %v5290_v31 = vadd.f32 %v5282_v38, %v5165_v39  ;;  %v5309_v8 = vadd.f32 %v5282_v38, %v5172_v44 }
 0x269   : > { %v5269_v60 = vpop.f32.mrf.mxu2  ;;  %6505 = vst [vmem:[#allocation6_spill] sm:$0xff] %v5290_v31  ;;  %v1570_v51 = vadd.f32 %v5054_v16, %v1486_v30  ;;  %v1829_v7 = vadd.f32 %v5290_v31, %v5297_v53  ;;  %v5324_v31 = vadd.f32 %v5282_v38, %v5179_v12  ;;  %v5341_v12 = vadd.f32 %v5282_v38, %v5190_v27 }
 0x26a   : > { %6507 = vst [vmem:[#allocation8_spill] sm:$0xff] %v5309_v8  ;;  %v5358_v27 = vadd.f32 %v5282_v38, %v5205_v41  ;;  %v5374_v41 = vadd.f32 %v5282_v38, %v5216_v6 }
 0x26b   : > { %v1654_v39 = vadd.f32 %v5056_v17, %v1570_v51  ;;  %v5330_v51 = vadd.f32 %v5282_v38, %v5182_v21  ;;  %v5348_v21 = vadd.f32 %v5282_v38, %v5195_v40  ;;  %v5365_v40 = vadd.f32 %v5282_v38, %v5212_v58 }
 0x26c   : > { %6512 = vst [vmem:[#allocation13_spill] sm:$0xff] %v5358_v27 }
 0x26d   : > { %v1738_v44 = vadd.f32 %v5185_v29, %v1654_v39  ;;  %6508 = vst [vmem:[#allocation9_spill] sm:$0xff] %v5330_v51 }
 0x26e   : > { %v1760_v0 = vpop.f32.mrf.mxu0  ;;  %6510 = vst [vmem:[#allocation11_spill] sm:$0xff] %v5348_v21 }
 0x26f   : > { %v5236_v52 = vadd.f32 %v1760_v0, %v5124_v22  ;;  %v5255_v22 = vpop.f32.mrf.mxu3  ;;  %v5275_v5 = vpop.f32.mrf.mxu1 }
 0x271   : > { %v5277_v11 = vpop.f32.mrf.mxu2 }
 0x276   : > { %v1762_v19 = vpop.f32.mrf.mxu0 }
 0x277   : > { %v5244_v57 = vadd.f32 %v1762_v19, %v1679_v9  ;;  %v5263_v43 = vpop.f32.mrf.mxu3  ;;  %v5301_v9 = vadd.f32 %v5282_v38, %v5168_v35  ;;  %v5303_v19 = vpop.f32.mrf.mxu1 }
 0x279   : > { %6506 = vst [vmem:[#allocation7_spill] sm:$0xff] %v5301_v9  ;;  %v1830_v16 = vadd.f32 %v1829_v7, %v5301_v9  ;;  %v5336_v9 = vadd.f32 %v5282_v38, %v1738_v44  ;;  %v5353_v44 = vadd.f32 %v5282_v38, %v5200_v45  ;;  %v1516_v45 = vadd.f32 %v5225_v46, %v5131_v47 }
 0x27a   : > { %v1521_v46 = vadd.f32 %v5248_v33, %v5138_v62  ;;  %v4422_v62 = vld [vmem:[%s6482_s5 + $0x78] sm:$0xff] }
 0x27b   : > { %v1831_v30 = vadd.f32 %v1830_v16, %v5309_v8  ;;  %6509 = vst [vmem:[#allocation10_spill] sm:$0xff] %v5336_v9  ;;  %2589 = vmatpush.bf16.msrb.mxu2 %v4422_v62 }
 0x27c   : > { %6511 = vst [vmem:[#allocation12_spill] sm:$0xff] %v5353_v44 }
 0x27d   : > { %v1832_v17 = vadd.f32 %v1831_v30, %v5315_v26 }
 0x27e   : > { %v1765_v15 = vpop.f32.mrf.mxu0 }
 0x27f   : > { %v5253_v20 = vadd.f32 %v1765_v15, %v5133_v49  ;;  %v5271_v61 = vpop.f32.mrf.mxu3  ;;  %v5317_v15 = vpop.f32.mrf.mxu2  ;;  %v1833_v7 = vadd.f32 %v1832_v17, %v5324_v31 }
 0x280   : > { %v1533_v16 = vpop.f32.mrf.mxu1 }
 0x281   : > { %v1834_v8 = vadd.f32 %v1833_v7, %v5330_v51 }
 0x283   : > { %v1835_v39 = vadd.f32 %v1834_v8, %v5336_v9 }
 0x285   : > { %v1836_v17 = vadd.f32 %v1835_v39, %v5341_v12 }
 0x286   : > { %v5259_v42 = vpop.f32.mrf.mxu0 }
 0x287   : > { %v5292_v0 = vpop.f32.mrf.mxu3  ;;  %v1617_v30 = vpop.f32.mrf.mxu2  ;;  %v1837_v7 = vadd.f32 %v1836_v17, %v5348_v21  ;;  %v1519_v21 = vadd.f32 %v5239_v55, %v5135_v50  ;;  %v1605_v50 = vadd.f32 %v5250_v34, %v1521_v46 }
 0x288   : > { %v1535_v39 = vpop.f32.mrf.mxu1 }
 0x289   : > { %v1838_v8 = vadd.f32 %v1837_v7, %v5353_v44  ;;  %v1600_v7 = vadd.f32 %v5229_v37, %v1516_v45  ;;  %v5382_v44 = vadd.f32 %v5282_v38, %v5221_v2  ;;  %v1603_v47 = vadd.f32 %v5241_v56, %v1519_v21 }
 0x28a   : > { %v1524_v37 = vadd.f32 %v5257_v23, %v5140_v63  ;;  %v5399_v56 = vadd.f32 %v5282_v38, %v5236_v52  ;;  %v5414_v21 = vadd.f32 %v5282_v38, %v5244_v57 }
 0x28b   : > { %v1839_v17 = vadd.f32 %v1838_v8, %v5358_v27  ;;  %v5390_v27 = vadd.f32 %v5282_v38, %v5227_v36  ;;  %v1684_v2 = vadd.f32 %v5231_v54, %v1600_v7  ;;  %v4414_v36 = vld [vmem:[%s6482_s5 + $0x38] sm:$0xff]  ;;  %v1687_v33 = vadd.f32 %v5246_v32, %v1603_v47 }
 0x28c   : > { %v1608_v63 = vadd.f32 %v5261_v24, %v1524_v37  ;;  %v1526_v54 = vadd.f32 %v5267_v18, %v5143_v4  ;;  %2546 = vmatpush.bf16.msrb.mxu1 %v4414_v36  ;;  %v1529_v24 = vadd.f32 %v5275_v5, %v5145_v1  ;;  %v5424_v7 = vadd.f32 %v5282_v38, %v5253_v20 }
 0x28d   : > { %v1840_v58 = vadd.f32 %v1839_v17, %v5365_v40  ;;  %v1768_v45 = vadd.f32 %v5259_v42, %v1684_v2  ;;  %v1689_v17 = vadd.f32 %v5255_v22, %v1605_v50  ;;  %v1534_v20 = vadd.f32 %v1533_v16, %v5150_v48 }
 0x28e   : > { %v5265_v3 = vpop.f32.mrf.mxu0  ;;  %v1610_v32 = vadd.f32 %v5269_v60, %v1526_v54  ;;  %v1692_v42 = vadd.f32 %v5263_v43, %v1608_v63  ;;  %v1613_v22 = vadd.f32 %v5277_v11, %v1529_v24 }
 0x28f   : > { %v5332_v59 = vpop.f32.mrf.mxu3  ;;  %v1619_v8 = vpop.f32.mrf.mxu2  ;;  %v1841_v6 = vadd.f32 %v1840_v58, %v5374_v41  ;;  %v1771_v57 = vadd.f32 %v5265_v3, %v1687_v33  ;;  %v1531_v58 = vadd.f32 %v5303_v19, %v5148_v13  ;;  %v5433_v1 = vadd.f32 %v5282_v38, %v1768_v45 }
 0x290   : > { %v1538_v4 = vpop.f32.mrf.mxu1  ;;  %v1694_v3 = vadd.f32 %v5271_v61, %v1610_v32  ;;  %v1618_v19 = vadd.f32 %v1617_v30, %v1534_v20 }
 0x291   : > { %v1842_v55 = vadd.f32 %v1841_v6, %v5382_v44  ;;  %v1615_v47 = vadd.f32 %v5317_v15, %v1531_v58  ;;  %v5441_v13 = vadd.f32 %v5282_v38, %v1771_v57  ;;  %v1536_v6 = vadd.f32 %v1535_v39, %v5153_v14 }
 0x293   : > { %v1843_v52 = vadd.f32 %v1842_v55, %v5390_v27  ;;  %v1699_v16 = vadd.f32 %v5332_v59, %v1615_v47  ;;  %v1620_v37 = vadd.f32 %v1619_v8, %v1536_v6  ;;  %v1539_v55 = vadd.f32 %v1538_v4, %v5155_v10 }
 0x295   : > { %v1844_v18 = vadd.f32 %v1843_v52, %v5399_v56 }
 0x296   : > { %v5273_v49 = vpop.f32.mrf.mxu0 }
 0x297   : > { %v5360_v51 = vpop.f32.mrf.mxu3  ;;  %v1845_v60 = vadd.f32 %v1844_v18, %v5414_v21  ;;  %v1773_v5 = vadd.f32 %v5273_v49, %v1689_v17  ;;  %v1622_v46 = vpop.f32.mrf.mxu2  ;;  %v1697_v49 = vadd.f32 %v5292_v0, %v1613_v22 }
 0x298   : > { %v1702_v30 = vadd.f32 %v5360_v51, %v1618_v19  ;;  %v1623_v39 = vadd.f32 %v1622_v46, %v1539_v55  ;;  %v1540_v62 = vpop.f32.mrf.mxu1  ;;  %v4419_v19 = vld [vmem:[%s6482_s5 + $0x60] sm:$0xff] }
 0x299   : > { %v1846_v43 = vadd.f32 %v1845_v60, %v5424_v7  ;;  %v5448_v48 = vadd.f32 %v5282_v38, %v1773_v5 }
 0x29b   : > { %v1847_v15 = vadd.f32 %v1846_v43, %v5433_v1  ;;  %v4413_v43 = vld [vmem:[%s6482_s5 + $0x30] sm:$0xff] }
 0x29c   : > { %2547 = vmatpush.bf16.msrb.mxu1 %v4413_v43 }
 0x29e   : > { %v5284_v28 = vpop.f32.mrf.mxu0 }
 0x29f   : > { %v1703_v34 = vpop.f32.mrf.mxu3  ;;  %v1776_v11 = vadd.f32 %v5284_v28, %v1692_v42  ;;  %v1848_v28 = vadd.f32 %v1847_v15, %v5441_v13  ;;  %v1624_v54 = vpop.f32.mrf.mxu2  ;;  %v6513_v15 = vld [vmem:[#allocation6_spill] sm:$0xff] }
 0x2a0   : > { %v1704_v8 = vadd.f32 %v1703_v34, %v1620_v37 }
 0x2a1   : > { %v5455_v14 = vadd.f32 %v5282_v38, %v1776_v11  ;;  %v1849_v36 = vadd.f32 %v1848_v28, %v5448_v48  ;;  %v4412_v11 = vld [vmem:[%s6482_s5 + $0x28] sm:$0xff]  ;;  %v6515_v28 = vld [vmem:[#allocation8_spill] sm:$0xff] }
 0x2a2   : > { %2548 = vmatpush.bf16.msrb.mxu1 %v4412_v11 }
 0x2a3   : > { %v1850_v10 = vadd.f32 %v1849_v36, %v5455_v14 }
 0x2a6   : > { %v5319_v35 = vpop.f32.mrf.mxu0 }
 0x2a7   : > { %v1778_v61 = vadd.f32 %v5319_v35, %v1694_v3  ;;  %v1706_v2 = vpop.f32.mrf.mxu3  ;;  %v4421_v3 = vld [vmem:[%s6482_s5 + $0x70] sm:$0xff] }
 0x2a8   : > { %v1707_v52 = vadd.f32 %v1706_v2, %v1623_v39  ;;  %2590 = vmatpush.bf16.msrb.mxu2 %v4421_v3 }
 0x2a9   : > { %v5461_v35 = vadd.f32 %v5282_v38, %v1778_v61 }
 0x2ab   : > { %v1851_v45 = vadd.f32 %v1850_v10, %v5461_v35 }
 0x2ae   : > { %v5343_v29 = vpop.f32.mrf.mxu0 }
 0x2af   : > { %v1781_v0 = vadd.f32 %v5343_v29, %v1697_v49  ;;  %v1541_v29 = vadd.f32 %v1540_v62, %v5158_v25  ;;  %v1708_v18 = vpop.f32.mrf.mxu3 }
 0x2b1   : > { %v5466_v33 = vadd.f32 %v5282_v38, %v1781_v0  ;;  %v1625_v24 = vadd.f32 %v1624_v54, %v1541_v29  ;;  %v6517_v29 = vld [vmem:[#allocation10_spill] sm:$0xff] }
 0x2b3   : > { %v1709_v57 = vadd.f32 %v1708_v18, %v1625_v24  ;;  %v6518_v24 = vld [vmem:[#allocation11_spill] sm:$0xff] }
 0x2b6   : > { %v5367_v9 = vpop.f32.mrf.mxu0 }
 0x2b7   : > { %v1783_v59 = vadd.f32 %v5367_v9, %v1699_v16  ;;  %v1852_v9 = vadd.f32 %v1851_v45, %v5466_v33  ;;  %v6514_v16 = vld [vmem:[#allocation7_spill] sm:$0xff] }
 0x2b9   : > { %v5471_v17 = vadd.f32 %v5282_v38, %v1783_v59 }
 0x2be   : > { %v1785_v23 = vpop.f32.mrf.mxu0 }
 0x2bf   : > { %v1786_v63 = vadd.f32 %v1785_v23, %v1702_v30  ;;  %v1853_v23 = vadd.f32 %v1852_v9, %v5471_v17 }
 0x2c1   : > { %v5475_v34 = vadd.f32 %v5282_v38, %v1786_v63 }
 0x2c3   : > { %v1854_v42 = vadd.f32 %v1853_v23, %v5475_v34  ;;  %v6519_v23 = vld [vmem:[#allocation12_spill] sm:$0xff] }
 0x2c6   : > { %v1787_v50 = vpop.f32.mrf.mxu0 }
 0x2c7   : > { %v1788_v32 = vadd.f32 %v1787_v50, %v1704_v8  ;;  %v6516_v8 = vld [vmem:[#allocation9_spill] sm:$0xff] }
 0x2c9   : > { %v5479_v25 = vadd.f32 %v5282_v38, %v1788_v32 }
 0x2cb   : > { %v1855_v5 = vadd.f32 %v1854_v42, %v5479_v25 }
 0x2ce   : > { %v1790_v51 = vpop.f32.mrf.mxu0 }
 0x2cf   : > { %v1791_v4 = vadd.f32 %v1790_v51, %v1707_v52 }
 0x2d1   : > { %v5483_v58 = vadd.f32 %v5282_v38, %v1791_v4 }
 0x2d3   : > { %v1856_v20 = vadd.f32 %v1855_v5, %v5483_v58 }
 0x2d6   : > { %v1792_v22 = vpop.f32.mrf.mxu0 }
 0x2d7   : > { %v1793_v60 = vadd.f32 %v1792_v22, %v1709_v57  ;;  %v6520_v22 = vld [vmem:[#allocation13_spill] sm:$0xff] }
 0x2d9   : > { %v5487_v47 = vadd.f32 %v5282_v38, %v1793_v60  ;;  %v4420_v38 = vld [vmem:[%s6482_s5 + $0x68] sm:$0xff] }
 0x2da   : > { %2591 = vmatpush.bf16.msrb.mxu2 %v4420_v38 }
 0x2db   : > { %v1857_v46 = vadd.f32 %v1856_v20, %v5487_v47 }
 0x2dd   : > { %1858 = vadd.xlane.f32.xlu0 %v1857_v46 }
 0x2de   : > { %2592 = vmatpush.bf16.msrb.mxu2 %v4419_v19 }
 0x350   : > { %v1859_v6 = vpop.xlane.xlu0 %1858 }
 0x351   : > { %v5506_v50 = vmul.f32 0.00026041668, %v1859_v6 }
 0x353   : > { %v5510_v49 = vsub.f32 %v5297_v53, %v5506_v50  ;;  %v5514_v61 = vsub.f32 %v6513_v15, %v5506_v50  ;;  %v5518_v37 = vsub.f32 %v6514_v16, %v5506_v50  ;;  %v5526_v0 = vsub.f32 %v6515_v28, %v5506_v50 }
 0x354   : > { %v5530_v53 = vsub.f32 %v5315_v26, %v5506_v50  ;;  %v5536_v62 = vsub.f32 %v5324_v31, %v5506_v50  ;;  %v5542_v10 = vsub.f32 %v6516_v8, %v5506_v50  ;;  %v5548_v54 = vsub.f32 %v6517_v29, %v5506_v50  ;;  %v4429_v29 = vld [vmem:[%s6482_s5 + $0xb0] sm:$0xff] }
 0x355   : > { %v1891_v2 = vmul.f32 %v5510_v49, %v5510_v49  ;;  %v1892_v55 = vmul.f32 %v5514_v61, %v5514_v61  ;;  %v1893_v30 = vmul.f32 %v5518_v37, %v5518_v37  ;;  %v1894_v36 = vmul.f32 %v5526_v0, %v5526_v0 }
 0x356   : > { %v1895_v26 = vmul.f32 %v5530_v53, %v5530_v53  ;;  %v1896_v31 = vmul.f32 %v5536_v62, %v5536_v62  ;;  %v5554_v52 = vsub.f32 %v5341_v12, %v5506_v50  ;;  %v1897_v45 = vmul.f32 %v5542_v10, %v5542_v10 }
 0x357   : > { %v1921_v39 = vadd.f32 %v1892_v55, %v1891_v2  ;;  %v5560_v9 = vsub.f32 %v6518_v24, %v5506_v50  ;;  %v1898_v4 = vmul.f32 %v5548_v54, %v5548_v54  ;;  %v5566_v57 = vsub.f32 %v6519_v23, %v5506_v50 }
 0x358   : > { %v1899_v12 = vmul.f32 %v5554_v52, %v5554_v52  ;;  %v5572_v60 = vsub.f32 %v6520_v22, %v5506_v50  ;;  %v5578_v46 = vsub.f32 %v5365_v40, %v5506_v50  ;;  %v5584_v38 = vsub.f32 %v5374_v41, %v5506_v50 }
 0x359   : > { %v1922_v59 = vadd.f32 %v1921_v39, %v1893_v30  ;;  %v1900_v5 = vmul.f32 %v5560_v9, %v5560_v9  ;;  %v1901_v3 = vmul.f32 %v5566_v57, %v5566_v57  ;;  %v5590_v6 = vsub.f32 %v5382_v44, %v5506_v50 }
 0x35a   : > { %v1902_v11 = vmul.f32 %v5572_v60, %v5572_v60  ;;  %v1903_v40 = vmul.f32 %v5578_v46, %v5578_v46  ;;  %v5596_v16 = vsub.f32 %v5390_v27, %v5506_v50  ;;  %v1904_v41 = vmul.f32 %v5584_v38, %v5584_v38 }
 0x35b   : > { %v1923_v63 = vadd.f32 %v1922_v59, %v1894_v36  ;;  %v5602_v55 = vsub.f32 %v5399_v56, %v5506_v50  ;;  %v1905_v44 = vmul.f32 %v5590_v6, %v5590_v6  ;;  %v5608_v30 = vsub.f32 %v5414_v21, %v5506_v50  ;;  %v4411_v36 = vld [vmem:[%s6482_s5 + $0x20] sm:$0xff]  ;;  %v4430_v56 = vld [vmem:[%s6482_s5 + $0xb8] sm:$0xff] }
 0x35c   : > { %v1906_v27 = vmul.f32 %v5596_v16, %v5596_v16  ;;  %v4418_v59 = vld [vmem:[%s6482_s5 + $0x58] sm:$0xff]  ;;  %v5623_v21 = vsub.f32 %v5424_v7, %v5506_v50  ;;  %2549 = vmatpush.bf16.msrb.mxu1 %v4411_v36  ;;  %2632 = vmatpush.bf16.msrb.mxu3 %v4430_v56  ;;  %v4417_v7 = vld [vmem:[%s6482_s5 + $0x50] sm:$0xff]  ;;  %v5659_v23 = vsub.f32 %v5448_v48, %v5506_v50  ;;  %v4427_v48 = vld [vmem:[%s6482_s5 + $0xa0] sm:$0xff] }
 0x35d   : > { %v1924_v51 = vadd.f32 %v1923_v63, %v1895_v26  ;;  %v1907_v8 = vmul.f32 %v5602_v55, %v5602_v55  ;;  %v4410_v63 = vld [vmem:[%s6482_s5 + $0x18] sm:$0xff]  ;;  %2593 = vmatpush.bf16.msrb.mxu2 %v4418_v59  ;;  %v5665_v22 = vsub.f32 %v5455_v14, %v5506_v50  ;;  %v5707_v36 = vsub.f32 %v5483_v58, %v5506_v50 }
 0x35e   : > { %v1909_v24 = vmul.f32 %v5623_v21, %v5623_v21  ;;  %v1912_v14 = vmul.f32 %v5659_v23, %v5659_v23  ;;  %v1890_v59 = vsub.f32 %v5487_v47, %v5506_v50  ;;  %v4426_v58 = vld [vmem:[%s6482_s5 + $0x98] sm:$0xff]  ;;  %v4425_v47 = vld [vmem:[%s6482_s5 + $0x90] sm:$0xff] }
 0x35f   : > { %v1925_v32 = vadd.f32 %v1924_v51, %v1896_v31  ;;  %v5638_v31 = vsub.f32 %v5433_v1, %v5506_v50  ;;  %v1908_v51 = vmul.f32 %v5608_v30, %v5608_v30  ;;  %v4428_v1 = vld [vmem:[%s6482_s5 + $0xa8] sm:$0xff] }
 0x360   : > { %2550 = vmatpush.bf16.msrb.mxu1 %v4410_v63  ;;  %2633 = vmatpush.bf16.msrb.mxu3 %v4429_v29  ;;  %v1920_v29 = vmul.f32 %v1890_v59, %v1890_v59 }
 0x361   : > { %v1926_v18 = vadd.f32 %v1925_v32, %v1897_v45  ;;  %v5644_v32 = vsub.f32 %v5441_v13, %v5506_v50  ;;  %2594 = vmatpush.bf16.msrb.mxu2 %v4417_v7  ;;  %v4416_v13 = vld [vmem:[%s6482_s5 + $0x48] sm:$0xff] }
 0x363   : > { %v1927_v42 = vadd.f32 %v1926_v18, %v1898_v4  ;;  %v4409_v18 = vld [vmem:[%s6482_s5 + $0x10] sm:$0xff] }
 0x364   : > { %2551 = vmatpush.bf16.msrb.mxu1 %v4409_v18  ;;  %2634 = vmatpush.bf16.msrb.mxu3 %v4428_v1 }
 0x365   : > { %v1928_v20 = vadd.f32 %v1927_v42, %v1899_v12  ;;  %v1910_v12 = vmul.f32 %v5638_v31, %v5638_v31  ;;  %2595 = vmatpush.bf16.msrb.mxu2 %v4416_v13  ;;  %v4446_v13 = vld [vmem:[%s6482_s5 + $0x138] sm:$0xff] }
 0x367   : > { %v1929_v43 = vadd.f32 %v1928_v20, %v1900_v5  ;;  %v1911_v5 = vmul.f32 %v5644_v32, %v5644_v32 }
 0x368   : > { %2635 = vmatpush.bf16.msrb.mxu3 %v4427_v48 }
 0x369   : > { %v1930_v19 = vadd.f32 %v1929_v43, %v1901_v3  ;;  %v4408_v3 = vld [vmem:[%s6482_s5 + $0x8] sm:$0xff]  ;;  %v5677_v43 = vsub.f32 %v5461_v35, %v5506_v50 }
 0x36a   : > { %2552 = vmatpush.bf16.msrb.mxu1 %v4408_v3 }
 0x36b   : > { %v1931_v15 = vadd.f32 %v1930_v19, %v1902_v11  ;;  %v5683_v19 = vsub.f32 %v5466_v33, %v5506_v50  ;;  %v1914_v35 = vmul.f32 %v5677_v43, %v5677_v43 }
 0x36c   : > { %2636 = vmatpush.bf16.msrb.mxu3 %v4426_v58 }
 0x36d   : > { %v1932_v2 = vadd.f32 %v1931_v15, %v1903_v40  ;;  %v1913_v40 = vmul.f32 %v5665_v22, %v5665_v22  ;;  %v1915_v33 = vmul.f32 %v5683_v19, %v5683_v19 }
 0x36f   : > { %v1933_v28 = vadd.f32 %v1932_v2, %v1904_v41  ;;  %v5689_v41 = vsub.f32 %v5471_v17, %v5506_v50 }
 0x370   : > { %2637 = vmatpush.bf16.msrb.mxu3 %v4425_v47 }
 0x371   : > { %v1934_v39 = vadd.f32 %v1933_v28, %v1905_v44  ;;  %v5695_v44 = vsub.f32 %v5475_v34, %v5506_v50  ;;  %v1916_v17 = vmul.f32 %v5689_v41, %v5689_v41 }
 0x373   : > { %v1935_v26 = vadd.f32 %v1934_v39, %v1906_v27  ;;  %v5701_v27 = vsub.f32 %v5479_v25, %v5506_v50  ;;  %v1917_v34 = vmul.f32 %v5695_v44, %v5695_v44  ;;  %v4415_v50 = vld [vmem:[%s6482_s5 + $0x40] sm:$0xff] }
 0x374   : > { %2596 = vmatpush.bf16.msrb.mxu2 %v4415_v50 }
 0x375   : > { %v1936_v45 = vadd.f32 %v1935_v26, %v1907_v8  ;;  %v1918_v8 = vmul.f32 %v5701_v27, %v5701_v27  ;;  %v1919_v26 = vmul.f32 %v5707_v36, %v5707_v36 }
 0x377   : > { %v1937_v4 = vadd.f32 %v1936_v45, %v1908_v51  ;;  %v4407_v45 = vld [vmem:[%s6482_s5] sm:$0xff] }
 0x378   : > { %2553 = vmatpush.bf16.msrb.mxu1 %v4407_v45  ;;  %2718 = vmatpush.bf16.msra.mxu2 %v4446_v13 }
 0x379   : > { %v1938_v42 = vadd.f32 %v1937_v4, %v1909_v24  ;;  %v4424_v24 = vld [vmem:[%s6482_s5 + $0x88] sm:$0xff]  ;;  %v4423_v4 = vld [vmem:[%s6482_s5 + $0x80] sm:$0xff] }
 0x37a   : > { %2638 = vmatpush.bf16.msrb.mxu3 %v4424_v24 }
 0x37b   : > { %v1939_v20 = vadd.f32 %v1938_v42, %v1910_v12  ;;  %v4438_v12 = vld [vmem:[%s6482_s5 + $0xf8] sm:$0xff] }
 0x37c   : > { %2675 = vmatpush.bf16.msra.mxu1 %v4438_v12 }
 0x37d   : > { %v1940_v11 = vadd.f32 %v1939_v20, %v1911_v5  ;;  %v4445_v5 = vld [vmem:[%s6482_s5 + $0x130] sm:$0xff] }
 0x37e   : > { %2639 = vmatpush.bf16.msrb.mxu3 %v4423_v4  ;;  %2719 = vmatpush.bf16.msra.mxu2 %v4445_v5 }
 0x37f   : > { %v1941_v15 = vadd.f32 %v1940_v11, %v1912_v14 }
 0x381   : > { %v1942_v2 = vadd.f32 %v1941_v15, %v1913_v40  ;;  %v4437_v40 = vld [vmem:[%s6482_s5 + $0xf0] sm:$0xff]  ;;  %v4444_v15 = vld [vmem:[%s6482_s5 + $0x128] sm:$0xff] }
 0x382   : > { %2676 = vmatpush.bf16.msra.mxu1 %v4437_v40  ;;  %2720 = vmatpush.bf16.msra.mxu2 %v4444_v15  ;;  %v4436_v15 = vld [vmem:[%s6482_s5 + $0xe8] sm:$0xff] }
 0x383   : > { %v1943_v28 = vadd.f32 %v1942_v2, %v1914_v35  ;;  %v5753_v2 = vld [vmem:[%s6480_s3] ss:$0 sm:$0xff] }
 0x385   : > { %v1944_v39 = vadd.f32 %v1943_v28, %v1915_v33 }
 0x386   : > { %2677 = vmatpush.bf16.msra.mxu1 %v4436_v15  ;;  %v4442_v15 = vld [vmem:[%s6482_s5 + $0x118] sm:$0xff] }
 0x387   : > { %v1945_v56 = vadd.f32 %v1944_v39, %v1916_v17  ;;  %v5764_v39 = vld [vmem:[%s6481_s4] ss:$0 sm:$0xff] }
 0x389   : > { %v1946_v25 = vadd.f32 %v1945_v56, %v1917_v34 }
 0x38b   : > { %v1947_v63 = vadd.f32 %v1946_v25, %v1918_v8 }
 0x38d   : > { %v1948_v7 = vadd.f32 %v1947_v63, %v1919_v26 }
 0x38f   : > { %v1949_v51 = vadd.f32 %v1948_v7, %v1920_v29 }
 0x391   : > { %1950 = vadd.xlane.f32.xlu0 %v1949_v51 }
 0x404   : > { %v1951_v18 = vpop.xlane.xlu0 %1950 }
 0x405   : > { %v1952_v1 = vmul.f32 0.00026041668, %v1951_v18 }
 0x407   : > { %v1953_v42 = vadd.f32 1e-05, %v1952_v1 }
 0x409   : > { %4538 = vrsqrt.f32 %v1953_v42  ;;  %vm1960_vm1 = vweird.f32 %v1953_v42 }
 0x40f   : > { %v4539_v20 = vpop.eup %4538 }
 0x410   : > { %v1955_v3 = vmul.f32 %v4539_v20, %v1953_v42  ;;  %vm1961_vm0 = vweird.f32 %v4539_v20 }
 0x411   : > { %vm1962_vm2 = vmor %vm1960_vm1, %vm1961_vm0 }
 0x412   : > { %v1956_v48 = vmul.f32 %v4539_v20, %v1955_v3 }
 0x414   : > { %v1957_v14 = vmul.f32 0.5, %v1956_v48 }
 0x416   : > { %v1958_v11 = vsub.f32 1.5, %v1957_v14 }
 0x418   : > { %v1959_v35 = vmul.f32 %v4539_v20, %v1958_v11 }
 0x41a   : > { %v5755_v33 = vsel %vm1962_vm2, %v4539_v20, %v1959_v35  ;;  %v4443_v35 = vld [vmem:[%s6482_s5 + $0x120] sm:$0xff] }
 0x41b   : > { %v1964_v28 = vmul.f32 %v5755_v33, %v5510_v49  ;;  %v1966_v17 = vmul.f32 %v5755_v33, %v5518_v37  ;;  %v1965_v34 = vmul.f32 %v5755_v33, %v5514_v61  ;;  %v1967_v56 = vmul.f32 %v5755_v33, %v5526_v0  ;;  %2721 = vmatpush.bf16.msra.mxu2 %v4443_v35  ;;  %v4434_v35 = vld [vmem:[%s6482_s5 + $0xd8] sm:$0xff] }
 0x41c   : > { %v1968_v59 = vmul.f32 %v5755_v33, %v5530_v53  ;;  %v1970_v49 = vmul.f32 %v5755_v33, %v5542_v10  ;;  %v1969_v37 = vmul.f32 %v5755_v33, %v5536_v62  ;;  %v1971_v8 = vmul.f32 %v5755_v33, %v5548_v54 }
 0x41d   : > { %v1998_v25 = vmul.f32 %v5753_v2, %v1964_v28  ;;  %v2000_v26 = vmul.f32 %v5753_v2, %v1966_v17  ;;  %v1999_v61 = vmul.f32 %v5753_v2, %v1965_v34  ;;  %v2001_v0 = vmul.f32 %v5753_v2, %v1967_v56 }
 0x41e   : > { %v2002_v63 = vmul.f32 %v5753_v2, %v1968_v59  ;;  %v2003_v53 = vmul.f32 %v5753_v2, %v1969_v37  ;;  %v2004_v51 = vmul.f32 %v5753_v2, %v1970_v49  ;;  %v2005_v58 = vmul.f32 %v5753_v2, %v1971_v8 }
 0x41f   : > { %v2032_v10 = vadd.f32 %v5764_v39, %v1998_v25  ;;  %v2034_v29 = vadd.f32 %v5764_v39, %v2000_v26  ;;  %v2033_v62 = vadd.f32 %v5764_v39, %v1999_v61  ;;  %v2035_v54 = vadd.f32 %v5764_v39, %v2001_v0  ;;  %2722 = vmatpush.bf16.msra.mxu2 %v4442_v15 }
 0x420   : > { %v2036_v7 = vadd.f32 %v5764_v39, %v2002_v63  ;;  %v2037_v47 = vadd.f32 %v5764_v39, %v2003_v53  ;;  %v1972_v42 = vmul.f32 %v5755_v33, %v5554_v52  ;;  %v2038_v20 = vadd.f32 %v5764_v39, %v2004_v51 }
 0x421   : > { %v2062_v50 = vmax.f32 %v2032_v10, 0.0  ;;  %v2064_v45 = vmax.f32 %v2034_v29, 0.0  ;;  %v2063_v24 = vmax.f32 %v2033_v62, 0.0  ;;  %v2065_v4 = vmax.f32 %v2035_v54, 0.0 }
 0x422   : > { %v2066_v18 = vmax.f32 %v2036_v7, 0.0  ;;  %v2067_v1 = vmax.f32 %v2037_v47, 0.0  ;;  %v5798_v48 = vadd.f32 %v5764_v39, %v2005_v58  ;;  %v2006_v14 = vmul.f32 %v5753_v2, %v1972_v42 }
 0x423   : > { %v2191_v13 = vpack.c.bf16 %v2064_v45, %v2062_v50  ;;  %v2192_v12 = vpack.c.bf16 %v2065_v4, %v2063_v24  ;;  %v1973_v11 = vmul.f32 %v5755_v33, %v5560_v9  ;;  %v1974_v40 = vmul.f32 %v5755_v33, %v5566_v57  ;;  %v4435_v57 = vld [vmem:[%s6482_s5 + $0xe0] sm:$0xff] }
 0x424   : > { %v2193_v5 = vpack.c.bf16 %v2066_v18, %v2064_v45  ;;  %v5795_v3 = vpack.c.bf16 %v2067_v1, %v2065_v4  ;;  %v1975_v52 = vmul.f32 %v5755_v33, %v5572_v60  ;;  %v5814_v28 = vadd.f32 %v5764_v39, %v2006_v14  ;;  %2678 = vmatpush.bf16.msra.mxu1 %v4435_v57 }
 0x425   : > { %2554 = vmatmul.bf16.vlgmr.msrb.gmra.mxu1 %v2191_v13  ;;  %2597 = vmatmul.bf16.vlgmr.msrb.gmra.mxu2 %v2192_v12  ;;  %v2007_v9 = vmul.f32 %v5753_v2, %v1973_v11  ;;  %v2068_v17 = vmax.f32 %v2038_v20, 0.0  ;;  %v1977_v60 = vmul.f32 %v5755_v33, %v5584_v38  ;;  %v2069_v34 = vmax.f32 %v5798_v48, 0.0 }
 0x426   : > { %2640 = vmatmul.bf16.vlgmr.msrb.gmra.mxu3 %v2193_v5  ;;  %v1979_v56 = vmul.f32 %v5755_v33, %v5596_v16  ;;  %v2070_v59 = vmax.f32 %v5814_v28, 0.0  ;;  %v2008_v49 = vmul.f32 %v5753_v2, %v1974_v40  ;;  %v2009_v37 = vmul.f32 %v5753_v2, %v1975_v52  ;;  %v4433_v28 = vld [vmem:[%s6482_s5 + $0xd0] sm:$0xff] }
 0x427   : > { %v1976_v8 = vmul.f32 %v5755_v33, %v5578_v46  ;;  %v5831_v25 = vadd.f32 %v5764_v39, %v2007_v9  ;;  %v5833_v26 = vpack.c.bf16 %v2068_v17, %v2066_v18  ;;  %v2011_v38 = vmul.f32 %v5753_v2, %v1977_v60 }
 0x428   : > { %v2197_v16 = vpack.c.bf16 %v2069_v34, %v2067_v1  ;;  %v2013_v61 = vmul.f32 %v5753_v2, %v1979_v56  ;;  %v1982_v0 = vmul.f32 %v5755_v33, %v5623_v21  ;;  %v1981_v63 = vmul.f32 %v5755_v33, %v5608_v30  ;;  %2679 = vmatpush.bf16.msra.mxu1 %v4434_v35 }
 0x429   : > { %v2198_v46 = vpack.c.bf16 %v2070_v59, %v2068_v17  ;;  %v5846_v53 = vadd.f32 %v5764_v39, %v2008_v49  ;;  %v5849_v10 = vadd.f32 %v5764_v39, %v2009_v37  ;;  %v2010_v29 = vmul.f32 %v5753_v2, %v1976_v8 }
 0x42a   : > { %v2071_v62 = vmax.f32 %v5831_v25, 0.0  ;;  %v2016_v54 = vmul.f32 %v5753_v2, %v1982_v0  ;;  %v1983_v21 = vmul.f32 %v5755_v33, %v5638_v31  ;;  %v2015_v30 = vmul.f32 %v5753_v2, %v1981_v63 }
 0x42b   : > { %v5858_v7 = vadd.f32 %v5764_v39, %v2011_v38  ;;  %v1984_v51 = vmul.f32 %v5755_v33, %v5644_v32  ;;  %v1986_v58 = vmul.f32 %v5755_v33, %v5665_v22  ;;  %v1985_v47 = vmul.f32 %v5755_v33, %v5659_v23 }
 0x42c   : > { %v5867_v50 = vadd.f32 %v5764_v39, %v2013_v61  ;;  %v5870_v45 = vadd.f32 %v5764_v39, %v2016_v54  ;;  %v2017_v31 = vmul.f32 %v5753_v2, %v1983_v21  ;;  %v2049_v24 = vadd.f32 %v5764_v39, %v2015_v30  ;;  %2680 = vmatpush.bf16.msra.mxu1 %v4433_v28 }
 0x42d   : > { %v2018_v4 = vmul.f32 %v5753_v2, %v1984_v51  ;;  %v2020_v32 = vmul.f32 %v5753_v2, %v1986_v58  ;;  %v1987_v22 = vmul.f32 %v5755_v33, %v5677_v43  ;;  %v2019_v18 = vmul.f32 %v5753_v2, %v1985_v47 }
 0x42e   : > { %v2073_v23 = vmax.f32 %v5849_v10, 0.0  ;;  %v2080_v1 = vmax.f32 %v5870_v45, 0.0  ;;  %v2051_v13 = vadd.f32 %v5764_v39, %v2017_v31  ;;  %v2079_v12 = vmax.f32 %v2049_v24, 0.0 }
 0x42f   : > { %v2052_v42 = vadd.f32 %v5764_v39, %v2018_v4  ;;  %v2054_v5 = vadd.f32 %v5764_v39, %v2020_v32  ;;  %v2021_v20 = vmul.f32 %v5753_v2, %v1987_v22  ;;  %v2053_v14 = vadd.f32 %v5764_v39, %v2019_v18 }
 0x430   : > { %v2075_v43 = vmax.f32 %v5858_v7, 0.0  ;;  %v2077_v11 = vmax.f32 %v5867_v50, 0.0  ;;  %v2081_v40 = vmax.f32 %v2051_v13, 0.0  ;;  %v1988_v52 = vmul.f32 %v5755_v33, %v5683_v19  ;;  %v4439_v50 = vld [vmem:[%s6482_s5 + $0x100] sm:$0xff] }
 0x431   : > { %v2082_v9 = vmax.f32 %v2052_v42, 0.0  ;;  %v2084_v17 = vmax.f32 %v2054_v5, 0.0  ;;  %v2055_v57 = vadd.f32 %v5764_v39, %v2021_v20  ;;  %v2083_v60 = vmax.f32 %v2053_v14, 0.0  ;;  %v4441_v14 = vld [vmem:[%s6482_s5 + $0x110] sm:$0xff] }
 0x432   : > { %v5898_v56 = vpack.c.bf16 %v2081_v40, %v2079_v12  ;;  %v2022_v49 = vmul.f32 %v5753_v2, %v1988_v52  ;;  %v1989_v19 = vmul.f32 %v5755_v33, %v5689_v41  ;;  %v1990_v37 = vmul.f32 %v5755_v33, %v5695_v44  ;;  %2723 = vmatpush.bf16.msra.mxu2 %v4441_v14 }
 0x433   : > { %v2213_v8 = vpack.c.bf16 %v2082_v9, %v2080_v1  ;;  %v5907_v38 = vpack.c.bf16 %v2084_v17, %v2082_v9  ;;  %v5913_v61 = vpack.c.bf16 %v2071_v62, %v2069_v34  ;;  %v5920_v63 = vpack.c.bf16 %v2075_v43, %v2073_v23 }
 0x434   : > { %v2056_v0 = vadd.f32 %v5764_v39, %v2022_v49  ;;  %v2023_v41 = vmul.f32 %v5753_v2, %v1989_v19  ;;  %v2024_v44 = vmul.f32 %v5753_v2, %v1990_v37  ;;  %v5924_v10 = vpack.c.bf16 %v2079_v12, %v2077_v11 }
 0x435   : > { %2559 = vmatmul.bf16.gmra.mxu1 %v5833_v26  ;;  %2602 = vmatmul.bf16.gmra.mxu2 %v2197_v16  ;;  %v2085_v16 = vmax.f32 %v2055_v57, 0.0  ;;  %v5926_v48 = vpack.c.bf16 %v2083_v60, %v2081_v40  ;;  %v1991_v34 = vmul.f32 %v5755_v33, %v5701_v27  ;;  %v1992_v51 = vmul.f32 %v5755_v33, %v5707_v36 }
 0x436   : > { %2645 = vmatmul.bf16.gmra.mxu3 %v2198_v46  ;;  %v5930_v54 = vmax.f32 %v2056_v0, 0.0  ;;  %v2057_v21 = vadd.f32 %v5764_v39, %v2023_v41  ;;  %v2058_v30 = vadd.f32 %v5764_v39, %v2024_v44  ;;  %v2044_v58 = vadd.f32 %v5764_v39, %v2010_v29 }
 0x437   : > { %v2217_v46 = vpack.c.bf16 %v2085_v16, %v2083_v60  ;;  %v2025_v47 = vmul.f32 %v5753_v2, %v1991_v34  ;;  %v2026_v32 = vmul.f32 %v5753_v2, %v1992_v51  ;;  %v2072_v22 = vmax.f32 %v5846_v53, 0.0 }
 0x438   : > { %v2218_v31 = vpack.c.bf16 %v5930_v54, %v2084_v17  ;;  %v2087_v24 = vmax.f32 %v2057_v21, 0.0  ;;  %v5939_v4 = vmax.f32 %v2058_v30, 0.0  ;;  %v2074_v29 = vmax.f32 %v2044_v58, 0.0 }
 0x439   : > { %v5942_v27 = vadd.f32 %v5764_v39, %v2025_v47  ;;  %v5951_v13 = vadd.f32 %v5764_v39, %v2026_v32  ;;  %v2200_v12 = vpack.c.bf16 %v2072_v22, %v2070_v59  ;;  %v2202_v42 = vpack.c.bf16 %v2073_v23, %v2071_v62 }
 0x43a   : > { %v5946_v18 = vpack.c.bf16 %v2087_v24, %v2085_v16  ;;  %v2220_v36 = vpack.c.bf16 %v5939_v4, %v5930_v54  ;;  %v1978_v5 = vmul.f32 %v5755_v33, %v5590_v6  ;;  %v2203_v20 = vpack.c.bf16 %v2074_v29, %v2072_v22 }
 0x43b   : > { %v1980_v53 = vmul.f32 %v5755_v33, %v5602_v55  ;;  %v2207_v40 = vpack.c.bf16 %v2077_v11, %v2075_v43  ;;  %v4431_v43 = vld [vmem:[%s6482_s5 + $0xc0] sm:$0xff]  ;;  %v2221_v45 = vpack.c.bf16 %v5930_v54, %v5930_v54  ;;  %v2223_v11 = vpack.c.bf16 %v5939_v4, %v5939_v4 }
 0x43c   : > { %v2012_v59 = vmul.f32 %v5753_v2, %v1978_v5  ;;  %v2089_v28 = vmax.f32 %v5942_v27, 0.0 }
 0x43d   : > { %v2014_v25 = vmul.f32 %v5753_v2, %v1980_v53  ;;  %v4440_v2 = vld [vmem:[%s6482_s5 + $0x108] sm:$0xff] }
 0x43e   : > { %v2046_v6 = vadd.f32 %v5764_v39, %v2012_v59  ;;  %2724 = vmatpush.bf16.msra.mxu2 %v4440_v2  ;;  %v2090_v59 = vmax.f32 %v5951_v13, 0.0 }
 0x43f   : > { %v2048_v55 = vadd.f32 %v5764_v39, %v2014_v25  ;;  %v4432_v39 = vld [vmem:[%s6482_s5 + $0xc8] sm:$0xff] }
 0x440   : > { %v2076_v33 = vmax.f32 %v2046_v6, 0.0  ;;  %2681 = vmatpush.bf16.msra.mxu1 %v4432_v39 }
 0x441   : > { %v2078_v62 = vmax.f32 %v2048_v55, 0.0  ;;  %v2224_v55 = vpack.c.bf16 %v2089_v28, %v2089_v28  ;;  %v4532_v28 = vld [vmem:[%s6483_s6] ss:$0 sm:$0xff] }
 0x442   : > { %v2205_v23 = vpack.c.bf16 %v2076_v33, %v2074_v29  ;;  %2725 = vmatpush.bf16.msra.mxu2 %v4439_v50 }
 0x443   : > { %v2208_v52 = vpack.c.bf16 %v2078_v62, %v2076_v33  ;;  %v2210_v7 = vpack.c.bf16 %v2080_v1, %v2078_v62  ;;  %v2222_v1 = vpack.c.bf16 %v2087_v24, %v2087_v24  ;;  %v2225_v33 = vpack.c.bf16 %v2090_v59, %v2090_v59 }
 0x444   : > { %2682 = vmatpush.bf16.msra.mxu1 %v4431_v43 }
 0x445   : > { %2564 = vmatmul.bf16.gmra.mxu1 %v2200_v12  ;;  %2607 = vmatmul.bf16.gmra.mxu2 %v2202_v42 }
 0x446   : > { %2650 = vmatmul.bf16.gmra.mxu3 %v2203_v20 }
 0x455   : > { %2569 = vmatmul.bf16.gmra.mxu1 %v2205_v23  ;;  %2612 = vmatmul.bf16.gmra.mxu2 %v2207_v40 }
 0x456   : > { %2655 = vmatmul.bf16.gmra.mxu3 %v2208_v52 }
 0x465   : > { %2574 = vmatmul.bf16.gmra.mxu1 %v2210_v7  ;;  %2617 = vmatmul.bf16.gmra.mxu2 %v5898_v56 }
 0x466   : > { %2660 = vmatmul.bf16.gmra.mxu3 %v2213_v8 }
 0x475   : > { %2579 = vmatmul.bf16.gmra.mxu1 %v5907_v38  ;;  %2622 = vmatmul.bf16.gmra.mxu2 %v2217_v46 }
 0x476   : > { %2665 = vmatmul.bf16.gmra.mxu3 %v2218_v31 }
 0x485   : > { %2584 = vmatmul.bf16.gmra.mxu1 %v2221_v45  ;;  %2627 = vmatmul.bf16.gmra.mxu2 %v2222_v1 }
 0x486   : > { %2670 = vmatmul.bf16.gmra.mxu3 %v2223_v11 }
 0x495   : > { %2683 = vmatmul.bf16.vlgmr.msra.gmra.mxu1 %v5795_v3  ;;  %2726 = vmatmul.bf16.vlgmr.msra.gmra.mxu2 %v5833_v26 }
 0x4a2   : > { %v2555_v15 = vpop.f32.mrf.mxu1 }
 0x4a5   : > { %2688 = vmatmul.bf16.gmra.mxu1 %v5913_v61  ;;  %2731 = vmatmul.bf16.gmra.mxu2 %v2200_v12 }
 0x4a8   : > { %v2598_v35 = vpop.f32.mrf.mxu2 }
 0x4a9   : > { %v2599_v9 = vadd.f32 %v2598_v35, %v2555_v15  ;;  %v2641_v17 = vpop.f32.mrf.mxu3 }
 0x4aa   : > { %v2557_v57 = vpop.f32.mrf.mxu1 }
 0x4ab   : > { %v5998_v60 = vadd.f32 %v2641_v17, %v2599_v9 }
 0x4b0   : > { %v2600_v56 = vpop.f32.mrf.mxu2 }
 0x4b1   : > { %v6000_v49 = vadd.f32 %v2600_v56, %v2557_v57  ;;  %v6002_v19 = vpop.f32.mrf.mxu3 }
 0x4b2   : > { %v2560_v37 = vpop.f32.mrf.mxu1 }
 0x4b3   : > { %v2644_v17 = vadd.f32 %v6002_v19, %v6000_v49 }
 0x4b5   : > { %2693 = vmatmul.bf16.gmra.mxu1 %v5920_v63  ;;  %2736 = vmatmul.bf16.gmra.mxu2 %v2205_v23 }
 0x4b8   : > { %v2603_v3 = vpop.f32.mrf.mxu2 }
 0x4b9   : > { %v2604_v26 = vadd.f32 %v2603_v3, %v2560_v37  ;;  %v2646_v8 = vpop.f32.mrf.mxu3 }
 0x4ba   : > { %v2562_v16 = vpop.f32.mrf.mxu1 }
 0x4bb   : > { %v6005_v61 = vadd.f32 %v2646_v8, %v2604_v26 }
 0x4c0   : > { %v2605_v0 = vpop.f32.mrf.mxu2 }
 0x4c1   : > { %v6007_v41 = vadd.f32 %v2605_v0, %v2562_v16  ;;  %v6009_v44 = vpop.f32.mrf.mxu3 }
 0x4c2   : > { %v2565_v46 = vpop.f32.mrf.mxu1 }
 0x4c5   : > { %2698 = vmatmul.bf16.gmra.mxu1 %v5924_v10  ;;  %2741 = vmatmul.bf16.gmra.mxu2 %v2210_v7 }
 0x4c8   : > { %v2608_v34 = vpop.f32.mrf.mxu2 }
 0x4c9   : > { %v2609_v21 = vadd.f32 %v2608_v34, %v2565_v46  ;;  %v2651_v30 = vpop.f32.mrf.mxu3 }
 0x4ca   : > { %v6012_v63 = vpop.f32.mrf.mxu1 }
 0x4cb   : > { %v6014_v51 = vadd.f32 %v2651_v30, %v2609_v21 }
 0x4d0   : > { %v6016_v58 = vpop.f32.mrf.mxu2 }
 0x4d1   : > { %v6018_v47 = vpop.f32.mrf.mxu3 }
 0x4d2   : > { %v2570_v31 = vpop.f32.mrf.mxu1 }
 0x4d5   : > { %2703 = vmatmul.bf16.gmra.mxu1 %v5926_v48  ;;  %2746 = vmatmul.bf16.gmra.mxu2 %v5907_v38 }
 0x4d8   : > { %v2613_v24 = vpop.f32.mrf.mxu2 }
 0x4d9   : > { %v2614_v32 = vadd.f32 %v2613_v24, %v2570_v31  ;;  %v2656_v10 = vpop.f32.mrf.mxu3 }
 0x4da   : > { %v6022_v22 = vpop.f32.mrf.mxu1 }
 0x4db   : > { %v6024_v29 = vadd.f32 %v2656_v10, %v2614_v32 }
 0x4e0   : > { %v6026_v12 = vpop.f32.mrf.mxu2 }
 0x4e1   : > { %v6028_v42 = vpop.f32.mrf.mxu3 }
 0x4e2   : > { %v2575_v5 = vpop.f32.mrf.mxu1 }
 0x4e5   : > { %2708 = vmatmul.bf16.gmra.mxu1 %v5946_v18  ;;  %2751 = vmatmul.bf16.gmra.mxu2 %v2220_v36 }
 0x4e8   : > { %v2618_v48 = vpop.f32.mrf.mxu2 }
 0x4e9   : > { %v2619_v38 = vadd.f32 %v2618_v48, %v2575_v5  ;;  %v2661_v20 = vpop.f32.mrf.mxu3 }
 0x4ea   : > { %v6034_v53 = vpop.f32.mrf.mxu1 }
 0x4eb   : > { %v6036_v14 = vadd.f32 %v2661_v20, %v2619_v38  ;;  %v2649_v38 = vadd.f32 %v6009_v44, %v6007_v41 }
 0x4f0   : > { %v6040_v25 = vpop.f32.mrf.mxu2 }
 0x4f1   : > { %v6042_v6 = vpop.f32.mrf.mxu3 }
 0x4f2   : > { %v2580_v18 = vpop.f32.mrf.mxu1 }
 0x4f5   : > { %2713 = vmatmul.bf16.gmra.mxu1 %v2224_v55  ;;  %2756 = vmatmul.bf16.gmra.mxu2 %v2225_v33  ;;  %v2616_v55 = vadd.f32 %v6026_v12, %v6022_v22 }
 0x4f8   : > { %v2623_v54 = vpop.f32.mrf.mxu2 }
 0x4f9   : > { %v2624_v4 = vadd.f32 %v2623_v54, %v2580_v18  ;;  %v2666_v36 = vpop.f32.mrf.mxu3 }
 0x4fa   : > { %v2582_v62 = vpop.f32.mrf.mxu1 }
 0x4fb   : > { %v6044_v23 = vadd.f32 %v2666_v36, %v2624_v4 }
 0x500   : > { %v2625_v40 = vpop.f32.mrf.mxu2 }
 0x501   : > { %v2626_v52 = vadd.f32 %v2625_v40, %v2582_v62  ;;  %v2668_v27 = vpop.f32.mrf.mxu3  ;;  %v2659_v40 = vadd.f32 %v6028_v42, %v2616_v55 }
 0x502   : > { %v2585_v2 = vpop.f32.mrf.mxu1 }
 0x503   : > { %v6046_v13 = vadd.f32 %v2668_v27, %v2626_v52  ;;  %v2621_v52 = vadd.f32 %v6040_v25, %v6034_v53 }
 0x508   : > { %v2628_v39 = vpop.f32.mrf.mxu2 }
 0x509   : > { %v2629_v7 = vadd.f32 %v2628_v39, %v2585_v2  ;;  %v2671_v50 = vpop.f32.mrf.mxu3 }
 0x50a   : > { %v2587_v43 = vpop.f32.mrf.mxu1 }
 0x50b   : > { %v6048_v45 = vadd.f32 %v2671_v50, %v2629_v7 }
 0x510   : > { %v2630_v1 = vpop.f32.mrf.mxu2 }
 0x511   : > { %v2673_v11 = vpop.f32.mrf.mxu3 }
 0x512   : > { %v2684_v15 = vpop.f32.mrf.mxu1 }
 0x513   : > { %v2685_v35 = vadd.f32 %v2684_v15, %v5998_v60 }
 0x518   : > { %v2727_v9 = vpop.f32.mrf.mxu2 }
 0x519   : > { %v2728_v57 = vadd.f32 %v2727_v9, %v2685_v35 }
 0x51a   : > { %v2686_v56 = vpop.f32.mrf.mxu1 }
 0x51b   : > { %v2687_v37 = vadd.f32 %v2686_v56, %v2644_v17  ;;  %v2765_v44 = vadd.f32 %v4532_v28, %v2728_v57 }
 0x520   : > { %v2729_v3 = vpop.f32.mrf.mxu2 }
 0x521   : > { %v2730_v26 = vadd.f32 %v2729_v3, %v2687_v37 }
 0x522   : > { %v2689_v8 = vpop.f32.mrf.mxu1 }
 0x523   : > { %v2690_v16 = vadd.f32 %v2689_v8, %v6005_v61  ;;  %v2611_v61 = vadd.f32 %v6016_v58, %v6012_v63  ;;  %v2766_v4 = vadd.f32 %v4532_v28, %v2730_v26 }
 0x525   : > { %v2654_v54 = vadd.f32 %v6018_v47, %v2611_v61  ;;  %v2778_v27 = vadd.f32 %v2766_v4, %v2765_v44 }
 0x528   : > { %v2732_v0 = vpop.f32.mrf.mxu2 }
 0x529   : > { %v2733_v59 = vadd.f32 %v2732_v0, %v2690_v16 }
 0x52a   : > { %v2691_v46 = vpop.f32.mrf.mxu1 }
 0x52b   : > { %v2692_v18 = vadd.f32 %v2691_v46, %v2649_v38  ;;  %v2767_v62 = vadd.f32 %v4532_v28, %v2733_v59 }
 0x52d   : > { %v2779_v47 = vadd.f32 %v2778_v27, %v2767_v62 }
 0x530   : > { %v2734_v34 = vpop.f32.mrf.mxu2 }
 0x531   : > { %v2735_v36 = vadd.f32 %v2734_v34, %v2692_v18 }
 0x532   : > { %v2694_v21 = vpop.f32.mrf.mxu1 }
 0x533   : > { %v2695_v41 = vadd.f32 %v2694_v21, %v6014_v51  ;;  %v2768_v2 = vadd.f32 %v4532_v28, %v2735_v36  ;;  %v2664_v51 = vadd.f32 %v6042_v6, %v2621_v52 }
 0x535   : > { %v2780_v11 = vadd.f32 %v2779_v47, %v2768_v2  ;;  %v4450_v47 = vld [vmem:[%s6486_s9 + $0x18] sm:$0xff] }
 0x538   : > { %v2737_v30 = vpop.f32.mrf.mxu2 }
 0x539   : > { %v2738_v63 = vadd.f32 %v2737_v30, %v2695_v41 }
 0x53a   : > { %v2696_v31 = vpop.f32.mrf.mxu1 }
 0x53b   : > { %v2697_v58 = vadd.f32 %v2696_v31, %v2654_v54  ;;  %v2769_v7 = vadd.f32 %v4532_v28, %v2738_v63 }
 0x53d   : > { %v2781_v9 = vadd.f32 %v2780_v11, %v2769_v7 }
 0x540   : > { %v2739_v24 = vpop.f32.mrf.mxu2 }
 0x541   : > { %v2740_v39 = vadd.f32 %v2739_v24, %v2697_v58 }
 0x542   : > { %v2699_v60 = vpop.f32.mrf.mxu1 }
 0x543   : > { %v2700_v22 = vadd.f32 %v2699_v60, %v6024_v29  ;;  %v2770_v15 = vadd.f32 %v4532_v28, %v2740_v39 }
 0x545   : > { %v2782_v57 = vadd.f32 %v2781_v9, %v2770_v15 }
 0x548   : > { %v2742_v32 = vpop.f32.mrf.mxu2 }
 0x549   : > { %v2743_v50 = vadd.f32 %v2742_v32, %v2700_v22 }
 0x54a   : > { %v2701_v10 = vpop.f32.mrf.mxu1 }
 0x54b   : > { %v2702_v43 = vadd.f32 %v2701_v10, %v2659_v40  ;;  %v2771_v53 = vadd.f32 %v4532_v28, %v2743_v50  ;;  %v4451_v40 = vld [vmem:[%s6486_s9 + $0x20] sm:$0xff] }
 0x54d   : > { %v2783_v26 = vadd.f32 %v2782_v57, %v2771_v53 }
 0x550   : > { %v2744_v5 = vpop.f32.mrf.mxu2 }
 0x551   : > { %v2745_v35 = vadd.f32 %v2744_v5, %v2702_v43 }
 0x552   : > { %v2704_v49 = vpop.f32.mrf.mxu1 }
 0x553   : > { %v2705_v42 = vadd.f32 %v2704_v49, %v6036_v14  ;;  %v2772_v56 = vadd.f32 %v4532_v28, %v2745_v35 }
 0x555   : > { %v2784_v46 = vadd.f32 %v2783_v26, %v2772_v56 }
 0x558   : > { %v2747_v19 = vpop.f32.mrf.mxu2 }
 0x559   : > { %v2748_v25 = vadd.f32 %v2747_v19, %v2705_v42 }
 0x55a   : > { %v2706_v48 = vpop.f32.mrf.mxu1 }
 0x55b   : > { %v2707_v17 = vadd.f32 %v2706_v48, %v2664_v51  ;;  %v2773_v8 = vadd.f32 %v4532_v28, %v2748_v25 }
 0x55d   : > { %v2785_v14 = vadd.f32 %v2784_v46, %v2773_v8  ;;  %v4448_v46 = vld [vmem:[%s6486_s9 + $0x8] sm:$0xff] }
 0x560   : > { %v2749_v20 = vpop.f32.mrf.mxu2 }
 0x561   : > { %v2750_v29 = vadd.f32 %v2749_v20, %v2707_v17  ;;  %v4454_v20 = vld [vmem:[%s6486_s9 + $0x38] sm:$0xff] }
 0x562   : > { %v2709_v33 = vpop.f32.mrf.mxu1  ;;  %3282 = vmatpush.bf16.msra.mxu3 %v4454_v20 }
 0x563   : > { %v2710_v37 = vadd.f32 %v2709_v33, %v6044_v23  ;;  %v2774_v34 = vadd.f32 %v4532_v28, %v2750_v29 }
 0x565   : > { %v2786_v31 = vadd.f32 %v2785_v14, %v2774_v34  ;;  %v4447_v14 = vld [vmem:[%s6486_s9] sm:$0xff] }
 0x568   : > { %v2752_v12 = vpop.f32.mrf.mxu2 }
 0x569   : > { %v2753_v16 = vadd.f32 %v2752_v12, %v2710_v37 }
 0x56a   : > { %v2711_v1 = vpop.f32.mrf.mxu1 }
 0x56b   : > { %v2712_v6 = vadd.f32 %v2711_v1, %v6046_v13  ;;  %v2775_v30 = vadd.f32 %v4532_v28, %v2753_v16 }
 0x56d   : > { %v2787_v5 = vadd.f32 %v2786_v31, %v2775_v30  ;;  %v4484_v31 = vld [vmem:[%s6486_s9 + $0x128] sm:$0xff] }
 0x570   : > { %v2754_v3 = vpop.f32.mrf.mxu2 }
 0x571   : > { %v2755_v21 = vadd.f32 %v2754_v3, %v2712_v6  ;;  %v4478_v6 = vld [vmem:[%s6486_s9 + $0xf8] sm:$0xff] }
 0x572   : > { %v2714_v0 = vpop.f32.mrf.mxu1  ;;  %3351 = vmatpush.bf16.msrb.mxu1 %v4478_v6 }
 0x573   : > { %v2776_v24 = vadd.f32 %v4532_v28, %v2755_v21  ;;  %v2715_v60 = vadd.f32 %v2714_v0, %v6048_v45  ;;  %v4453_v45 = vld [vmem:[%s6486_s9 + $0x30] sm:$0xff]  ;;  %v4486_v0 = vld [vmem:[%s6486_s9 + $0x138] sm:$0xff] }
 0x574   : > { %3283 = vmatpush.bf16.msra.mxu3 %v4453_v45  ;;  %3374 = vmatpush.bf16.msrb.mxu2 %v4486_v0  ;;  %v4485_v21 = vld [vmem:[%s6486_s9 + $0x130] sm:$0xff] }
 0x575   : > { %v2788_v19 = vadd.f32 %v2787_v5, %v2776_v24  ;;  %v4462_v5 = vld [vmem:[%s6486_s9 + $0x78] sm:$0xff] }
 0x578   : > { %v2757_v32 = vpop.f32.mrf.mxu2  ;;  %3375 = vmatpush.bf16.msrb.mxu2 %v4485_v21 }
 0x579   : > { %v2758_v10 = vadd.f32 %v2757_v32, %v2715_v60  ;;  %v4475_v60 = vld [vmem:[%s6486_s9 + $0xe0] sm:$0xff] }
 0x57a   : > { %v2716_v23 = vpop.f32.mrf.mxu1  ;;  %v4483_v32 = vld [vmem:[%s6486_s9 + $0x120] sm:$0xff] }
 0x57b   : > { %v2777_v49 = vadd.f32 %v4532_v28, %v2758_v10 }
 0x57c   : > { %3376 = vmatpush.bf16.msrb.mxu2 %v4484_v31 }
 0x57d   : > { %v2789_v48 = vadd.f32 %v2788_v19, %v2777_v49  ;;  %v4474_v19 = vld [vmem:[%s6486_s9 + $0xd8] sm:$0xff] }
 0x57f   : > { %2790 = vadd.xlane.f32.xlu1 %v2789_v48  ;;  %v4482_v48 = vld [vmem:[%s6486_s9 + $0x118] sm:$0xff] }
 0x580   : > { %v2759_v38 = vpop.f32.mrf.mxu2  ;;  %3377 = vmatpush.bf16.msrb.mxu2 %v4483_v32  ;;  %v4456_v32 = vld [vmem:[%s6486_s9 + $0x48] sm:$0xff] }
 0x581   : > { %v4460_v38 = vld [vmem:[%s6486_s9 + $0x68] sm:$0xff] }
 0x584   : > { %3378 = vmatpush.bf16.msrb.mxu2 %v4482_v48 }
 0x5f2   : > { %v2791_v13 = vpop.xlane.xlu1 %2790 }
 0x5f3   : > { %v2792_v61 = vmul.f32 0.00060096156, %v2791_v13  ;;  %v4473_v13 = vld [vmem:[%s6486_s9 + $0xd0] sm:$0xff] }
 0x5f5   : > { %v6077_v59 = vsub.f32 %v2765_v44, %v2792_v61  ;;  %v6079_v18 = vsub.f32 %v2766_v4, %v2792_v61  ;;  %v6084_v28 = vsub.f32 %v2767_v62, %v2792_v61  ;;  %v6090_v54 = vsub.f32 %v2768_v2, %v2792_v61  ;;  %v4452_v4 = vld [vmem:[%s6486_s9 + $0x28] sm:$0xff] }
 0x5f6   : > { %v6095_v36 = vsub.f32 %v2769_v7, %v2792_v61  ;;  %v6099_v62 = vsub.f32 %v2770_v15, %v2792_v61  ;;  %3284 = vmatpush.bf16.msra.mxu3 %v4452_v4  ;;  %v6106_v52 = vsub.f32 %v2771_v53, %v2792_v61  ;;  %v6110_v39 = vsub.f32 %v2772_v56, %v2792_v61  ;;  %v4449_v15 = vld [vmem:[%s6486_s9 + $0x10] sm:$0xff] }
 0x5f7   : > { %v2806_v55 = vmul.f32 %v6077_v59, %v6077_v59  ;;  %v2807_v33 = vmul.f32 %v6079_v18, %v6079_v18  ;;  %v2808_v41 = vmul.f32 %v6084_v28, %v6084_v28  ;;  %v2809_v63 = vmul.f32 %v6090_v54, %v6090_v54 }
 0x5f8   : > { %v2810_v27 = vmul.f32 %v6095_v36, %v6095_v36  ;;  %v2811_v22 = vmul.f32 %v6099_v62, %v6099_v62  ;;  %v6117_v7 = vsub.f32 %v2773_v8, %v2792_v61  ;;  %v2812_v50 = vmul.f32 %v6106_v52, %v6106_v52 }
 0x5f9   : > { %v2819_v44 = vadd.f32 %v2807_v33, %v2806_v55  ;;  %v6121_v51 = vsub.f32 %v2774_v34, %v2792_v61  ;;  %v2813_v1 = vmul.f32 %v6110_v39, %v6110_v39  ;;  %v6128_v35 = vsub.f32 %v2775_v30, %v2792_v61  ;;  %v4477_v34 = vld [vmem:[%s6486_s9 + $0xf0] sm:$0xff]  ;;  %v4476_v30 = vld [vmem:[%s6486_s9 + $0xe8] sm:$0xff] }
 0x5fa   : > { %3285 = vmatpush.bf16.msra.mxu3 %v4451_v40  ;;  %v2814_v42 = vmul.f32 %v6117_v7, %v6117_v7  ;;  %v6132_v53 = vsub.f32 %v2776_v24, %v2792_v61  ;;  %v6136_v57 = vsub.f32 %v2777_v49, %v2792_v61  ;;  %3352 = vmatpush.bf16.msrb.mxu1 %v4477_v34  ;;  %v4461_v49 = vld [vmem:[%s6486_s9 + $0x70] sm:$0xff]  ;;  %v4472_v55 = vld [vmem:[%s6486_s9 + $0xc8] sm:$0xff]  ;;  %v4459_v40 = vld [vmem:[%s6486_s9 + $0x60] sm:$0xff] }
 0x5fb   : > { %v2820_v58 = vadd.f32 %v2819_v44, %v2808_v41  ;;  %v2815_v25 = vmul.f32 %v6121_v51, %v6121_v51  ;;  %v2816_v56 = vmul.f32 %v6128_v35, %v6128_v35  ;;  %v4481_v61 = vld [vmem:[%s6486_s9 + $0x110] sm:$0xff]  ;;  %v4480_v33 = vld [vmem:[%s6486_s9 + $0x108] sm:$0xff]  ;;  %v4471_v44 = vld [vmem:[%s6486_s9 + $0xc0] sm:$0xff] }
 0x5fc   : > { %v2817_v37 = vmul.f32 %v6132_v53, %v6132_v53  ;;  %v2818_v26 = vmul.f32 %v6136_v57, %v6136_v57  ;;  %3379 = vmatpush.bf16.msrb.mxu2 %v4481_v61 }
 0x5fd   : > { %v2821_v2 = vadd.f32 %v2820_v58, %v2809_v63  ;;  %v4479_v63 = vld [vmem:[%s6486_s9 + $0x100] sm:$0xff] }
 0x5fe   : > { %3286 = vmatpush.bf16.msra.mxu3 %v4450_v47  ;;  %3353 = vmatpush.bf16.msrb.mxu1 %v4476_v30 }
 0x5ff   : > { %v2822_v12 = vadd.f32 %v2821_v2, %v2810_v27  ;;  %v6213_v2 = vld [vmem:[%s6484_s7] ss:$0 sm:$0xff] }
 0x600   : > { %3380 = vmatpush.bf16.msrb.mxu2 %v4480_v33 }
 0x601   : > { %v2823_v43 = vadd.f32 %v2822_v12, %v2811_v22  ;;  %v4458_v22 = vld [vmem:[%s6486_s9 + $0x58] sm:$0xff] }
 0x602   : > { %3287 = vmatpush.bf16.msra.mxu3 %v4449_v15  ;;  %3354 = vmatpush.bf16.msrb.mxu1 %v4475_v60 }
 0x603   : > { %v2824_v11 = vadd.f32 %v2823_v43, %v2812_v50  ;;  %v6227_v43 = vld [vmem:[%s6485_s8] ss:$0 sm:$0xff] }
 0x604   : > { %3381 = vmatpush.bf16.msrb.mxu2 %v4479_v63 }
 0x605   : > { %v2825_v9 = vadd.f32 %v2824_v11, %v2813_v1 }
 0x606   : > { %3288 = vmatpush.bf16.msra.mxu3 %v4448_v46  ;;  %3355 = vmatpush.bf16.msrb.mxu1 %v4474_v19 }
 0x607   : > { %v2826_v17 = vadd.f32 %v2825_v9, %v2814_v42 }
 0x609   : > { %v2827_v29 = vadd.f32 %v2826_v17, %v2815_v25 }
 0x60a   : > { %3289 = vmatpush.bf16.msra.mxu3 %v4447_v14  ;;  %3356 = vmatpush.bf16.msrb.mxu1 %v4473_v13 }
 0x60b   : > { %v2828_v3 = vadd.f32 %v2827_v29, %v2816_v56 }
 0x60d   : > { %v2829_v8 = vadd.f32 %v2828_v3, %v2817_v37 }
 0x60e   : > { %3305 = vmatpush.bf16.msrb.mxu3 %v4462_v5  ;;  %3357 = vmatpush.bf16.msrb.mxu1 %v4472_v55 }
 0x60f   : > { %v2830_v16 = vadd.f32 %v2829_v8, %v2818_v26 }
 0x611   : > { %2831 = vadd.xlane.f32.xlu1 %v2830_v16 }
 0x612   : > { %3306 = vmatpush.bf16.msrb.mxu3 %v4461_v49  ;;  %3358 = vmatpush.bf16.msrb.mxu1 %v4471_v44  ;;  %v4470_v44 = vld [vmem:[%s6486_s9 + $0xb8] sm:$0xff] }
 0x616   : > { %3307 = vmatpush.bf16.msrb.mxu3 %v4460_v38 }
 0x61a   : > { %3308 = vmatpush.bf16.msrb.mxu3 %v4459_v40 }
 0x61e   : > { %3309 = vmatpush.bf16.msrb.mxu3 %v4458_v22 }
 0x684   : > { %v2832_v24 = vpop.xlane.xlu1 %2831 }
 0x685   : > { %v2833_v10 = vmul.f32 0.00060096156, %v2832_v24 }
 0x687   : > { %v2834_v23 = vadd.f32 1e-05, %v2833_v10 }
 0x689   : > { %4540 = vrsqrt.f32 %v2834_v23  ;;  %vm2841_vm4 = vweird.f32 %v2834_v23 }
 0x68f   : > { %v4541_v20 = vpop.eup %4540 }
 0x690   : > { %v2836_v45 = vmul.f32 %v4541_v20, %v2834_v23  ;;  %vm2842_vm3 = vweird.f32 %v4541_v20 }
 0x691   : > { %vm2843_vm5 = vmor %vm2841_vm4, %vm2842_vm3 }
 0x692   : > { %v2837_v4 = vmul.f32 %v4541_v20, %v2836_v45 }
 0x694   : > { %v2838_v41 = vmul.f32 0.5, %v2837_v4 }
 0x696   : > { %v2839_v58 = vsub.f32 1.5, %v2838_v41 }
 0x698   : > { %v2840_v27 = vmul.f32 %v4541_v20, %v2839_v58  ;;  %v4469_v58 = vld [vmem:[%s6486_s9 + $0xb0] sm:$0xff] }
 0x69a   : > { %v6218_v12 = vsel %vm2843_vm5, %v4541_v20, %v2840_v27 }
 0x69b   : > { %v2845_v47 = vmul.f32 %v6218_v12, %v6077_v59  ;;  %v2847_v50 = vmul.f32 %v6218_v12, %v6084_v28  ;;  %v2848_v1 = vmul.f32 %v6218_v12, %v6090_v54  ;;  %v2850_v11 = vmul.f32 %v6218_v12, %v6099_v62  ;;  %v4457_v54 = vld [vmem:[%s6486_s9 + $0x50] sm:$0xff] }
 0x69c   : > { %v2849_v15 = vmul.f32 %v6218_v12, %v6095_v36  ;;  %v2851_v59 = vmul.f32 %v6218_v12, %v6106_v52  ;;  %3310 = vmatpush.bf16.msrb.mxu3 %v4457_v54  ;;  %v2852_v34 = vmul.f32 %v6218_v12, %v6110_v39  ;;  %v2854_v30 = vmul.f32 %v6218_v12, %v6121_v51 }
 0x69d   : > { %v2862_v42 = vmul.f32 %v6213_v2, %v2845_v47  ;;  %v2864_v28 = vmul.f32 %v6213_v2, %v2847_v50  ;;  %v2865_v9 = vmul.f32 %v6213_v2, %v2848_v1  ;;  %v2867_v25 = vmul.f32 %v6213_v2, %v2850_v11 }
 0x69e   : > { %v2866_v62 = vmul.f32 %v6213_v2, %v2849_v15  ;;  %v2868_v36 = vmul.f32 %v6213_v2, %v2851_v59  ;;  %v2853_v31 = vmul.f32 %v6218_v12, %v6117_v7  ;;  %v2855_v60 = vmul.f32 %v6218_v12, %v6128_v35  ;;  %v4455_v35 = vld [vmem:[%s6486_s9 + $0x40] sm:$0xff] }
 0x69f   : > { %v2879_v17 = vadd.f32 %v6227_v43, %v2862_v42  ;;  %v2881_v52 = vadd.f32 %v6227_v43, %v2864_v28  ;;  %v6249_v56 = vadd.f32 %v6227_v43, %v2865_v9  ;;  %v6252_v29 = vadd.f32 %v6227_v43, %v2867_v25  ;;  %v4467_v59 = vld [vmem:[%s6486_s9 + $0xa0] sm:$0xff]  ;;  %v4466_v28 = vld [vmem:[%s6486_s9 + $0x98] sm:$0xff] }
 0x6a0   : > { %v2883_v37 = vadd.f32 %v6227_v43, %v2866_v62  ;;  %v2885_v3 = vadd.f32 %v6227_v43, %v2868_v36  ;;  %v2870_v39 = vmul.f32 %v6213_v2, %v2853_v31  ;;  %v2869_v10 = vmul.f32 %v6213_v2, %v2852_v34  ;;  %3311 = vmatpush.bf16.msrb.mxu3 %v4456_v32 }
 0x6a1   : > { %v2892_v26 = vmax.f32 %v2879_v17, 0.0  ;;  %v2894_v8 = vmax.f32 %v2881_v52, 0.0  ;;  %v2895_v16 = vmax.f32 %v6249_v56, 0.0  ;;  %v2897_v6 = vmax.f32 %v6252_v29, 0.0 }
 0x6a2   : > { %v2896_v0 = vmax.f32 %v2883_v37, 0.0  ;;  %v2898_v46 = vmax.f32 %v2885_v3, 0.0  ;;  %v2871_v51 = vmul.f32 %v6213_v2, %v2854_v30  ;;  %v2887_v5 = vadd.f32 %v6227_v43, %v2870_v39 }
 0x6a3   : > { %v2947_v21 = vpack.c.bf16 %v2894_v8, %v2892_v26  ;;  %v2950_v14 = vpack.c.bf16 %v2897_v6, %v2895_v16  ;;  %v2872_v23 = vmul.f32 %v6213_v2, %v2855_v60  ;;  %v2886_v19 = vadd.f32 %v6227_v43, %v2869_v10 }
 0x6a4   : > { %v2951_v24 = vpack.c.bf16 %v2898_v46, %v2896_v0  ;;  %v2949_v7 = vpack.c.bf16 %v2896_v0, %v2894_v8  ;;  %v2900_v49 = vmax.f32 %v2887_v5, 0.0  ;;  %v2888_v48 = vadd.f32 %v6227_v43, %v2871_v51  ;;  %3312 = vmatpush.bf16.msrb.mxu3 %v4455_v35 }
 0x6a5   : > { %3290 = vmatmul.bf16.vlgmr.msra.gmra.mxu3 %v2947_v21  ;;  %3359 = vmatmul.bf16.vlgmr.msrb.gmra.mxu1 %v2950_v14  ;;  %v2889_v13 = vadd.f32 %v6227_v43, %v2872_v23  ;;  %v2899_v61 = vmax.f32 %v2886_v19, 0.0  ;;  %v2856_v33 = vmul.f32 %v6218_v12, %v6132_v53  ;;  %v2857_v41 = vmul.f32 %v6218_v12, %v6136_v57  ;;  %v4468_v57 = vld [vmem:[%s6486_s9 + $0xa8] sm:$0xff]  ;;  %v4359_v19 = vld [vmem:[%s6490_s13 + $0x70] sm:$0xf] }
 0x6a6   : > { %3382 = vmatmul.bf16.vlgmr.msrb.gmra.mxu2 %v2951_v24  ;;  %v2954_v38 = vpack.c.bf16 %v2900_v49, %v2898_v46  ;;  %v2901_v20 = vmax.f32 %v2888_v48, 0.0  ;;  %v2957_v50 = vpack.c.bf16 %v2900_v49, %v2900_v49  ;;  %v2846_v11 = vmul.f32 %v6218_v12, %v6079_v18  ;;  %v4465_v18 = vld [vmem:[%s6486_s9 + $0x90] sm:$0xff]  ;;  %v4502_v48 = vld [vmem:[%s6490_s13 + $0x74] sm:$0xf0] }
 0x6a7   : > { %v2902_v45 = vmax.f32 %v2889_v13, 0.0  ;;  %v2873_v63 = vmul.f32 %v6213_v2, %v2856_v33  ;;  %v2874_v53 = vmul.f32 %v6213_v2, %v2857_v41  ;;  %v2953_v54 = vpack.c.bf16 %v2899_v61, %v2897_v6 }
 0x6a8   : > { %v2955_v55 = vpack.c.bf16 %v2901_v20, %v2899_v61  ;;  %3328 = vmatpush.bf16.msra.mxu3 %v4470_v44  ;;  %v2863_v42 = vmul.f32 %v6213_v2, %v2846_v11  ;;  %v4464_v2 = vld [vmem:[%s6486_s9 + $0x88] sm:$0xff]  ;;  %v2958_v62 = vpack.c.bf16 %v2901_v20, %v2901_v20  ;;  %v4360_v13 = vor.u32 %v4502_v48, %v4359_v19 }
 0x6a9   : > { %v2956_v4 = vpack.c.bf16 %v2902_v45, %v2900_v49  ;;  %v2890_v40 = vadd.f32 %v6227_v43, %v2873_v63  ;;  %v2891_v27 = vadd.f32 %v6227_v43, %v2874_v53  ;;  %v2959_v17 = vpack.c.bf16 %v2902_v45, %v2902_v45  ;;  %v4500_v61 = vld [vmem:[%s6490_s13 + $0x64] sm:$0xf0] }
 0x6aa   : > { %v2880_v9 = vadd.f32 %v6227_v43, %v2863_v42  ;;  %v4463_v43 = vld [vmem:[%s6486_s9 + $0x80] sm:$0xff]  ;;  %3584 = vmatpush.bf16.msra.mxu0 %v4360_v13 }
 0x6ab   : > { %v2903_v22 = vmax.f32 %v2890_v40, 0.0  ;;  %v2904_v47 = vmax.f32 %v2891_v27, 0.0 }
 0x6ac   : > { %3329 = vmatpush.bf16.msra.mxu3 %v4469_v58  ;;  %v2893_v12 = vmax.f32 %v2880_v9, 0.0 }
 0x6ad   : > { %v2960_v1 = vpack.c.bf16 %v2903_v22, %v2903_v22  ;;  %v2961_v15 = vpack.c.bf16 %v2904_v47, %v2904_v47 }
 0x6ae   : > { %v2948_v25 = vpack.c.bf16 %v2895_v16, %v2893_v12 }
 0x6b0   : > { %3330 = vmatpush.bf16.msra.mxu3 %v4468_v57 }
 0x6b4   : > { %3331 = vmatpush.bf16.msra.mxu3 %v4467_v59 }
 0x6b5   : > { %3295 = vmatmul.bf16.gmra.mxu3 %v2951_v24  ;;  %3364 = vmatmul.bf16.gmra.mxu1 %v2955_v55 }
 0x6b6   : > { %3387 = vmatmul.bf16.gmra.mxu2 %v2956_v4 }
 0x6b8   : > { %3332 = vmatpush.bf16.msra.mxu3 %v4466_v28 }
 0x6bc   : > { %3333 = vmatpush.bf16.msra.mxu3 %v4465_v18 }
 0x6c0   : > { %3334 = vmatpush.bf16.msra.mxu3 %v4464_v2 }
 0x6c4   : > { %3335 = vmatpush.bf16.msra.mxu3 %v4463_v43 }
 0x6c5   : > { %3300 = vmatmul.bf16.gmra.mxu3 %v2957_v50  ;;  %3369 = vmatmul.bf16.gmra.mxu1 %v2960_v1  ;;  %v4535_v50 = vld [vmem:[%s6487_s10] ss:$0 sm:$0xff] }
 0x6c6   : > { %3392 = vmatmul.bf16.gmra.mxu2 %v2961_v15 }
 0x6d5   : > { %3313 = vmatmul.bf16.vlgmr.msrb.gmra.mxu3 %v2948_v25 }
 0x6e5   : > { %3318 = vmatmul.bf16.gmra.mxu3 %v2953_v54 }
 0x6f5   : > { %3323 = vmatmul.bf16.gmra.mxu3 %v2958_v62 }
 0x705   : > { %3336 = vmatmul.bf16.vlgmr.msra.gmra.mxu3 %v2949_v7 }
 0x715   : > { %3341 = vmatmul.bf16.gmra.mxu3 %v2954_v38  ;;  %v4351_v38 = vld [vmem:[%s6490_s13 + $0x60] sm:$0xf] }
 0x716   : > { %v4352_v20 = vor.u32 %v4500_v61, %v4351_v38 }
 0x718   : > { %3585 = vmatpush.bf16.msra.mxu0 %v4352_v20 }
 0x722   : > { %v3360_v36 = vpop.f32.mrf.mxu1 }
 0x725   : > { %3346 = vmatmul.bf16.gmra.mxu3 %v2959_v17 }
 0x728   : > { %v3291_v52 = vpop.f32.mrf.mxu3 }
 0x729   : > { %v3383_v56 = vpop.f32.mrf.mxu2 }
 0x72a   : > { %v3362_v37 = vpop.f32.mrf.mxu1 }
 0x730   : > { %v3293_v3 = vpop.f32.mrf.mxu3 }
 0x731   : > { %v3385_v26 = vpop.f32.mrf.mxu2 }
 0x732   : > { %v3365_v8 = vpop.f32.mrf.mxu1 }
 0x738   : > { %v3296_v16 = vpop.f32.mrf.mxu3 }
 0x739   : > { %v3388_v0 = vpop.f32.mrf.mxu2 }
 0x73a   : > { %v3367_v46 = vpop.f32.mrf.mxu1 }
 0x740   : > { %v3298_v34 = vpop.f32.mrf.mxu3 }
 0x741   : > { %v3390_v29 = vpop.f32.mrf.mxu2 }
 0x742   : > { %v3370_v6 = vpop.f32.mrf.mxu1 }
 0x748   : > { %v3301_v21 = vpop.f32.mrf.mxu3 }
 0x749   : > { %v3393_v14 = vpop.f32.mrf.mxu2 }
 0x74a   : > { %v3372_v30 = vpop.f32.mrf.mxu1 }
 0x74b   : > { %v4492_v30 = vld [vmem:[%s6490_s13 + $0x24] sm:$0xf0] }
 0x750   : > { %v3303_v31 = vpop.f32.mrf.mxu3 }
 0x751   : > { %v3395_v24 = vpop.f32.mrf.mxu2 }
 0x752   : > { %v4311_v24 = vld [vmem:[%s6490_s13 + $0x10] sm:$0xf] }
 0x758   : > { %v3314_v60 = vpop.f32.mrf.mxu3 }
 0x759   : > { %v3315_v39 = vadd.f32 %v3314_v60, %v3291_v52  ;;  %v4490_v60 = vld [vmem:[%s6490_s13 + $0x14] sm:$0xf0] }
 0x760   : > { %v3316_v32 = vpop.f32.mrf.mxu3 }
 0x761   : > { %v3317_v10 = vadd.f32 %v3316_v32, %v3293_v3 }
 0x768   : > { %v3319_v51 = vpop.f32.mrf.mxu3 }
 0x769   : > { %v3320_v55 = vadd.f32 %v3319_v51, %v3296_v16  ;;  %v4327_v16 = vld [vmem:[%s6490_s13 + $0x30] sm:$0xf] }
 0x770   : > { %v3321_v5 = vpop.f32.mrf.mxu3 }
 0x771   : > { %v3322_v44 = vadd.f32 %v3321_v5, %v3298_v34  ;;  %v4501_v34 = vld [vmem:[%s6490_s13 + $0x74] sm:$0xf] }
 0x778   : > { %v3324_v7 = vpop.f32.mrf.mxu3 }
 0x779   : > { %v3325_v11 = vadd.f32 %v3324_v7, %v3301_v21 }
 0x780   : > { %v3326_v23 = vpop.f32.mrf.mxu3 }
 0x788   : > { %v3337_v35 = vpop.f32.mrf.mxu3 }
 0x789   : > { %v3338_v4 = vadd.f32 %v3337_v35, %v3315_v39  ;;  %v4312_v39 = vor.u32 %v4490_v60, %v4311_v24 }
 0x78b   : > { %v3361_v53 = vadd.f32 %v3360_v36, %v3338_v4  ;;  %v4353_v4 = vld [vmem:[%s6490_s13 + $0x68] sm:$0xf0] }
 0x78d   : > { %v3384_v47 = vadd.f32 %v3383_v56, %v3361_v53  ;;  %v4343_v56 = vld [vmem:[%s6490_s13 + $0x50] sm:$0xf] }
 0x78f   : > { %v3401_v28 = vadd.f32 %v4535_v50, %v3384_v47  ;;  %v4337_v47 = vld [vmem:[%s6490_s13 + $0x48] sm:$0xf0] }
 0x790   : > { %v3339_v49 = vpop.f32.mrf.mxu3 }
 0x791   : > { %v3340_v33 = vadd.f32 %v3339_v49, %v3317_v10 }
 0x793   : > { %v3363_v63 = vadd.f32 %v3362_v37, %v3340_v33  ;;  %v4498_v37 = vld [vmem:[%s6490_s13 + $0x54] sm:$0xf0]  ;;  %v4499_v33 = vld [vmem:[%s6490_s13 + $0x64] sm:$0xf] }
 0x794   : > { %v4344_v3 = vor.u32 %v4498_v37, %v4343_v56  ;;  %v4487_v56 = vld [vmem:[%s6490_s13 + $0x4] sm:$0xf]  ;;  %v4305_v37 = vld [vmem:[%s6490_s13 + $0x8] sm:$0xf0] }
 0x795   : > { %v3386_v27 = vadd.f32 %v3385_v26, %v3363_v63  ;;  %v4335_v26 = vld [vmem:[%s6490_s13 + $0x40] sm:$0xf]  ;;  %v4345_v63 = vld [vmem:[%s6490_s13 + $0x58] sm:$0xf0] }
 0x796   : > { %3586 = vmatpush.bf16.msra.mxu0 %v4344_v3 }
 0x797   : > { %v3402_v15 = vadd.f32 %v4535_v50, %v3386_v27 }
 0x798   : > { %v3342_v45 = vpop.f32.mrf.mxu3 }
 0x799   : > { %v3343_v41 = vadd.f32 %v3342_v45, %v3320_v55  ;;  %v3406_v2 = vadd.f32 %v3402_v15, %v3401_v28 }
 0x79b   : > { %v3366_v40 = vadd.f32 %v3365_v8, %v3343_v41  ;;  %v4496_v8 = vld [vmem:[%s6490_s13 + $0x44] sm:$0xf0]  ;;  %v4497_v41 = vld [vmem:[%s6490_s13 + $0x54] sm:$0xf] }
 0x79c   : > { %v4348_v53 = vor.u32 %v4497_v41, %v4345_v63 }
 0x79d   : > { %v3389_v1 = vadd.f32 %v3388_v0, %v3366_v40  ;;  %v4336_v0 = vor.u32 %v4496_v8, %v4335_v26  ;;  %v4303_v40 = vld [vmem:[%s6490_s13] sm:$0xf]  ;;  %v4308_v8 = vor.u32 %v4487_v56, %v4305_v37 }
 0x79f   : > { %v3403_v18 = vadd.f32 %v4535_v50, %v3389_v1  ;;  %3587 = vmatpush.bf16.msra.mxu0 %v4336_v0  ;;  %v4536_v0 = vld [vmem:[%s6488_s11] ss:$0 sm:$0xff] }
 0x7a0   : > { %v3344_v58 = vpop.f32.mrf.mxu3 }
 0x7a1   : > { %v3345_v57 = vadd.f32 %v3344_v58, %v3322_v44  ;;  %v3407_v54 = vadd.f32 %v3406_v2, %v3403_v18  ;;  %v4356_v44 = vor.u32 %v4499_v33, %v4353_v4 }
 0x7a3   : > { %v3368_v22 = vadd.f32 %v3367_v46, %v3345_v57  ;;  %v4494_v46 = vld [vmem:[%s6490_s13 + $0x34] sm:$0xf0]  ;;  %v4488_v57 = vld [vmem:[%s6490_s13 + $0x4] sm:$0xf0] }
 0x7a5   : > { %v3391_v59 = vadd.f32 %v3390_v29, %v3368_v22  ;;  %v4361_v29 = vld [vmem:[%s6490_s13 + $0x78] sm:$0xf0]  ;;  %v4495_v22 = vld [vmem:[%s6490_s13 + $0x44] sm:$0xf] }
 0x7a6   : > { %v4364_v21 = vor.u32 %v4501_v34, %v4361_v29  ;;  %v4537_v34 = vld [vmem:[%s6489_s12] ss:$0 sm:$0xff] }
 0x7a7   : > { %v3404_v25 = vadd.f32 %v4535_v50, %v3391_v59  ;;  %v4329_v59 = vld [vmem:[%s6490_s13 + $0x38] sm:$0xf0] }
 0x7a8   : > { %v3347_v42 = vpop.f32.mrf.mxu3  ;;  %3597 = vmatpush.bf16.msrb.mxu3 %v4364_v21 }
 0x7a9   : > { %v3348_v9 = vadd.f32 %v3347_v42, %v3325_v11  ;;  %v3408_v36 = vadd.f32 %v3407_v54, %v3404_v25  ;;  %v4340_v11 = vor.u32 %v4495_v22, %v4337_v47  ;;  %v4313_v54 = vld [vmem:[%s6490_s13 + $0x18] sm:$0xf0] }
 0x7ab   : > { %v3371_v12 = vadd.f32 %v3370_v6, %v3348_v9  ;;  %v4328_v6 = vor.u32 %v4494_v46, %v4327_v16  ;;  %v4321_v9 = vld [vmem:[%s6490_s13 + $0x28] sm:$0xf0] }
 0x7ac   : > { %3598 = vmatpush.bf16.msrb.mxu3 %v4356_v44 }
 0x7ad   : > { %v3394_v43 = vadd.f32 %v3393_v14, %v3371_v12  ;;  %v4319_v14 = vld [vmem:[%s6490_s13 + $0x20] sm:$0xf]  ;;  %3588 = vmatpush.bf16.msra.mxu0 %v4328_v6  ;;  %v4572_v12 = vmov 5.0  }
 0x7ae   : > { %v4320_v31 = vor.u32 %v4492_v30, %v4319_v14 }
 0x7af   : > { %v3405_v62 = vadd.f32 %v4535_v50, %v3394_v43  ;;  %v4304_v50 = vor.u32 %v4488_v57, %v4303_v40  ;;  %v4489_v43 = vld [vmem:[%s6490_s13 + $0x14] sm:$0xf] }
 0x7b0   : > { %v3349_v17 = vpop.f32.mrf.mxu3  ;;  %3599 = vmatpush.bf16.msrb.mxu3 %v4348_v53 }
 0x7b1   : > { %v3409_v52 = vadd.f32 %v3408_v36, %v3405_v62  ;;  %3589 = vmatpush.bf16.msra.mxu0 %v4320_v31  ;;  %v4316_v17 = vor.u32 %v4489_v43, %v4313_v54 }
 0x7b3   : > { %3410 = vadd.xlane.f32.xlu2 %v3409_v52 }
 0x7b4   : > { %3600 = vmatpush.bf16.msrb.mxu3 %v4340_v11 }
 0x7b5   : > { %3590 = vmatpush.bf16.msra.mxu0 %v4312_v39 }
 0x7b9   : > { %3591 = vmatpush.bf16.msra.mxu0 %v4304_v50 }
 0x826   : > { %v3411_v32 = vpop.xlane.xlu2 %3410 }
 0x827   : > { %v3412_v10 = vmul.f32 0.0015625, %v3411_v32 }
 0x829   : > { %v6375_v51 = vsub.f32 %v3401_v28, %v3412_v10  ;;  %v6377_v5 = vsub.f32 %v3402_v15, %v3412_v10  ;;  %v6379_v7 = vsub.f32 %v3403_v18, %v3412_v10  ;;  %v6381_v23 = vsub.f32 %v3404_v25, %v3412_v10  ;;  %v4493_v15 = vld [vmem:[%s6490_s13 + $0x34] sm:$0xf]  ;;  %v4491_v28 = vld [vmem:[%s6490_s13 + $0x24] sm:$0xf] }
 0x82a   : > { %v6387_v19 = vsub.f32 %v3405_v62, %v3412_v10  ;;  %v4332_v42 = vor.u32 %v4493_v15, %v4329_v59  ;;  %v4324_v2 = vor.u32 %v4491_v28, %v4321_v9  ;;  %v3610_v15 = vld [vmem:[%s820_s28] sm:$0xff] }
 0x82b   : > { %v3418_v35 = vmul.f32 %v6375_v51, %v6375_v51  ;;  %v3419_v49 = vmul.f32 %v6377_v5, %v6377_v5  ;;  %v3420_v48 = vmul.f32 %v6379_v7, %v6379_v7  ;;  %v3421_v13 = vmul.f32 %v6381_v23, %v6381_v23 }
 0x82c   : > { %v3422_v20 = vmul.f32 %v6387_v19, %v6387_v19  ;;  %3601 = vmatpush.bf16.msrb.mxu3 %v4332_v42 }
 0x82d   : > { %v3423_v38 = vadd.f32 %v3419_v49, %v3418_v35 }
 0x82f   : > { %v3424_v61 = vadd.f32 %v3423_v38, %v3420_v48 }
 0x830   : > { %3602 = vmatpush.bf16.msrb.mxu3 %v4324_v2 }
 0x831   : > { %v3425_v45 = vadd.f32 %v3424_v61, %v3421_v13 }
 0x833   : > { %v3426_v55 = vadd.f32 %v3425_v45, %v3422_v20 }
 0x834   : > { %3603 = vmatpush.bf16.msrb.mxu3 %v4316_v17 }
 0x835   : > { %3427 = vadd.xlane.f32.xlu2 %v3426_v55 }
 0x838   : > { %3604 = vmatpush.bf16.msrb.mxu3 %v4308_v8 }
 0x8a8   : > { %v3428_v58 = vpop.xlane.xlu2 %3427 }
 0x8a9   : > { %v3429_v27 = vmul.f32 0.0015625, %v3428_v58  ;;  %v3498_v58 = vld [vmem:[%s6491_s14] sm:$0x3] }
 0x8aa   : > { %v3500_v53 = vperm.slane %v3498_v58, 0 }
 0x8ab   : > { %v3430_v1 = vadd.f32 1e-05, %v3429_v27  ;;  %v3501_v27 = vperm.slane %v3498_v58, 1 }
 0x8ad   : > { %4542 = vrsqrt.f32 %v3430_v1  ;;  %vm3437_vm7 = vweird.f32 %v3430_v1 }
 0x8ae   : > { %4544 = vrcp.f32 %v4572_v12 }
 0x8b3   : > { %v4543_v18 = vpop.eup %4542 }
 0x8b4   : > { %v3432_v25 = vmul.f32 %v4543_v18, %v3430_v1  ;;  %v4545_v52 = vpop.eup %4544  ;;  %vm3438_vm6 = vweird.f32 %v4543_v18 }
 0x8b5   : > { %v3474_v16 = vmul.f32 5.0, %v4545_v52  ;;  %vm3439_vm8 = vmor %vm3437_vm7, %vm3438_vm6  ;;  %vm3478_vm9 = vweird.f32 %v4545_v52 }
 0x8b6   : > { %v3433_v62 = vmul.f32 %v4543_v18, %v3432_v25 }
 0x8b7   : > { %v3475_v31 = vsub.f32 1.0, %v3474_v16 }
 0x8b8   : > { %v3434_v36 = vmul.f32 0.5, %v3433_v62 }
 0x8b9   : > { %v3476_v38 = vmul.f32 %v4545_v52, %v3475_v31 }
 0x8ba   : > { %v3435_v3 = vsub.f32 1.5, %v3434_v36 }
 0x8bc   : > { %v3436_v26 = vmul.f32 %v4543_v18, %v3435_v3 }
 0x8be   : > { %v3440_v46 = vsel %vm3439_vm8, %v4543_v18, %v3436_v26 }
 0x8bf   : > { %v3441_v29 = vmul.f32 %v3440_v46, %v6375_v51  ;;  %v3442_v6 = vmul.f32 %v3440_v46, %v6377_v5  ;;  %v3443_v21 = vmul.f32 %v3440_v46, %v6379_v7  ;;  %v3444_v14 = vmul.f32 %v3440_v46, %v6381_v23 }
 0x8c0   : > { %v3445_v30 = vmul.f32 %v3440_v46, %v6387_v19  ;;  %v3477_v19 = vadd.f32 %v4545_v52, %v3476_v38 }
 0x8c1   : > { %v3450_v24 = vmul.f32 %v4536_v0, %v3441_v29  ;;  %v3451_v60 = vmul.f32 %v4536_v0, %v3442_v6  ;;  %v3452_v39 = vmul.f32 %v4536_v0, %v3443_v21  ;;  %v3453_v32 = vmul.f32 %v4536_v0, %v3444_v14 }
 0x8c2   : > { %v3454_v10 = vmul.f32 %v4536_v0, %v3445_v30  ;;  %v3479_v4 = vsel %vm3478_vm9, %v4545_v52, %v3477_v19 }
 0x8c3   : > { %v3459_v35 = vadd.f32 %v4537_v34, %v3450_v24  ;;  %v3460_v49 = vadd.f32 %v4537_v34, %v3451_v60  ;;  %v3461_v48 = vadd.f32 %v4537_v34, %v3452_v39  ;;  %v3462_v51 = vadd.f32 %v4537_v34, %v3453_v32 }
 0x8c4   : > { %v3463_v23 = vadd.f32 %v4537_v34, %v3454_v10 }
 0x8c5   : > { %v3464_v13 = vmax.f32 %v3459_v35, 0.0  ;;  %v3465_v5 = vmax.f32 %v3460_v49, 0.0  ;;  %v3466_v7 = vmax.f32 %v3461_v48, 0.0  ;;  %v3467_v20 = vmax.f32 %v3462_v51, 0.0 }
 0x8c6   : > { %v3468_v55 = vmax.f32 %v3463_v23, 0.0 }
 0x8c7   : > { %v3469_v61 = vadd.f32 %v3465_v5, %v3464_v13 }
 0x8c9   : > { %v3470_v45 = vadd.f32 %v3469_v61, %v3466_v7 }
 0x8cb   : > { %v3471_v33 = vadd.f32 %v3470_v45, %v3467_v20 }
 0x8cd   : > { %v3472_v41 = vadd.f32 %v3471_v33, %v3468_v55 }
 0x8cf   : > { %v3480_v44 = vmul.f32 %v3479_v4, %v3472_v41 }
 0x8d1   : > { %v3481_v63 = vpack.c.bf16 %v3480_v44, %v3480_v44 }
 0x8d3   : > { %3592 = vmatmul.bf16.vlgmr.msra.gmra.mxu0 %v3481_v63  ;;  %3605 = vmatmul.bf16.vlgmr.msrb.gmra.mxu3 %v3481_v63 }
 0x950   : > { %v3593_v40 = vpop.f32.mrf.mxu0 }
 0x951   : > { %v3594_v57 = vadd.f32 %v3593_v40, %v3500_v53 }
 0x953   : > { %3615 = vst [vmem:[%s825_s20] sm:$0xff] %v3594_v57 }
 0x956   : > { %v3606_v22 = vpop.f32.mrf.mxu3 }
 0x957   : > { %v3607_v47 = vadd.f32 %v3606_v22, %v3501_v27 }
 0x958   : > { %v3595_v50 = vpop.f32.mrf.mxu0 }
 0x959   : > { %v3611_v1 = vmul.f32 1.442695, %v3607_v47  ;;  %3616 = vst [vmem:[%s825_s20 + $0x8] sm:$0xff] %v3607_v47 }
 0x95b   : > { %4546 = vpow2.f32 %v3611_v1 }
 0x95e   : > { %v3608_v11 = vpop.f32.mrf.mxu3 }
 0x961   : > { %v4547_v59 = vpop.eup %4546 }
 0x962   : > { %v3613_v42 = vmul.f32 %v4547_v59, %v3610_v15 }
 0x964   : > { %v3614_v28 = vadd.f32 %v3613_v42, %v3594_v57 }
 0x966   : > { %3617 = vst [vmem:[%s825_s20 + $0x10] sm:$0xff] %v3614_v28 }
 0x967 PF: > { %s6523_s26 = sld [smem:[#allocation5_spill]]  ;;  %p23_p9 = scmp.ge.s32.totalorder %s4675_s25, 4  }
 0x968   : > { %s6524_s21 = smov %s4566_s22  ;;  %s6526_s23 = smov %s4675_s25 }
 0x969   :  { %25 = sbr.rel (!%p23_p9) target bundleno = 4 (0x4), region = 172 }
 0x96d   : > { %s6525_s22 = smov %s6523_s26 }

</bundles_post_ra>
